<compile_context>
chip_gen: v6e
topology: v6e:2x2x1
jax: 0.10.0
libtpu: 0.0.40
codegen_flags: <defaults>
</compile_context>

<pallas_src>
import functools

import jax
import jax.numpy as jnp
from jax.experimental import pallas as pl
from jax.experimental.pallas import tpu as pltpu

# Set to jnp.bfloat16 on v6e / v7x for ~2x MXU throughput and half the DMA
# bytes (accumulation stays f32). Kept f32 by default to match the PyTorch
# reference numerics (and v5e has no bf16 VPU path).
MXU_INPUT_DTYPE = jnp.float32

HEAD_PAD = 128  # lane-dense detection-head output width (cls|reg|iou|zeros)


# ----------------------------- fused layer kernel --------------------------- #

def _seed_layer_kernel(*refs, nhead, eps):
    (q_ref, qp_ref, mem_ref,
     sa_wqk, sa_bqk, sa_wv, sa_bv, sa_wo, sa_bo, ln1_g, ln1_b,
     ca_wq, ca_bq, ca_wkv, ca_bkv, ca_wo, ca_bo, ln2_g, ln2_b,
     ffn_w1, ffn_b1, ffn_w2, ffn_b2, ln3_g, ln3_b,
     head_w, head_b,
     out_q_ref, out_head_ref) = refs

    query = q_ref[0]        # [N, D]
    qpos = qp_ref[0]        # [N, D]
    memory = mem_ref[0]     # [M, D]
    D = query.shape[-1]
    dh = D // nhead
    scale = 1.0 / float(dh) ** 0.5

    def mm(x, w_ref, b_ref):
        return jnp.dot(x.astype(MXU_INPUT_DTYPE),
                       w_ref[...].astype(MXU_INPUT_DTYPE),
                       preferred_element_type=jnp.float32) + b_ref[...]

    def layernorm(x, g_ref, b_ref):
        mu = jnp.mean(x, axis=-1, keepdims=True)
        c = x - mu
        var = jnp.mean(c * c, axis=-1, keepdims=True)
        return c * jax.lax.rsqrt(var + eps) * g_ref[...] + b_ref[...]

    def attn_out(q, k, v, wo_ref, bo_ref):
        # Per-head softmax(q k^T / sqrt(dh)) v with the output projection
        # folded into the head loop (avoids per-head concat / relayout).
        wo = wo_ref[...]                     # [D, D]
        acc = None
        for h in range(nhead):               # static unroll, nhead is small
            sl = slice(h * dh, (h + 1) * dh)
            qh = q[:, sl].astype(MXU_INPUT_DTYPE)
            kh = k[:, sl].astype(MXU_INPUT_DTYPE)
            vh = v[:, sl].astype(MXU_INPUT_DTYPE)
            s = jnp.dot(qh, kh.T, preferred_element_type=jnp.float32) * scale
            s = s - jnp.max(s, axis=-1, keepdims=True)
            p = jnp.exp(s)
            p = p * pl.reciprocal(jnp.sum(p, axis=-1, keepdims=True), approx=True)
            oh = jnp.dot(p.astype(MXU_INPUT_DTYPE), vh,
                         preferred_element_type=jnp.float32)
            contrib = jnp.dot(oh.astype(MXU_INPUT_DTYPE),
                              wo[sl, :].astype(MXU_INPUT_DTYPE),
                              preferred_element_type=jnp.float32)
            acc = contrib if acc is None else acc + contrib
        return acc + bo_ref[...]

    # --- self attention (q = k = query + query_pos, v = query) ---
    qk_in = query + qpos
    qk = mm(qk_in, sa_wqk, sa_bqk)          # fused Wq|Wk -> [N, 2D]
    q_sa = qk[:, :D]
    k_sa = qk[:, D:]
    v_sa = mm(query, sa_wv, sa_bv)
    a = attn_out(q_sa, k_sa, v_sa, sa_wo, sa_bo)
    query = layernorm(query + a, ln1_g, ln1_b)

    # --- cross attention over memory ---
    q_ca = mm(query + qpos, ca_wq, ca_bq)
    kv = mm(memory, ca_wkv, ca_bkv)         # fused Wk|Wv -> [M, 2D]
    k_ca = kv[:, :D]
    v_ca = kv[:, D:]
    a = attn_out(q_ca, k_ca, v_ca, ca_wo, ca_bo)
    query = layernorm(query + a, ln2_g, ln2_b)

    # --- FFN ---
    h = jnp.maximum(mm(query, ffn_w1, ffn_b1), 0.0)
    h = mm(h, ffn_w2, ffn_b2)
    query = layernorm(query + h, ln3_g, ln3_b)

    out_q_ref[0] = query
    # Fused cls|reg|iou detection head; output padded to 128 lanes so the
    # store path is lane-dense (sliced apart in the wrapper).
    out_head_ref[0] = mm(query, head_w, head_b)


def seed_decoder_layer(layer_p, head_p, query, query_pos, memory, *, nhead, eps=1e-5):
    B, N, D = query.shape
    M = memory.shape[1]
    hpad = head_p["head_w"].shape[1]

    weights = [
        layer_p["sa_wqk"], layer_p["sa_bqk"], layer_p["sa_wv"], layer_p["sa_bv"],
        layer_p["sa_wo"], layer_p["sa_bo"], layer_p["ln1_g"], layer_p["ln1_b"],
        layer_p["ca_wq"], layer_p["ca_bq"], layer_p["ca_wkv"], layer_p["ca_bkv"],
        layer_p["ca_wo"], layer_p["ca_bo"], layer_p["ln2_g"], layer_p["ln2_b"],
        layer_p["ffn_w1"], layer_p["ffn_b1"], layer_p["ffn_w2"], layer_p["ffn_b2"],
        layer_p["ln3_g"], layer_p["ln3_b"],
        head_p["head_w"], head_p["head_b"],
    ]
    # Weights use a constant block index -> fetched once, not per grid step.
    w_specs = [pl.BlockSpec(w.shape, lambda b: (0, 0)) for w in weights]

    out_q, head_out = pl.pallas_call(
        functools.partial(_seed_layer_kernel, nhead=nhead, eps=eps),
        out_shape=(jax.ShapeDtypeStruct((B, N, D), jnp.float32),
                   jax.ShapeDtypeStruct((B, N, hpad), jnp.float32)),
        grid=(B,),
        in_specs=[pl.BlockSpec((1, N, D), lambda b: (b, 0, 0)),
                  pl.BlockSpec((1, N, D), lambda b: (b, 0, 0)),
                  pl.BlockSpec((1, M, D), lambda b: (b, 0, 0))] + w_specs,
        out_specs=(pl.BlockSpec((1, N, D), lambda b: (b, 0, 0)),
                   pl.BlockSpec((1, N, hpad), lambda b: (b, 0, 0))),
        compiler_params=pltpu.CompilerParams(
            dimension_semantics=("parallel",)),
    )(query, query_pos, memory, *weights)
    return out_q, head_out


# ------------------------------ decoder forward ----------------------------- #

def seed_decoder_forward(params, query, query_pos, memory, memory_shape,
                         memory_start_idx, ref_windows, attn_mask=None, *,
                         code_size, num_classes, nhead):
    """Mirrors SEEDDecoder.forward: returns (stacked outputs, stacked ref_windows)."""
    # TODO(synk): attn_mask / memory_shape / memory_start_idx belong to the
    # original deformable-style decoder_layer; unused in this dense layer.
    del memory_shape, memory_start_idx, attn_mask

    output = query
    intermediate = []
    intermediate_ref_windows = []
    for layer_p, head_p in zip(params["layers"], params["heads"]):
        output, head_out = seed_decoder_layer(
            layer_p, head_p, output, query_pos, memory, nhead=nhead)
        new_ref_logits = head_out[..., :num_classes]
        deltas = head_out[..., num_classes:num_classes + code_size]
        _new_ref_ious = head_out[..., num_classes + code_size:
                                 num_classes + code_size + 1]
        new_ref_windows = ref_windows[..., :code_size] + deltas
        new_ref_probs = jax.nn.sigmoid(new_ref_logits)
        ref_windows = jnp.concatenate(
            (jax.lax.stop_gradient(new_ref_windows),
             jax.lax.stop_gradient(new_ref_probs)), axis=-1)
        intermediate.append(output)
        intermediate_ref_windows.append(new_ref_windows)
    return jnp.stack(intermediate), jnp.stack(intermediate_ref_windows)


# --------------------------------- params ----------------------------------- #

def init_params(key, d_model, dim_ffn, nhead, num_layers, code_size, num_classes,
                head_pad=HEAD_PAD):
    assert d_model % nhead == 0

    def nrm(k, shape, scale=0.02):
        return scale * jax.random.normal(k, shape, dtype=jnp.float32)

    def zrow(n):
        return jnp.zeros((1, n), jnp.float32)

    def orow(n):
        return jnp.ones((1, n), jnp.float32)

    layers, heads = [], []
    for _ in range(num_layers):
        keys = jax.random.split(key, 16)
        key = keys[0]
        k = iter(keys[1:])
        layer = dict(
            sa_wqk=nrm(next(k), (d_model, 2 * d_model)), sa_bqk=zrow(2 * d_model),
            sa_wv=nrm(next(k), (d_model, d_model)), sa_bv=zrow(d_model),
            sa_wo=nrm(next(k), (d_model, d_model)), sa_bo=zrow(d_model),
            ca_wq=nrm(next(k), (d_model, d_model)), ca_bq=zrow(d_model),
            ca_wkv=nrm(next(k), (d_model, 2 * d_model)), ca_bkv=zrow(2 * d_model),
            ca_wo=nrm(next(k), (d_model, d_model)), ca_bo=zrow(d_model),
            ffn_w1=nrm(next(k), (d_model, dim_ffn)), ffn_b1=zrow(dim_ffn),
            ffn_w2=nrm(next(k), (dim_ffn, d_model)), ffn_b2=zrow(d_model),
            ln1_g=orow(d_model), ln1_b=zrow(d_model),
            ln2_g=orow(d_model), ln2_b=zrow(d_model),
            ln3_g=orow(d_model), ln3_b=zrow(d_model),
        )
        # Fused detection head: [cls | reg | iou | zero-pad] along output lanes.
        h_used = num_classes + code_size + 1
        head_w = jnp.zeros((d_model, head_pad), jnp.float32)
        head_w = head_w.at[:, :h_used].set(nrm(next(k), (d_model, h_used)))
        head = dict(head_w=head_w, head_b=jnp.zeros((1, head_pad), jnp.float32))
        layers.append(layer)
        heads.append(head)
    return dict(layers=layers, heads=heads)


# ---------------------------------- main ------------------------------------ #

if __name__ == "__main__":
    B, N, M = 2, 8, 16          # batch, num queries, memory tokens
    d_model, dim_ffn, nhead = 32, 64, 4
    num_layers, code_size, num_classes = 2, 7, 3

    root = jax.random.PRNGKey(0)
    kp, kq, kqp, km, kr = jax.random.split(root, 5)

    params = init_params(kp, d_model, dim_ffn, nhead, num_layers, code_size,
                         num_classes)

    query = jax.random.normal(kq, (B, N, d_model), dtype=jnp.float32)
    query_pos = jax.random.normal(kqp, (B, N, d_model), dtype=jnp.float32)
    memory = jax.random.normal(km, (B, M, d_model), dtype=jnp.float32)
    ref_windows = jax.random.uniform(kr, (B, N, code_size + num_classes),
                                     dtype=jnp.float32)
    memory_shape = jnp.array([[4, 4]], dtype=jnp.int32)       # unused (dense layer)
    memory_start_idx = jnp.array([0], dtype=jnp.int32)        # unused (dense layer)

    fwd = jax.jit(functools.partial(seed_decoder_forward,
                                    code_size=code_size,
                                    num_classes=num_classes,
                                    nhead=nhead))
    inter, inter_ref = fwd(params, query, query_pos, memory, memory_shape,
                           memory_start_idx, ref_windows)
    jax.block_until_ready((inter, inter_ref))

    assert inter.shape == (num_layers, B, N, d_model)
    assert inter_ref.shape == (num_layers, B, N, code_size)
    assert bool(jnp.all(jnp.isfinite(inter))) and bool(jnp.all(jnp.isfinite(inter_ref)))
    print("KERNEL_OK")
</pallas_src>

<mosaic_0001>
module attributes {stable_mosaic.version = 11 : i64} {
  func.func @_seed_layer_kernel(%arg0: i32, %arg1: memref<1x8x32xf32, #tpu.memory_space<vmem>>, %arg2: memref<1x8x32xf32, #tpu.memory_space<vmem>>, %arg3: memref<1x16x32xf32, #tpu.memory_space<vmem>>, %arg4: memref<32x64xf32, #tpu.memory_space<vmem>>, %arg5: memref<1x64xf32, #tpu.memory_space<vmem>>, %arg6: memref<32x32xf32, #tpu.memory_space<vmem>>, %arg7: memref<1x32xf32, #tpu.memory_space<vmem>>, %arg8: memref<32x32xf32, #tpu.memory_space<vmem>>, %arg9: memref<1x32xf32, #tpu.memory_space<vmem>>, %arg10: memref<1x32xf32, #tpu.memory_space<vmem>>, %arg11: memref<1x32xf32, #tpu.memory_space<vmem>>, %arg12: memref<32x32xf32, #tpu.memory_space<vmem>>, %arg13: memref<1x32xf32, #tpu.memory_space<vmem>>, %arg14: memref<32x64xf32, #tpu.memory_space<vmem>>, %arg15: memref<1x64xf32, #tpu.memory_space<vmem>>, %arg16: memref<32x32xf32, #tpu.memory_space<vmem>>, %arg17: memref<1x32xf32, #tpu.memory_space<vmem>>, %arg18: memref<1x32xf32, #tpu.memory_space<vmem>>, %arg19: memref<1x32xf32, #tpu.memory_space<vmem>>, %arg20: memref<32x64xf32, #tpu.memory_space<vmem>>, %arg21: memref<1x64xf32, #tpu.memory_space<vmem>>, %arg22: memref<64x32xf32, #tpu.memory_space<vmem>>, %arg23: memref<1x32xf32, #tpu.memory_space<vmem>>, %arg24: memref<1x32xf32, #tpu.memory_space<vmem>>, %arg25: memref<1x32xf32, #tpu.memory_space<vmem>>, %arg26: memref<32x128xf32, #tpu.memory_space<vmem>>, %arg27: memref<1x128xf32, #tpu.memory_space<vmem>>, %arg28: memref<1x8x32xf32, #tpu.memory_space<vmem>>, %arg29: memref<1x8x128xf32, #tpu.memory_space<vmem>>) attributes {dimension_semantics = [#tpu.dimension_semantics<parallel>], iteration_bounds = array<i64: 2>, scalar_prefetch = 0 : i64, scratch_operands = 0 : i64, tpu.core_type = #tpu.core_type<tc>, window_params = [{transform_indices = @transform_0, window_bounds = array<i64: 1, 8, 32>}, {transform_indices = @transform_1, window_bounds = array<i64: 1, 8, 32>}, {transform_indices = @transform_2, window_bounds = array<i64: 1, 16, 32>}, {pipeline_mode = #tpu.pipeline_mode<synchronous>, transform_indices = @transform_3, window_bounds = array<i64: 32, 64>}, {pipeline_mode = #tpu.pipeline_mode<synchronous>, transform_indices = @transform_4, window_bounds = array<i64: 1, 64>}, {pipeline_mode = #tpu.pipeline_mode<synchronous>, transform_indices = @transform_5, window_bounds = array<i64: 32, 32>}, {pipeline_mode = #tpu.pipeline_mode<synchronous>, transform_indices = @transform_6, window_bounds = array<i64: 1, 32>}, {pipeline_mode = #tpu.pipeline_mode<synchronous>, transform_indices = @transform_7, window_bounds = array<i64: 32, 32>}, {pipeline_mode = #tpu.pipeline_mode<synchronous>, transform_indices = @transform_8, window_bounds = array<i64: 1, 32>}, {pipeline_mode = #tpu.pipeline_mode<synchronous>, transform_indices = @transform_9, window_bounds = array<i64: 1, 32>}, {pipeline_mode = #tpu.pipeline_mode<synchronous>, transform_indices = @transform_10, window_bounds = array<i64: 1, 32>}, {pipeline_mode = #tpu.pipeline_mode<synchronous>, transform_indices = @transform_11, window_bounds = array<i64: 32, 32>}, {pipeline_mode = #tpu.pipeline_mode<synchronous>, transform_indices = @transform_12, window_bounds = array<i64: 1, 32>}, {pipeline_mode = #tpu.pipeline_mode<synchronous>, transform_indices = @transform_13, window_bounds = array<i64: 32, 64>}, {pipeline_mode = #tpu.pipeline_mode<synchronous>, transform_indices = @transform_14, window_bounds = array<i64: 1, 64>}, {pipeline_mode = #tpu.pipeline_mode<synchronous>, transform_indices = @transform_15, window_bounds = array<i64: 32, 32>}, {pipeline_mode = #tpu.pipeline_mode<synchronous>, transform_indices = @transform_16, window_bounds = array<i64: 1, 32>}, {pipeline_mode = #tpu.pipeline_mode<synchronous>, transform_indices = @transform_17, window_bounds = array<i64: 1, 32>}, {pipeline_mode = #tpu.pipeline_mode<synchronous>, transform_indices = @transform_18, window_bounds = array<i64: 1, 32>}, {pipeline_mode = #tpu.pipeline_mode<synchronous>, transform_indices = @transform_19, window_bounds = array<i64: 32, 64>}, {pipeline_mode = #tpu.pipeline_mode<synchronous>, transform_indices = @transform_20, window_bounds = array<i64: 1, 64>}, {pipeline_mode = #tpu.pipeline_mode<synchronous>, transform_indices = @transform_21, window_bounds = array<i64: 64, 32>}, {pipeline_mode = #tpu.pipeline_mode<synchronous>, transform_indices = @transform_22, window_bounds = array<i64: 1, 32>}, {pipeline_mode = #tpu.pipeline_mode<synchronous>, transform_indices = @transform_23, window_bounds = array<i64: 1, 32>}, {pipeline_mode = #tpu.pipeline_mode<synchronous>, transform_indices = @transform_24, window_bounds = array<i64: 1, 32>}, {pipeline_mode = #tpu.pipeline_mode<synchronous>, transform_indices = @transform_25, window_bounds = array<i64: 32, 128>}, {pipeline_mode = #tpu.pipeline_mode<synchronous>, transform_indices = @transform_26, window_bounds = array<i64: 1, 128>}, {transform_indices = @transform_27, window_bounds = array<i64: 1, 8, 32>}, {transform_indices = @transform_28, window_bounds = array<i64: 1, 8, 128>}]} {
    %c0 = arith.constant 0 : index
    %c0_0 = arith.constant 0 : index
    %c0_1 = arith.constant 0 : index
    %0 = vector.load %arg1[%c0, %c0_0, %c0_1] : memref<1x8x32xf32, #tpu.memory_space<vmem>>, vector<1x8x32xf32>
    %1 = vector.shape_cast %0 : vector<1x8x32xf32> to vector<8x32xf32>
    %c0_2 = arith.constant 0 : index
    %c0_3 = arith.constant 0 : index
    %c0_4 = arith.constant 0 : index
    %2 = vector.load %arg2[%c0_2, %c0_3, %c0_4] : memref<1x8x32xf32, #tpu.memory_space<vmem>>, vector<1x8x32xf32>
    %3 = vector.shape_cast %2 : vector<1x8x32xf32> to vector<8x32xf32>
    %c0_5 = arith.constant 0 : index
    %c0_6 = arith.constant 0 : index
    %c0_7 = arith.constant 0 : index
    %4 = vector.load %arg3[%c0_5, %c0_6, %c0_7] : memref<1x16x32xf32, #tpu.memory_space<vmem>>, vector<1x16x32xf32>
    %5 = vector.shape_cast %4 : vector<1x16x32xf32> to vector<16x32xf32>
    %6 = arith.addf %1, %3 : vector<8x32xf32>
    %c0_8 = arith.constant 0 : index
    %c0_9 = arith.constant 0 : index
    %7 = vector.load %arg4[%c0_8, %c0_9] : memref<32x64xf32, #tpu.memory_space<vmem>>, vector<32x64xf32>
    %cst = arith.constant dense<0.000000e+00> : vector<8x64xf32>
    %8 = tpu.matmul %6, %7, %cst {dimension_numbers = #tpu.dot_dimension_numbers<[1], [0], [0], [1], [0, 0, 1, 1], [], []>} : vector<8x32xf32>, vector<32x64xf32>, vector<8x64xf32> -> vector<8x64xf32>
    %c0_10 = arith.constant 0 : index
    %c0_11 = arith.constant 0 : index
    %9 = vector.load %arg5[%c0_10, %c0_11] : memref<1x64xf32, #tpu.memory_space<vmem>>, vector<1x64xf32>
    %10 = vector.broadcast %9 : vector<1x64xf32> to vector<8x64xf32>
    %11 = arith.addf %8, %10 : vector<8x64xf32>
    %12 = vector.extract_strided_slice %11 {offsets = [0, 0], sizes = [8, 32], strides = [1, 1]} : vector<8x64xf32> to vector<8x32xf32>
    %13 = vector.extract_strided_slice %11 {offsets = [0, 32], sizes = [8, 32], strides = [1, 1]} : vector<8x64xf32> to vector<8x32xf32>
    %c0_12 = arith.constant 0 : index
    %c0_13 = arith.constant 0 : index
    %14 = vector.load %arg6[%c0_12, %c0_13] : memref<32x32xf32, #tpu.memory_space<vmem>>, vector<32x32xf32>
    %cst_14 = arith.constant dense<0.000000e+00> : vector<8x32xf32>
    %15 = tpu.matmul %1, %14, %cst_14 {dimension_numbers = #tpu.dot_dimension_numbers<[1], [0], [0], [1], [0, 0, 1, 1], [], []>} : vector<8x32xf32>, vector<32x32xf32>, vector<8x32xf32> -> vector<8x32xf32>
    %c0_15 = arith.constant 0 : index
    %c0_16 = arith.constant 0 : index
    %16 = vector.load %arg7[%c0_15, %c0_16] : memref<1x32xf32, #tpu.memory_space<vmem>>, vector<1x32xf32>
    %17 = vector.broadcast %16 : vector<1x32xf32> to vector<8x32xf32>
    %18 = arith.addf %15, %17 : vector<8x32xf32>
    %c0_17 = arith.constant 0 : index
    %c0_18 = arith.constant 0 : index
    %19 = vector.load %arg8[%c0_17, %c0_18] : memref<32x32xf32, #tpu.memory_space<vmem>>, vector<32x32xf32>
    %20 = vector.extract_strided_slice %12 {offsets = [0, 0], sizes = [8, 8], strides = [1, 1]} : vector<8x32xf32> to vector<8x8xf32>
    %21 = vector.extract_strided_slice %13 {offsets = [0, 0], sizes = [8, 8], strides = [1, 1]} : vector<8x32xf32> to vector<8x8xf32>
    %22 = vector.extract_strided_slice %18 {offsets = [0, 0], sizes = [8, 8], strides = [1, 1]} : vector<8x32xf32> to vector<8x8xf32>
    %23 = tpu.transpose %21, [1, 0] : vector<8x8xf32> -> vector<8x8xf32>
    %cst_19 = arith.constant dense<0.000000e+00> : vector<8x8xf32>
    %24 = tpu.matmul %20, %23, %cst_19 {dimension_numbers = #tpu.dot_dimension_numbers<[1], [0], [0], [1], [0, 0, 1, 1], [], []>} : vector<8x8xf32>, vector<8x8xf32>, vector<8x8xf32> -> vector<8x8xf32>
    %cst_20 = arith.constant 0.353553385 : f32
    %25 = vector.broadcast %cst_20 : f32 to vector<8x8xf32>
    %26 = arith.mulf %24, %25 : vector<8x8xf32>
    %cst_21 = arith.constant dense<0xFF800000> : vector<8xf32>
    %27 = vector.multi_reduction <maximumf>, %26, %cst_21 [1] : vector<8x8xf32> to vector<8xf32>
    %28 = vector.shape_cast %27 : vector<8xf32> to vector<8x1xf32>
    %29 = vector.broadcast %28 : vector<8x1xf32> to vector<8x8xf32>
    %30 = arith.subf %26, %29 : vector<8x8xf32>
    %31 = math.exp %30 : vector<8x8xf32>
    %cst_22 = arith.constant dense<0.000000e+00> : vector<8xf32>
    %32 = vector.multi_reduction <add>, %31, %cst_22 [1] : vector<8x8xf32> to vector<8xf32>
    %33 = vector.shape_cast %32 : vector<8xf32> to vector<8x1xf32>
    %34 = tpu.reciprocal %33 {approx = true} : vector<8x1xf32> -> vector<8x1xf32>
    %35 = vector.broadcast %34 : vector<8x1xf32> to vector<8x8xf32>
    %36 = arith.mulf %31, %35 : vector<8x8xf32>
    %cst_23 = arith.constant dense<0.000000e+00> : vector<8x8xf32>
    %37 = tpu.matmul %36, %22, %cst_23 {dimension_numbers = #tpu.dot_dimension_numbers<[1], [0], [0], [1], [0, 0, 1, 1], [], []>} : vector<8x8xf32>, vector<8x8xf32>, vector<8x8xf32> -> vector<8x8xf32>
    %38 = vector.extract_strided_slice %19 {offsets = [0, 0], sizes = [8, 32], strides = [1, 1]} : vector<32x32xf32> to vector<8x32xf32>
    %cst_24 = arith.constant dense<0.000000e+00> : vector<8x32xf32>
    %39 = tpu.matmul %37, %38, %cst_24 {dimension_numbers = #tpu.dot_dimension_numbers<[1], [0], [0], [1], [0, 0, 1, 1], [], []>} : vector<8x8xf32>, vector<8x32xf32>, vector<8x32xf32> -> vector<8x32xf32>
    %40 = vector.extract_strided_slice %12 {offsets = [0, 8], sizes = [8, 8], strides = [1, 1]} : vector<8x32xf32> to vector<8x8xf32>
    %41 = vector.extract_strided_slice %13 {offsets = [0, 8], sizes = [8, 8], strides = [1, 1]} : vector<8x32xf32> to vector<8x8xf32>
    %42 = vector.extract_strided_slice %18 {offsets = [0, 8], sizes = [8, 8], strides = [1, 1]} : vector<8x32xf32> to vector<8x8xf32>
    %43 = tpu.transpose %41, [1, 0] : vector<8x8xf32> -> vector<8x8xf32>
    %cst_25 = arith.constant dense<0.000000e+00> : vector<8x8xf32>
    %44 = tpu.matmul %40, %43, %cst_25 {dimension_numbers = #tpu.dot_dimension_numbers<[1], [0], [0], [1], [0, 0, 1, 1], [], []>} : vector<8x8xf32>, vector<8x8xf32>, vector<8x8xf32> -> vector<8x8xf32>
    %cst_26 = arith.constant 0.353553385 : f32
    %45 = vector.broadcast %cst_26 : f32 to vector<8x8xf32>
    %46 = arith.mulf %44, %45 : vector<8x8xf32>
    %cst_27 = arith.constant dense<0xFF800000> : vector<8xf32>
    %47 = vector.multi_reduction <maximumf>, %46, %cst_27 [1] : vector<8x8xf32> to vector<8xf32>
    %48 = vector.shape_cast %47 : vector<8xf32> to vector<8x1xf32>
    %49 = vector.broadcast %48 : vector<8x1xf32> to vector<8x8xf32>
    %50 = arith.subf %46, %49 : vector<8x8xf32>
    %51 = math.exp %50 : vector<8x8xf32>
    %cst_28 = arith.constant dense<0.000000e+00> : vector<8xf32>
    %52 = vector.multi_reduction <add>, %51, %cst_28 [1] : vector<8x8xf32> to vector<8xf32>
    %53 = vector.shape_cast %52 : vector<8xf32> to vector<8x1xf32>
    %54 = tpu.reciprocal %53 {approx = true} : vector<8x1xf32> -> vector<8x1xf32>
    %55 = vector.broadcast %54 : vector<8x1xf32> to vector<8x8xf32>
    %56 = arith.mulf %51, %55 : vector<8x8xf32>
    %cst_29 = arith.constant dense<0.000000e+00> : vector<8x8xf32>
    %57 = tpu.matmul %56, %42, %cst_29 {dimension_numbers = #tpu.dot_dimension_numbers<[1], [0], [0], [1], [0, 0, 1, 1], [], []>} : vector<8x8xf32>, vector<8x8xf32>, vector<8x8xf32> -> vector<8x8xf32>
    %58 = vector.extract_strided_slice %19 {offsets = [8, 0], sizes = [8, 32], strides = [1, 1]} : vector<32x32xf32> to vector<8x32xf32>
    %cst_30 = arith.constant dense<0.000000e+00> : vector<8x32xf32>
    %59 = tpu.matmul %57, %58, %cst_30 {dimension_numbers = #tpu.dot_dimension_numbers<[1], [0], [0], [1], [0, 0, 1, 1], [], []>} : vector<8x8xf32>, vector<8x32xf32>, vector<8x32xf32> -> vector<8x32xf32>
    %60 = arith.addf %39, %59 : vector<8x32xf32>
    %61 = vector.extract_strided_slice %12 {offsets = [0, 16], sizes = [8, 8], strides = [1, 1]} : vector<8x32xf32> to vector<8x8xf32>
    %62 = vector.extract_strided_slice %13 {offsets = [0, 16], sizes = [8, 8], strides = [1, 1]} : vector<8x32xf32> to vector<8x8xf32>
    %63 = vector.extract_strided_slice %18 {offsets = [0, 16], sizes = [8, 8], strides = [1, 1]} : vector<8x32xf32> to vector<8x8xf32>
    %64 = tpu.transpose %62, [1, 0] : vector<8x8xf32> -> vector<8x8xf32>
    %cst_31 = arith.constant dense<0.000000e+00> : vector<8x8xf32>
    %65 = tpu.matmul %61, %64, %cst_31 {dimension_numbers = #tpu.dot_dimension_numbers<[1], [0], [0], [1], [0, 0, 1, 1], [], []>} : vector<8x8xf32>, vector<8x8xf32>, vector<8x8xf32> -> vector<8x8xf32>
    %cst_32 = arith.constant 0.353553385 : f32
    %66 = vector.broadcast %cst_32 : f32 to vector<8x8xf32>
    %67 = arith.mulf %65, %66 : vector<8x8xf32>
    %cst_33 = arith.constant dense<0xFF800000> : vector<8xf32>
    %68 = vector.multi_reduction <maximumf>, %67, %cst_33 [1] : vector<8x8xf32> to vector<8xf32>
    %69 = vector.shape_cast %68 : vector<8xf32> to vector<8x1xf32>
    %70 = vector.broadcast %69 : vector<8x1xf32> to vector<8x8xf32>
    %71 = arith.subf %67, %70 : vector<8x8xf32>
    %72 = math.exp %71 : vector<8x8xf32>
    %cst_34 = arith.constant dense<0.000000e+00> : vector<8xf32>
    %73 = vector.multi_reduction <add>, %72, %cst_34 [1] : vector<8x8xf32> to vector<8xf32>
    %74 = vector.shape_cast %73 : vector<8xf32> to vector<8x1xf32>
    %75 = tpu.reciprocal %74 {approx = true} : vector<8x1xf32> -> vector<8x1xf32>
    %76 = vector.broadcast %75 : vector<8x1xf32> to vector<8x8xf32>
    %77 = arith.mulf %72, %76 : vector<8x8xf32>
    %cst_35 = arith.constant dense<0.000000e+00> : vector<8x8xf32>
    %78 = tpu.matmul %77, %63, %cst_35 {dimension_numbers = #tpu.dot_dimension_numbers<[1], [0], [0], [1], [0, 0, 1, 1], [], []>} : vector<8x8xf32>, vector<8x8xf32>, vector<8x8xf32> -> vector<8x8xf32>
    %79 = vector.extract_strided_slice %19 {offsets = [16, 0], sizes = [8, 32], strides = [1, 1]} : vector<32x32xf32> to vector<8x32xf32>
    %cst_36 = arith.constant dense<0.000000e+00> : vector<8x32xf32>
    %80 = tpu.matmul %78, %79, %cst_36 {dimension_numbers = #tpu.dot_dimension_numbers<[1], [0], [0], [1], [0, 0, 1, 1], [], []>} : vector<8x8xf32>, vector<8x32xf32>, vector<8x32xf32> -> vector<8x32xf32>
    %81 = arith.addf %60, %80 : vector<8x32xf32>
    %82 = vector.extract_strided_slice %12 {offsets = [0, 24], sizes = [8, 8], strides = [1, 1]} : vector<8x32xf32> to vector<8x8xf32>
    %83 = vector.extract_strided_slice %13 {offsets = [0, 24], sizes = [8, 8], strides = [1, 1]} : vector<8x32xf32> to vector<8x8xf32>
    %84 = vector.extract_strided_slice %18 {offsets = [0, 24], sizes = [8, 8], strides = [1, 1]} : vector<8x32xf32> to vector<8x8xf32>
    %85 = tpu.transpose %83, [1, 0] : vector<8x8xf32> -> vector<8x8xf32>
    %cst_37 = arith.constant dense<0.000000e+00> : vector<8x8xf32>
    %86 = tpu.matmul %82, %85, %cst_37 {dimension_numbers = #tpu.dot_dimension_numbers<[1], [0], [0], [1], [0, 0, 1, 1], [], []>} : vector<8x8xf32>, vector<8x8xf32>, vector<8x8xf32> -> vector<8x8xf32>
    %cst_38 = arith.constant 0.353553385 : f32
    %87 = vector.broadcast %cst_38 : f32 to vector<8x8xf32>
    %88 = arith.mulf %86, %87 : vector<8x8xf32>
    %cst_39 = arith.constant dense<0xFF800000> : vector<8xf32>
    %89 = vector.multi_reduction <maximumf>, %88, %cst_39 [1] : vector<8x8xf32> to vector<8xf32>
    %90 = vector.shape_cast %89 : vector<8xf32> to vector<8x1xf32>
    %91 = vector.broadcast %90 : vector<8x1xf32> to vector<8x8xf32>
    %92 = arith.subf %88, %91 : vector<8x8xf32>
    %93 = math.exp %92 : vector<8x8xf32>
    %cst_40 = arith.constant dense<0.000000e+00> : vector<8xf32>
    %94 = vector.multi_reduction <add>, %93, %cst_40 [1] : vector<8x8xf32> to vector<8xf32>
    %95 = vector.shape_cast %94 : vector<8xf32> to vector<8x1xf32>
    %96 = tpu.reciprocal %95 {approx = true} : vector<8x1xf32> -> vector<8x1xf32>
    %97 = vector.broadcast %96 : vector<8x1xf32> to vector<8x8xf32>
    %98 = arith.mulf %93, %97 : vector<8x8xf32>
    %cst_41 = arith.constant dense<0.000000e+00> : vector<8x8xf32>
    %99 = tpu.matmul %98, %84, %cst_41 {dimension_numbers = #tpu.dot_dimension_numbers<[1], [0], [0], [1], [0, 0, 1, 1], [], []>} : vector<8x8xf32>, vector<8x8xf32>, vector<8x8xf32> -> vector<8x8xf32>
    %100 = vector.extract_strided_slice %19 {offsets = [24, 0], sizes = [8, 32], strides = [1, 1]} : vector<32x32xf32> to vector<8x32xf32>
    %cst_42 = arith.constant dense<0.000000e+00> : vector<8x32xf32>
    %101 = tpu.matmul %99, %100, %cst_42 {dimension_numbers = #tpu.dot_dimension_numbers<[1], [0], [0], [1], [0, 0, 1, 1], [], []>} : vector<8x8xf32>, vector<8x32xf32>, vector<8x32xf32> -> vector<8x32xf32>
    %102 = arith.addf %81, %101 : vector<8x32xf32>
    %c0_43 = arith.constant 0 : index
    %c0_44 = arith.constant 0 : index
    %103 = vector.load %arg9[%c0_43, %c0_44] : memref<1x32xf32, #tpu.memory_space<vmem>>, vector<1x32xf32>
    %104 = vector.broadcast %103 : vector<1x32xf32> to vector<8x32xf32>
    %105 = arith.addf %102, %104 : vector<8x32xf32>
    %106 = arith.addf %1, %105 : vector<8x32xf32>
    %cst_45 = arith.constant dense<0.000000e+00> : vector<8xf32>
    %107 = vector.multi_reduction <add>, %106, %cst_45 [1] : vector<8x32xf32> to vector<8xf32>
    %108 = vector.shape_cast %107 : vector<8xf32> to vector<8x1xf32>
    %cst_46 = arith.constant 3.200000e+01 : f32
    %109 = vector.broadcast %cst_46 : f32 to vector<8x1xf32>
    %110 = arith.divf %108, %109 : vector<8x1xf32>
    %111 = vector.broadcast %110 : vector<8x1xf32> to vector<8x32xf32>
    %112 = arith.subf %106, %111 : vector<8x32xf32>
    %113 = arith.mulf %112, %112 : vector<8x32xf32>
    %cst_47 = arith.constant dense<0.000000e+00> : vector<8xf32>
    %114 = vector.multi_reduction <add>, %113, %cst_47 [1] : vector<8x32xf32> to vector<8xf32>
    %115 = vector.shape_cast %114 : vector<8xf32> to vector<8x1xf32>
    %cst_48 = arith.constant 3.200000e+01 : f32
    %116 = vector.broadcast %cst_48 : f32 to vector<8x1xf32>
    %117 = arith.divf %115, %116 : vector<8x1xf32>
    %cst_49 = arith.constant 9.99999974E-6 : f32
    %118 = vector.broadcast %cst_49 : f32 to vector<8x1xf32>
    %119 = arith.addf %117, %118 : vector<8x1xf32>
    %120 = math.rsqrt %119 : vector<8x1xf32>
    %121 = vector.broadcast %120 : vector<8x1xf32> to vector<8x32xf32>
    %122 = arith.mulf %112, %121 : vector<8x32xf32>
    %c0_50 = arith.constant 0 : index
    %c0_51 = arith.constant 0 : index
    %123 = vector.load %arg10[%c0_50, %c0_51] : memref<1x32xf32, #tpu.memory_space<vmem>>, vector<1x32xf32>
    %124 = vector.broadcast %123 : vector<1x32xf32> to vector<8x32xf32>
    %125 = arith.mulf %122, %124 : vector<8x32xf32>
    %c0_52 = arith.constant 0 : index
    %c0_53 = arith.constant 0 : index
    %126 = vector.load %arg11[%c0_52, %c0_53] : memref<1x32xf32, #tpu.memory_space<vmem>>, vector<1x32xf32>
    %127 = vector.broadcast %126 : vector<1x32xf32> to vector<8x32xf32>
    %128 = arith.addf %125, %127 : vector<8x32xf32>
    %129 = arith.addf %128, %3 : vector<8x32xf32>
    %c0_54 = arith.constant 0 : index
    %c0_55 = arith.constant 0 : index
    %130 = vector.load %arg12[%c0_54, %c0_55] : memref<32x32xf32, #tpu.memory_space<vmem>>, vector<32x32xf32>
    %cst_56 = arith.constant dense<0.000000e+00> : vector<8x32xf32>
    %131 = tpu.matmul %129, %130, %cst_56 {dimension_numbers = #tpu.dot_dimension_numbers<[1], [0], [0], [1], [0, 0, 1, 1], [], []>} : vector<8x32xf32>, vector<32x32xf32>, vector<8x32xf32> -> vector<8x32xf32>
    %c0_57 = arith.constant 0 : index
    %c0_58 = arith.constant 0 : index
    %132 = vector.load %arg13[%c0_57, %c0_58] : memref<1x32xf32, #tpu.memory_space<vmem>>, vector<1x32xf32>
    %133 = vector.broadcast %132 : vector<1x32xf32> to vector<8x32xf32>
    %134 = arith.addf %131, %133 : vector<8x32xf32>
    %c0_59 = arith.constant 0 : index
    %c0_60 = arith.constant 0 : index
    %135 = vector.load %arg14[%c0_59, %c0_60] : memref<32x64xf32, #tpu.memory_space<vmem>>, vector<32x64xf32>
    %cst_61 = arith.constant dense<0.000000e+00> : vector<16x64xf32>
    %136 = tpu.matmul %5, %135, %cst_61 {dimension_numbers = #tpu.dot_dimension_numbers<[1], [0], [0], [1], [0, 0, 1, 1], [], []>} : vector<16x32xf32>, vector<32x64xf32>, vector<16x64xf32> -> vector<16x64xf32>
    %c0_62 = arith.constant 0 : index
    %c0_63 = arith.constant 0 : index
    %137 = vector.load %arg15[%c0_62, %c0_63] : memref<1x64xf32, #tpu.memory_space<vmem>>, vector<1x64xf32>
    %138 = vector.broadcast %137 : vector<1x64xf32> to vector<16x64xf32>
    %139 = arith.addf %136, %138 : vector<16x64xf32>
    %140 = vector.extract_strided_slice %139 {offsets = [0, 0], sizes = [16, 32], strides = [1, 1]} : vector<16x64xf32> to vector<16x32xf32>
    %141 = vector.extract_strided_slice %139 {offsets = [0, 32], sizes = [16, 32], strides = [1, 1]} : vector<16x64xf32> to vector<16x32xf32>
    %c0_64 = arith.constant 0 : index
    %c0_65 = arith.constant 0 : index
    %142 = vector.load %arg16[%c0_64, %c0_65] : memref<32x32xf32, #tpu.memory_space<vmem>>, vector<32x32xf32>
    %143 = vector.extract_strided_slice %134 {offsets = [0, 0], sizes = [8, 8], strides = [1, 1]} : vector<8x32xf32> to vector<8x8xf32>
    %144 = vector.extract_strided_slice %140 {offsets = [0, 0], sizes = [16, 8], strides = [1, 1]} : vector<16x32xf32> to vector<16x8xf32>
    %145 = vector.extract_strided_slice %141 {offsets = [0, 0], sizes = [16, 8], strides = [1, 1]} : vector<16x32xf32> to vector<16x8xf32>
    %146 = tpu.transpose %144, [1, 0] : vector<16x8xf32> -> vector<8x16xf32>
    %cst_66 = arith.constant dense<0.000000e+00> : vector<8x16xf32>
    %147 = tpu.matmul %143, %146, %cst_66 {dimension_numbers = #tpu.dot_dimension_numbers<[1], [0], [0], [1], [0, 0, 1, 1], [], []>} : vector<8x8xf32>, vector<8x16xf32>, vector<8x16xf32> -> vector<8x16xf32>
    %cst_67 = arith.constant 0.353553385 : f32
    %148 = vector.broadcast %cst_67 : f32 to vector<8x16xf32>
    %149 = arith.mulf %147, %148 : vector<8x16xf32>
    %cst_68 = arith.constant dense<0xFF800000> : vector<8xf32>
    %150 = vector.multi_reduction <maximumf>, %149, %cst_68 [1] : vector<8x16xf32> to vector<8xf32>
    %151 = vector.shape_cast %150 : vector<8xf32> to vector<8x1xf32>
    %152 = vector.broadcast %151 : vector<8x1xf32> to vector<8x16xf32>
    %153 = arith.subf %149, %152 : vector<8x16xf32>
    %154 = math.exp %153 : vector<8x16xf32>
    %cst_69 = arith.constant dense<0.000000e+00> : vector<8xf32>
    %155 = vector.multi_reduction <add>, %154, %cst_69 [1] : vector<8x16xf32> to vector<8xf32>
    %156 = vector.shape_cast %155 : vector<8xf32> to vector<8x1xf32>
    %157 = tpu.reciprocal %156 {approx = true} : vector<8x1xf32> -> vector<8x1xf32>
    %158 = vector.broadcast %157 : vector<8x1xf32> to vector<8x16xf32>
    %159 = arith.mulf %154, %158 : vector<8x16xf32>
    %cst_70 = arith.constant dense<0.000000e+00> : vector<8x8xf32>
    %160 = tpu.matmul %159, %145, %cst_70 {dimension_numbers = #tpu.dot_dimension_numbers<[1], [0], [0], [1], [0, 0, 1, 1], [], []>} : vector<8x16xf32>, vector<16x8xf32>, vector<8x8xf32> -> vector<8x8xf32>
    %161 = vector.extract_strided_slice %142 {offsets = [0, 0], sizes = [8, 32], strides = [1, 1]} : vector<32x32xf32> to vector<8x32xf32>
    %cst_71 = arith.constant dense<0.000000e+00> : vector<8x32xf32>
    %162 = tpu.matmul %160, %161, %cst_71 {dimension_numbers = #tpu.dot_dimension_numbers<[1], [0], [0], [1], [0, 0, 1, 1], [], []>} : vector<8x8xf32>, vector<8x32xf32>, vector<8x32xf32> -> vector<8x32xf32>
    %163 = vector.extract_strided_slice %134 {offsets = [0, 8], sizes = [8, 8], strides = [1, 1]} : vector<8x32xf32> to vector<8x8xf32>
    %164 = vector.extract_strided_slice %140 {offsets = [0, 8], sizes = [16, 8], strides = [1, 1]} : vector<16x32xf32> to vector<16x8xf32>
    %165 = vector.extract_strided_slice %141 {offsets = [0, 8], sizes = [16, 8], strides = [1, 1]} : vector<16x32xf32> to vector<16x8xf32>
    %166 = tpu.transpose %164, [1, 0] : vector<16x8xf32> -> vector<8x16xf32>
    %cst_72 = arith.constant dense<0.000000e+00> : vector<8x16xf32>
    %167 = tpu.matmul %163, %166, %cst_72 {dimension_numbers = #tpu.dot_dimension_numbers<[1], [0], [0], [1], [0, 0, 1, 1], [], []>} : vector<8x8xf32>, vector<8x16xf32>, vector<8x16xf32> -> vector<8x16xf32>
    %cst_73 = arith.constant 0.353553385 : f32
    %168 = vector.broadcast %cst_73 : f32 to vector<8x16xf32>
    %169 = arith.mulf %167, %168 : vector<8x16xf32>
    %cst_74 = arith.constant dense<0xFF800000> : vector<8xf32>
    %170 = vector.multi_reduction <maximumf>, %169, %cst_74 [1] : vector<8x16xf32> to vector<8xf32>
    %171 = vector.shape_cast %170 : vector<8xf32> to vector<8x1xf32>
    %172 = vector.broadcast %171 : vector<8x1xf32> to vector<8x16xf32>
    %173 = arith.subf %169, %172 : vector<8x16xf32>
    %174 = math.exp %173 : vector<8x16xf32>
    %cst_75 = arith.constant dense<0.000000e+00> : vector<8xf32>
    %175 = vector.multi_reduction <add>, %174, %cst_75 [1] : vector<8x16xf32> to vector<8xf32>
    %176 = vector.shape_cast %175 : vector<8xf32> to vector<8x1xf32>
    %177 = tpu.reciprocal %176 {approx = true} : vector<8x1xf32> -> vector<8x1xf32>
    %178 = vector.broadcast %177 : vector<8x1xf32> to vector<8x16xf32>
    %179 = arith.mulf %174, %178 : vector<8x16xf32>
    %cst_76 = arith.constant dense<0.000000e+00> : vector<8x8xf32>
    %180 = tpu.matmul %179, %165, %cst_76 {dimension_numbers = #tpu.dot_dimension_numbers<[1], [0], [0], [1], [0, 0, 1, 1], [], []>} : vector<8x16xf32>, vector<16x8xf32>, vector<8x8xf32> -> vector<8x8xf32>
    %181 = vector.extract_strided_slice %142 {offsets = [8, 0], sizes = [8, 32], strides = [1, 1]} : vector<32x32xf32> to vector<8x32xf32>
    %cst_77 = arith.constant dense<0.000000e+00> : vector<8x32xf32>
    %182 = tpu.matmul %180, %181, %cst_77 {dimension_numbers = #tpu.dot_dimension_numbers<[1], [0], [0], [1], [0, 0, 1, 1], [], []>} : vector<8x8xf32>, vector<8x32xf32>, vector<8x32xf32> -> vector<8x32xf32>
    %183 = arith.addf %162, %182 : vector<8x32xf32>
    %184 = vector.extract_strided_slice %134 {offsets = [0, 16], sizes = [8, 8], strides = [1, 1]} : vector<8x32xf32> to vector<8x8xf32>
    %185 = vector.extract_strided_slice %140 {offsets = [0, 16], sizes = [16, 8], strides = [1, 1]} : vector<16x32xf32> to vector<16x8xf32>
    %186 = vector.extract_strided_slice %141 {offsets = [0, 16], sizes = [16, 8], strides = [1, 1]} : vector<16x32xf32> to vector<16x8xf32>
    %187 = tpu.transpose %185, [1, 0] : vector<16x8xf32> -> vector<8x16xf32>
    %cst_78 = arith.constant dense<0.000000e+00> : vector<8x16xf32>
    %188 = tpu.matmul %184, %187, %cst_78 {dimension_numbers = #tpu.dot_dimension_numbers<[1], [0], [0], [1], [0, 0, 1, 1], [], []>} : vector<8x8xf32>, vector<8x16xf32>, vector<8x16xf32> -> vector<8x16xf32>
    %cst_79 = arith.constant 0.353553385 : f32
    %189 = vector.broadcast %cst_79 : f32 to vector<8x16xf32>
    %190 = arith.mulf %188, %189 : vector<8x16xf32>
    %cst_80 = arith.constant dense<0xFF800000> : vector<8xf32>
    %191 = vector.multi_reduction <maximumf>, %190, %cst_80 [1] : vector<8x16xf32> to vector<8xf32>
    %192 = vector.shape_cast %191 : vector<8xf32> to vector<8x1xf32>
    %193 = vector.broadcast %192 : vector<8x1xf32> to vector<8x16xf32>
    %194 = arith.subf %190, %193 : vector<8x16xf32>
    %195 = math.exp %194 : vector<8x16xf32>
    %cst_81 = arith.constant dense<0.000000e+00> : vector<8xf32>
    %196 = vector.multi_reduction <add>, %195, %cst_81 [1] : vector<8x16xf32> to vector<8xf32>
    %197 = vector.shape_cast %196 : vector<8xf32> to vector<8x1xf32>
    %198 = tpu.reciprocal %197 {approx = true} : vector<8x1xf32> -> vector<8x1xf32>
    %199 = vector.broadcast %198 : vector<8x1xf32> to vector<8x16xf32>
    %200 = arith.mulf %195, %199 : vector<8x16xf32>
    %cst_82 = arith.constant dense<0.000000e+00> : vector<8x8xf32>
    %201 = tpu.matmul %200, %186, %cst_82 {dimension_numbers = #tpu.dot_dimension_numbers<[1], [0], [0], [1], [0, 0, 1, 1], [], []>} : vector<8x16xf32>, vector<16x8xf32>, vector<8x8xf32> -> vector<8x8xf32>
    %202 = vector.extract_strided_slice %142 {offsets = [16, 0], sizes = [8, 32], strides = [1, 1]} : vector<32x32xf32> to vector<8x32xf32>
    %cst_83 = arith.constant dense<0.000000e+00> : vector<8x32xf32>
    %203 = tpu.matmul %201, %202, %cst_83 {dimension_numbers = #tpu.dot_dimension_numbers<[1], [0], [0], [1], [0, 0, 1, 1], [], []>} : vector<8x8xf32>, vector<8x32xf32>, vector<8x32xf32> -> vector<8x32xf32>
    %204 = arith.addf %183, %203 : vector<8x32xf32>
    %205 = vector.extract_strided_slice %134 {offsets = [0, 24], sizes = [8, 8], strides = [1, 1]} : vector<8x32xf32> to vector<8x8xf32>
    %206 = vector.extract_strided_slice %140 {offsets = [0, 24], sizes = [16, 8], strides = [1, 1]} : vector<16x32xf32> to vector<16x8xf32>
    %207 = vector.extract_strided_slice %141 {offsets = [0, 24], sizes = [16, 8], strides = [1, 1]} : vector<16x32xf32> to vector<16x8xf32>
    %208 = tpu.transpose %206, [1, 0] : vector<16x8xf32> -> vector<8x16xf32>
    %cst_84 = arith.constant dense<0.000000e+00> : vector<8x16xf32>
    %209 = tpu.matmul %205, %208, %cst_84 {dimension_numbers = #tpu.dot_dimension_numbers<[1], [0], [0], [1], [0, 0, 1, 1], [], []>} : vector<8x8xf32>, vector<8x16xf32>, vector<8x16xf32> -> vector<8x16xf32>
    %cst_85 = arith.constant 0.353553385 : f32
    %210 = vector.broadcast %cst_85 : f32 to vector<8x16xf32>
    %211 = arith.mulf %209, %210 : vector<8x16xf32>
    %cst_86 = arith.constant dense<0xFF800000> : vector<8xf32>
    %212 = vector.multi_reduction <maximumf>, %211, %cst_86 [1] : vector<8x16xf32> to vector<8xf32>
    %213 = vector.shape_cast %212 : vector<8xf32> to vector<8x1xf32>
    %214 = vector.broadcast %213 : vector<8x1xf32> to vector<8x16xf32>
    %215 = arith.subf %211, %214 : vector<8x16xf32>
    %216 = math.exp %215 : vector<8x16xf32>
    %cst_87 = arith.constant dense<0.000000e+00> : vector<8xf32>
    %217 = vector.multi_reduction <add>, %216, %cst_87 [1] : vector<8x16xf32> to vector<8xf32>
    %218 = vector.shape_cast %217 : vector<8xf32> to vector<8x1xf32>
    %219 = tpu.reciprocal %218 {approx = true} : vector<8x1xf32> -> vector<8x1xf32>
    %220 = vector.broadcast %219 : vector<8x1xf32> to vector<8x16xf32>
    %221 = arith.mulf %216, %220 : vector<8x16xf32>
    %cst_88 = arith.constant dense<0.000000e+00> : vector<8x8xf32>
    %222 = tpu.matmul %221, %207, %cst_88 {dimension_numbers = #tpu.dot_dimension_numbers<[1], [0], [0], [1], [0, 0, 1, 1], [], []>} : vector<8x16xf32>, vector<16x8xf32>, vector<8x8xf32> -> vector<8x8xf32>
    %223 = vector.extract_strided_slice %142 {offsets = [24, 0], sizes = [8, 32], strides = [1, 1]} : vector<32x32xf32> to vector<8x32xf32>
    %cst_89 = arith.constant dense<0.000000e+00> : vector<8x32xf32>
    %224 = tpu.matmul %222, %223, %cst_89 {dimension_numbers = #tpu.dot_dimension_numbers<[1], [0], [0], [1], [0, 0, 1, 1], [], []>} : vector<8x8xf32>, vector<8x32xf32>, vector<8x32xf32> -> vector<8x32xf32>
    %225 = arith.addf %204, %224 : vector<8x32xf32>
    %c0_90 = arith.constant 0 : index
    %c0_91 = arith.constant 0 : index
    %226 = vector.load %arg17[%c0_90, %c0_91] : memref<1x32xf32, #tpu.memory_space<vmem>>, vector<1x32xf32>
    %227 = vector.broadcast %226 : vector<1x32xf32> to vector<8x32xf32>
    %228 = arith.addf %225, %227 : vector<8x32xf32>
    %229 = arith.addf %128, %228 : vector<8x32xf32>
    %cst_92 = arith.constant dense<0.000000e+00> : vector<8xf32>
    %230 = vector.multi_reduction <add>, %229, %cst_92 [1] : vector<8x32xf32> to vector<8xf32>
    %231 = vector.shape_cast %230 : vector<8xf32> to vector<8x1xf32>
    %cst_93 = arith.constant 3.200000e+01 : f32
    %232 = vector.broadcast %cst_93 : f32 to vector<8x1xf32>
    %233 = arith.divf %231, %232 : vector<8x1xf32>
    %234 = vector.broadcast %233 : vector<8x1xf32> to vector<8x32xf32>
    %235 = arith.subf %229, %234 : vector<8x32xf32>
    %236 = arith.mulf %235, %235 : vector<8x32xf32>
    %cst_94 = arith.constant dense<0.000000e+00> : vector<8xf32>
    %237 = vector.multi_reduction <add>, %236, %cst_94 [1] : vector<8x32xf32> to vector<8xf32>
    %238 = vector.shape_cast %237 : vector<8xf32> to vector<8x1xf32>
    %cst_95 = arith.constant 3.200000e+01 : f32
    %239 = vector.broadcast %cst_95 : f32 to vector<8x1xf32>
    %240 = arith.divf %238, %239 : vector<8x1xf32>
    %cst_96 = arith.constant 9.99999974E-6 : f32
    %241 = vector.broadcast %cst_96 : f32 to vector<8x1xf32>
    %242 = arith.addf %240, %241 : vector<8x1xf32>
    %243 = math.rsqrt %242 : vector<8x1xf32>
    %244 = vector.broadcast %243 : vector<8x1xf32> to vector<8x32xf32>
    %245 = arith.mulf %235, %244 : vector<8x32xf32>
    %c0_97 = arith.constant 0 : index
    %c0_98 = arith.constant 0 : index
    %246 = vector.load %arg18[%c0_97, %c0_98] : memref<1x32xf32, #tpu.memory_space<vmem>>, vector<1x32xf32>
    %247 = vector.broadcast %246 : vector<1x32xf32> to vector<8x32xf32>
    %248 = arith.mulf %245, %247 : vector<8x32xf32>
    %c0_99 = arith.constant 0 : index
    %c0_100 = arith.constant 0 : index
    %249 = vector.load %arg19[%c0_99, %c0_100] : memref<1x32xf32, #tpu.memory_space<vmem>>, vector<1x32xf32>
    %250 = vector.broadcast %249 : vector<1x32xf32> to vector<8x32xf32>
    %251 = arith.addf %248, %250 : vector<8x32xf32>
    %c0_101 = arith.constant 0 : index
    %c0_102 = arith.constant 0 : index
    %252 = vector.load %arg20[%c0_101, %c0_102] : memref<32x64xf32, #tpu.memory_space<vmem>>, vector<32x64xf32>
    %cst_103 = arith.constant dense<0.000000e+00> : vector<8x64xf32>
    %253 = tpu.matmul %251, %252, %cst_103 {dimension_numbers = #tpu.dot_dimension_numbers<[1], [0], [0], [1], [0, 0, 1, 1], [], []>} : vector<8x32xf32>, vector<32x64xf32>, vector<8x64xf32> -> vector<8x64xf32>
    %c0_104 = arith.constant 0 : index
    %c0_105 = arith.constant 0 : index
    %254 = vector.load %arg21[%c0_104, %c0_105] : memref<1x64xf32, #tpu.memory_space<vmem>>, vector<1x64xf32>
    %255 = vector.broadcast %254 : vector<1x64xf32> to vector<8x64xf32>
    %256 = arith.addf %253, %255 : vector<8x64xf32>
    %cst_106 = arith.constant 0.000000e+00 : f32
    %257 = vector.broadcast %cst_106 : f32 to vector<8x64xf32>
    %258 = arith.maximumf %256, %257 : vector<8x64xf32>
    %c0_107 = arith.constant 0 : index
    %c0_108 = arith.constant 0 : index
    %259 = vector.load %arg22[%c0_107, %c0_108] : memref<64x32xf32, #tpu.memory_space<vmem>>, vector<64x32xf32>
    %cst_109 = arith.constant dense<0.000000e+00> : vector<8x32xf32>
    %260 = tpu.matmul %258, %259, %cst_109 {dimension_numbers = #tpu.dot_dimension_numbers<[1], [0], [0], [1], [0, 0, 1, 1], [], []>} : vector<8x64xf32>, vector<64x32xf32>, vector<8x32xf32> -> vector<8x32xf32>
    %c0_110 = arith.constant 0 : index
    %c0_111 = arith.constant 0 : index
    %261 = vector.load %arg23[%c0_110, %c0_111] : memref<1x32xf32, #tpu.memory_space<vmem>>, vector<1x32xf32>
    %262 = vector.broadcast %261 : vector<1x32xf32> to vector<8x32xf32>
    %263 = arith.addf %260, %262 : vector<8x32xf32>
    %264 = arith.addf %251, %263 : vector<8x32xf32>
    %cst_112 = arith.constant dense<0.000000e+00> : vector<8xf32>
    %265 = vector.multi_reduction <add>, %264, %cst_112 [1] : vector<8x32xf32> to vector<8xf32>
    %266 = vector.shape_cast %265 : vector<8xf32> to vector<8x1xf32>
    %cst_113 = arith.constant 3.200000e+01 : f32
    %267 = vector.broadcast %cst_113 : f32 to vector<8x1xf32>
    %268 = arith.divf %266, %267 : vector<8x1xf32>
    %269 = vector.broadcast %268 : vector<8x1xf32> to vector<8x32xf32>
    %270 = arith.subf %264, %269 : vector<8x32xf32>
    %271 = arith.mulf %270, %270 : vector<8x32xf32>
    %cst_114 = arith.constant dense<0.000000e+00> : vector<8xf32>
    %272 = vector.multi_reduction <add>, %271, %cst_114 [1] : vector<8x32xf32> to vector<8xf32>
    %273 = vector.shape_cast %272 : vector<8xf32> to vector<8x1xf32>
    %cst_115 = arith.constant 3.200000e+01 : f32
    %274 = vector.broadcast %cst_115 : f32 to vector<8x1xf32>
    %275 = arith.divf %273, %274 : vector<8x1xf32>
    %cst_116 = arith.constant 9.99999974E-6 : f32
    %276 = vector.broadcast %cst_116 : f32 to vector<8x1xf32>
    %277 = arith.addf %275, %276 : vector<8x1xf32>
    %278 = math.rsqrt %277 : vector<8x1xf32>
    %279 = vector.broadcast %278 : vector<8x1xf32> to vector<8x32xf32>
    %280 = arith.mulf %270, %279 : vector<8x32xf32>
    %c0_117 = arith.constant 0 : index
    %c0_118 = arith.constant 0 : index
    %281 = vector.load %arg24[%c0_117, %c0_118] : memref<1x32xf32, #tpu.memory_space<vmem>>, vector<1x32xf32>
    %282 = vector.broadcast %281 : vector<1x32xf32> to vector<8x32xf32>
    %283 = arith.mulf %280, %282 : vector<8x32xf32>
    %c0_119 = arith.constant 0 : index
    %c0_120 = arith.constant 0 : index
    %284 = vector.load %arg25[%c0_119, %c0_120] : memref<1x32xf32, #tpu.memory_space<vmem>>, vector<1x32xf32>
    %285 = vector.broadcast %284 : vector<1x32xf32> to vector<8x32xf32>
    %286 = arith.addf %283, %285 : vector<8x32xf32>
    %c0_121 = arith.constant 0 : index
    %c0_122 = arith.constant 0 : index
    %c0_123 = arith.constant 0 : index
    %287 = vector.load %arg28[%c0_121, %c0_122, %c0_123] : memref<1x8x32xf32, #tpu.memory_space<vmem>>, vector<1x8x32xf32>
    %288 = vector.shape_cast %287 : vector<1x8x32xf32> to vector<8x32xf32>
    %289 = vector.shape_cast %286 : vector<8x32xf32> to vector<1x8x32xf32>
    tpu.vector_store %arg28[%c0_121, %c0_122, %c0_123], %289 {strides = array<i32>} : memref<1x8x32xf32, #tpu.memory_space<vmem>>, vector<1x8x32xf32>,
    %c0_124 = arith.constant 0 : index
    %c0_125 = arith.constant 0 : index
    %290 = vector.load %arg26[%c0_124, %c0_125] : memref<32x128xf32, #tpu.memory_space<vmem>>, vector<32x128xf32>
    %cst_126 = arith.constant dense<0.000000e+00> : vector<8x128xf32>
    %291 = tpu.matmul %286, %290, %cst_126 {dimension_numbers = #tpu.dot_dimension_numbers<[1], [0], [0], [1], [0, 0, 1, 1], [], []>} : vector<8x32xf32>, vector<32x128xf32>, vector<8x128xf32> -> vector<8x128xf32>
    %c0_127 = arith.constant 0 : index
    %c0_128 = arith.constant 0 : index
    %292 = vector.load %arg27[%c0_127, %c0_128] : memref<1x128xf32, #tpu.memory_space<vmem>>, vector<1x128xf32>
    %293 = vector.broadcast %292 : vector<1x128xf32> to vector<8x128xf32>
    %294 = arith.addf %291, %293 : vector<8x128xf32>
    %c0_129 = arith.constant 0 : index
    %c0_130 = arith.constant 0 : index
    %c0_131 = arith.constant 0 : index
    %295 = vector.load %arg29[%c0_129, %c0_130, %c0_131] : memref<1x8x128xf32, #tpu.memory_space<vmem>>, vector<1x8x128xf32>
    %296 = vector.shape_cast %295 : vector<1x8x128xf32> to vector<8x128xf32>
    %297 = vector.shape_cast %294 : vector<8x128xf32> to vector<1x8x128xf32>
    tpu.vector_store %arg29[%c0_129, %c0_130, %c0_131], %297 {strides = array<i32>} : memref<1x8x128xf32, #tpu.memory_space<vmem>>, vector<1x8x128xf32>,
    return
  }
  func.func @transform_0(%arg0: i32) -> (i32, i32, i32) {
    %c0_i32 = arith.constant 0 : i32
    %c0_i32_0 = arith.constant 0 : i32
    %c0_i32_1 = arith.constant 0 : i32
    return %arg0, %c0_i32, %c0_i32_0 : i32, i32, i32
  }
  func.func @transform_1(%arg0: i32) -> (i32, i32, i32) {
    %c0_i32 = arith.constant 0 : i32
    %c0_i32_0 = arith.constant 0 : i32
    %c0_i32_1 = arith.constant 0 : i32
    return %arg0, %c0_i32, %c0_i32_0 : i32, i32, i32
  }
  func.func @transform_2(%arg0: i32) -> (i32, i32, i32) {
    %c0_i32 = arith.constant 0 : i32
    %c0_i32_0 = arith.constant 0 : i32
    %c0_i32_1 = arith.constant 0 : i32
    return %arg0, %c0_i32, %c0_i32_0 : i32, i32, i32
  }
  func.func @transform_3(%arg0: i32) -> (i32, i32) {
    %c0_i32 = arith.constant 0 : i32
    %c0_i32_0 = arith.constant 0 : i32
    %c0_i32_1 = arith.constant 0 : i32
    return %c0_i32, %c0_i32_0 : i32, i32
  }
  func.func @transform_4(%arg0: i32) -> (i32, i32) {
    %c0_i32 = arith.constant 0 : i32
    %c0_i32_0 = arith.constant 0 : i32
    %c0_i32_1 = arith.constant 0 : i32
    return %c0_i32, %c0_i32_0 : i32, i32
  }
  func.func @transform_5(%arg0: i32) -> (i32, i32) {
    %c0_i32 = arith.constant 0 : i32
    %c0_i32_0 = arith.constant 0 : i32
    %c0_i32_1 = arith.constant 0 : i32
    return %c0_i32, %c0_i32_0 : i32, i32
  }
  func.func @transform_6(%arg0: i32) -> (i32, i32) {
    %c0_i32 = arith.constant 0 : i32
    %c0_i32_0 = arith.constant 0 : i32
    %c0_i32_1 = arith.constant 0 : i32
    return %c0_i32, %c0_i32_0 : i32, i32
  }
  func.func @transform_7(%arg0: i32) -> (i32, i32) {
    %c0_i32 = arith.constant 0 : i32
    %c0_i32_0 = arith.constant 0 : i32
    %c0_i32_1 = arith.constant 0 : i32
    return %c0_i32, %c0_i32_0 : i32, i32
  }
  func.func @transform_8(%arg0: i32) -> (i32, i32) {
    %c0_i32 = arith.constant 0 : i32
    %c0_i32_0 = arith.constant 0 : i32
    %c0_i32_1 = arith.constant 0 : i32
    return %c0_i32, %c0_i32_0 : i32, i32
  }
  func.func @transform_9(%arg0: i32) -> (i32, i32) {
    %c0_i32 = arith.constant 0 : i32
    %c0_i32_0 = arith.constant 0 : i32
    %c0_i32_1 = arith.constant 0 : i32
    return %c0_i32, %c0_i32_0 : i32, i32
  }
  func.func @transform_10(%arg0: i32) -> (i32, i32) {
    %c0_i32 = arith.constant 0 : i32
    %c0_i32_0 = arith.constant 0 : i32
    %c0_i32_1 = arith.constant 0 : i32
    return %c0_i32, %c0_i32_0 : i32, i32
  }
  func.func @transform_11(%arg0: i32) -> (i32, i32) {
    %c0_i32 = arith.constant 0 : i32
    %c0_i32_0 = arith.constant 0 : i32
    %c0_i32_1 = arith.constant 0 : i32
    return %c0_i32, %c0_i32_0 : i32, i32
  }
  func.func @transform_12(%arg0: i32) -> (i32, i32) {
    %c0_i32 = arith.constant 0 : i32
    %c0_i32_0 = arith.constant 0 : i32
    %c0_i32_1 = arith.constant 0 : i32
    return %c0_i32, %c0_i32_0 : i32, i32
  }
  func.func @transform_13(%arg0: i32) -> (i32, i32) {
    %c0_i32 = arith.constant 0 : i32
    %c0_i32_0 = arith.constant 0 : i32
    %c0_i32_1 = arith.constant 0 : i32
    return %c0_i32, %c0_i32_0 : i32, i32
  }
  func.func @transform_14(%arg0: i32) -> (i32, i32) {
    %c0_i32 = arith.constant 0 : i32
    %c0_i32_0 = arith.constant 0 : i32
    %c0_i32_1 = arith.constant 0 : i32
    return %c0_i32, %c0_i32_0 : i32, i32
  }
  func.func @transform_15(%arg0: i32) -> (i32, i32) {
    %c0_i32 = arith.constant 0 : i32
    %c0_i32_0 = arith.constant 0 : i32
    %c0_i32_1 = arith.constant 0 : i32
    return %c0_i32, %c0_i32_0 : i32, i32
  }
  func.func @transform_16(%arg0: i32) -> (i32, i32) {
    %c0_i32 = arith.constant 0 : i32
    %c0_i32_0 = arith.constant 0 : i32
    %c0_i32_1 = arith.constant 0 : i32
    return %c0_i32, %c0_i32_0 : i32, i32
  }
  func.func @transform_17(%arg0: i32) -> (i32, i32) {
    %c0_i32 = arith.constant 0 : i32
    %c0_i32_0 = arith.constant 0 : i32
    %c0_i32_1 = arith.constant 0 : i32
    return %c0_i32, %c0_i32_0 : i32, i32
  }
  func.func @transform_18(%arg0: i32) -> (i32, i32) {
    %c0_i32 = arith.constant 0 : i32
    %c0_i32_0 = arith.constant 0 : i32
    %c0_i32_1 = arith.constant 0 : i32
    return %c0_i32, %c0_i32_0 : i32, i32
  }
  func.func @transform_19(%arg0: i32) -> (i32, i32) {
    %c0_i32 = arith.constant 0 : i32
    %c0_i32_0 = arith.constant 0 : i32
    %c0_i32_1 = arith.constant 0 : i32
    return %c0_i32, %c0_i32_0 : i32, i32
  }
  func.func @transform_20(%arg0: i32) -> (i32, i32) {
    %c0_i32 = arith.constant 0 : i32
    %c0_i32_0 = arith.constant 0 : i32
    %c0_i32_1 = arith.constant 0 : i32
    return %c0_i32, %c0_i32_0 : i32, i32
  }
  func.func @transform_21(%arg0: i32) -> (i32, i32) {
    %c0_i32 = arith.constant 0 : i32
    %c0_i32_0 = arith.constant 0 : i32
    %c0_i32_1 = arith.constant 0 : i32
    return %c0_i32, %c0_i32_0 : i32, i32
  }
  func.func @transform_22(%arg0: i32) -> (i32, i32) {
    %c0_i32 = arith.constant 0 : i32
    %c0_i32_0 = arith.constant 0 : i32
    %c0_i32_1 = arith.constant 0 : i32
    return %c0_i32, %c0_i32_0 : i32, i32
  }
  func.func @transform_23(%arg0: i32) -> (i32, i32) {
    %c0_i32 = arith.constant 0 : i32
    %c0_i32_0 = arith.constant 0 : i32
    %c0_i32_1 = arith.constant 0 : i32
    return %c0_i32, %c0_i32_0 : i32, i32
  }
  func.func @transform_24(%arg0: i32) -> (i32, i32) {
    %c0_i32 = arith.constant 0 : i32
    %c0_i32_0 = arith.constant 0 : i32
    %c0_i32_1 = arith.constant 0 : i32
    return %c0_i32, %c0_i32_0 : i32, i32
  }
  func.func @transform_25(%arg0: i32) -> (i32, i32) {
    %c0_i32 = arith.constant 0 : i32
    %c0_i32_0 = arith.constant 0 : i32
    %c0_i32_1 = arith.constant 0 : i32
    return %c0_i32, %c0_i32_0 : i32, i32
  }
  func.func @transform_26(%arg0: i32) -> (i32, i32) {
    %c0_i32 = arith.constant 0 : i32
    %c0_i32_0 = arith.constant 0 : i32
    %c0_i32_1 = arith.constant 0 : i32
    return %c0_i32, %c0_i32_0 : i32, i32
  }
  func.func @transform_27(%arg0: i32) -> (i32, i32, i32) {
    %c0_i32 = arith.constant 0 : i32
    %c0_i32_0 = arith.constant 0 : i32
    %c0_i32_1 = arith.constant 0 : i32
    return %arg0, %c0_i32, %c0_i32_0 : i32, i32, i32
  }
  func.func @transform_28(%arg0: i32) -> (i32, i32, i32) {
    %c0_i32 = arith.constant 0 : i32
    %c0_i32_0 = arith.constant 0 : i32
    %c0_i32_1 = arith.constant 0 : i32
    return %arg0, %c0_i32, %c0_i32_0 : i32, i32, i32
  }
}

module attributes {stable_mosaic.version = 11 : i64} {
  func.func @_seed_layer_kernel(%arg0: i32, %arg1: memref<1x8x32xf32, #tpu.memory_space<vmem>>, %arg2: memref<1x8x32xf32, #tpu.memory_space<vmem>>, %arg3: memref<1x16x32xf32, #tpu.memory_space<vmem>>, %arg4: memref<32x64xf32, #tpu.memory_space<vmem>>, %arg5: memref<1x64xf32, #tpu.memory_space<vmem>>, %arg6: memref<32x32xf32, #tpu.memory_space<vmem>>, %arg7: memref<1x32xf32, #tpu.memory_space<vmem>>, %arg8: memref<32x32xf32, #tpu.memory_space<vmem>>, %arg9: memref<1x32xf32, #tpu.memory_space<vmem>>, %arg10: memref<1x32xf32, #tpu.memory_space<vmem>>, %arg11: memref<1x32xf32, #tpu.memory_space<vmem>>, %arg12: memref<32x32xf32, #tpu.memory_space<vmem>>, %arg13: memref<1x32xf32, #tpu.memory_space<vmem>>, %arg14: memref<32x64xf32, #tpu.memory_space<vmem>>, %arg15: memref<1x64xf32, #tpu.memory_space<vmem>>, %arg16: memref<32x32xf32, #tpu.memory_space<vmem>>, %arg17: memref<1x32xf32, #tpu.memory_space<vmem>>, %arg18: memref<1x32xf32, #tpu.memory_space<vmem>>, %arg19: memref<1x32xf32, #tpu.memory_space<vmem>>, %arg20: memref<32x64xf32, #tpu.memory_space<vmem>>, %arg21: memref<1x64xf32, #tpu.memory_space<vmem>>, %arg22: memref<64x32xf32, #tpu.memory_space<vmem>>, %arg23: memref<1x32xf32, #tpu.memory_space<vmem>>, %arg24: memref<1x32xf32, #tpu.memory_space<vmem>>, %arg25: memref<1x32xf32, #tpu.memory_space<vmem>>, %arg26: memref<32x128xf32, #tpu.memory_space<vmem>>, %arg27: memref<1x128xf32, #tpu.memory_space<vmem>>, %arg28: memref<1x8x32xf32, #tpu.memory_space<vmem>>, %arg29: memref<1x8x128xf32, #tpu.memory_space<vmem>>) attributes {dimension_semantics = [#tpu.dimension_semantics<parallel>], iteration_bounds = array<i64: 2>, scalar_prefetch = 0 : i64, scratch_operands = 0 : i64, tpu.core_type = #tpu.core_type<tc>, window_params = [{transform_indices = @transform_0, window_bounds = array<i64: 1, 8, 32>}, {transform_indices = @transform_1, window_bounds = array<i64: 1, 8, 32>}, {transform_indices = @transform_2, window_bounds = array<i64: 1, 16, 32>}, {pipeline_mode = #tpu.pipeline_mode<synchronous>, transform_indices = @transform_3, window_bounds = array<i64: 32, 64>}, {pipeline_mode = #tpu.pipeline_mode<synchronous>, transform_indices = @transform_4, window_bounds = array<i64: 1, 64>}, {pipeline_mode = #tpu.pipeline_mode<synchronous>, transform_indices = @transform_5, window_bounds = array<i64: 32, 32>}, {pipeline_mode = #tpu.pipeline_mode<synchronous>, transform_indices = @transform_6, window_bounds = array<i64: 1, 32>}, {pipeline_mode = #tpu.pipeline_mode<synchronous>, transform_indices = @transform_7, window_bounds = array<i64: 32, 32>}, {pipeline_mode = #tpu.pipeline_mode<synchronous>, transform_indices = @transform_8, window_bounds = array<i64: 1, 32>}, {pipeline_mode = #tpu.pipeline_mode<synchronous>, transform_indices = @transform_9, window_bounds = array<i64: 1, 32>}, {pipeline_mode = #tpu.pipeline_mode<synchronous>, transform_indices = @transform_10, window_bounds = array<i64: 1, 32>}, {pipeline_mode = #tpu.pipeline_mode<synchronous>, transform_indices = @transform_11, window_bounds = array<i64: 32, 32>}, {pipeline_mode = #tpu.pipeline_mode<synchronous>, transform_indices = @transform_12, window_bounds = array<i64: 1, 32>}, {pipeline_mode = #tpu.pipeline_mode<synchronous>, transform_indices = @transform_13, window_bounds = array<i64: 32, 64>}, {pipeline_mode = #tpu.pipeline_mode<synchronous>, transform_indices = @transform_14, window_bounds = array<i64: 1, 64>}, {pipeline_mode = #tpu.pipeline_mode<synchronous>, transform_indices = @transform_15, window_bounds = array<i64: 32, 32>}, {pipeline_mode = #tpu.pipeline_mode<synchronous>, transform_indices = @transform_16, window_bounds = array<i64: 1, 32>}, {pipeline_mode = #tpu.pipeline_mode<synchronous>, transform_indices = @transform_17, window_bounds = array<i64: 1, 32>}, {pipeline_mode = #tpu.pipeline_mode<synchronous>, transform_indices = @transform_18, window_bounds = array<i64: 1, 32>}, {pipeline_mode = #tpu.pipeline_mode<synchronous>, transform_indices = @transform_19, window_bounds = array<i64: 32, 64>}, {pipeline_mode = #tpu.pipeline_mode<synchronous>, transform_indices = @transform_20, window_bounds = array<i64: 1, 64>}, {pipeline_mode = #tpu.pipeline_mode<synchronous>, transform_indices = @transform_21, window_bounds = array<i64: 64, 32>}, {pipeline_mode = #tpu.pipeline_mode<synchronous>, transform_indices = @transform_22, window_bounds = array<i64: 1, 32>}, {pipeline_mode = #tpu.pipeline_mode<synchronous>, transform_indices = @transform_23, window_bounds = array<i64: 1, 32>}, {pipeline_mode = #tpu.pipeline_mode<synchronous>, transform_indices = @transform_24, window_bounds = array<i64: 1, 32>}, {pipeline_mode = #tpu.pipeline_mode<synchronous>, transform_indices = @transform_25, window_bounds = array<i64: 32, 128>}, {pipeline_mode = #tpu.pipeline_mode<synchronous>, transform_indices = @transform_26, window_bounds = array<i64: 1, 128>}, {transform_indices = @transform_27, window_bounds = array<i64: 1, 8, 32>}, {transform_indices = @transform_28, window_bounds = array<i64: 1, 8, 128>}]} {
    %c0 = arith.constant 0 : index
    %c0_0 = arith.constant 0 : index
    %c0_1 = arith.constant 0 : index
    %0 = vector.load %arg1[%c0, %c0_0, %c0_1] : memref<1x8x32xf32, #tpu.memory_space<vmem>>, vector<1x8x32xf32>
    %1 = vector.shape_cast %0 : vector<1x8x32xf32> to vector<8x32xf32>
    %c0_2 = arith.constant 0 : index
    %c0_3 = arith.constant 0 : index
    %c0_4 = arith.constant 0 : index
    %2 = vector.load %arg2[%c0_2, %c0_3, %c0_4] : memref<1x8x32xf32, #tpu.memory_space<vmem>>, vector<1x8x32xf32>
    %3 = vector.shape_cast %2 : vector<1x8x32xf32> to vector<8x32xf32>
    %c0_5 = arith.constant 0 : index
    %c0_6 = arith.constant 0 : index
    %c0_7 = arith.constant 0 : index
    %4 = vector.load %arg3[%c0_5, %c0_6, %c0_7] : memref<1x16x32xf32, #tpu.memory_space<vmem>>, vector<1x16x32xf32>
    %5 = vector.shape_cast %4 : vector<1x16x32xf32> to vector<16x32xf32>
    %6 = arith.addf %1, %3 : vector<8x32xf32>
    %c0_8 = arith.constant 0 : index
    %c0_9 = arith.constant 0 : index
    %7 = vector.load %arg4[%c0_8, %c0_9] : memref<32x64xf32, #tpu.memory_space<vmem>>, vector<32x64xf32>
    %cst = arith.constant dense<0.000000e+00> : vector<8x64xf32>
    %8 = tpu.matmul %6, %7, %cst {dimension_numbers = #tpu.dot_dimension_numbers<[1], [0], [0], [1], [0, 0, 1, 1], [], []>} : vector<8x32xf32>, vector<32x64xf32>, vector<8x64xf32> -> vector<8x64xf32>
    %c0_10 = arith.constant 0 : index
    %c0_11 = arith.constant 0 : index
    %9 = vector.load %arg5[%c0_10, %c0_11] : memref<1x64xf32, #tpu.memory_space<vmem>>, vector<1x64xf32>
    %10 = vector.broadcast %9 : vector<1x64xf32> to vector<8x64xf32>
    %11 = arith.addf %8, %10 : vector<8x64xf32>
    %12 = vector.extract_strided_slice %11 {offsets = [0, 0], sizes = [8, 32], strides = [1, 1]} : vector<8x64xf32> to vector<8x32xf32>
    %13 = vector.extract_strided_slice %11 {offsets = [0, 32], sizes = [8, 32], strides = [1, 1]} : vector<8x64xf32> to vector<8x32xf32>
    %c0_12 = arith.constant 0 : index
    %c0_13 = arith.constant 0 : index
    %14 = vector.load %arg6[%c0_12, %c0_13] : memref<32x32xf32, #tpu.memory_space<vmem>>, vector<32x32xf32>
    %cst_14 = arith.constant dense<0.000000e+00> : vector<8x32xf32>
    %15 = tpu.matmul %1, %14, %cst_14 {dimension_numbers = #tpu.dot_dimension_numbers<[1], [0], [0], [1], [0, 0, 1, 1], [], []>} : vector<8x32xf32>, vector<32x32xf32>, vector<8x32xf32> -> vector<8x32xf32>
    %c0_15 = arith.constant 0 : index
    %c0_16 = arith.constant 0 : index
    %16 = vector.load %arg7[%c0_15, %c0_16] : memref<1x32xf32, #tpu.memory_space<vmem>>, vector<1x32xf32>
    %17 = vector.broadcast %16 : vector<1x32xf32> to vector<8x32xf32>
    %18 = arith.addf %15, %17 : vector<8x32xf32>
    %c0_17 = arith.constant 0 : index
    %c0_18 = arith.constant 0 : index
    %19 = vector.load %arg8[%c0_17, %c0_18] : memref<32x32xf32, #tpu.memory_space<vmem>>, vector<32x32xf32>
    %20 = vector.extract_strided_slice %12 {offsets = [0, 0], sizes = [8, 8], strides = [1, 1]} : vector<8x32xf32> to vector<8x8xf32>
    %21 = vector.extract_strided_slice %13 {offsets = [0, 0], sizes = [8, 8], strides = [1, 1]} : vector<8x32xf32> to vector<8x8xf32>
    %22 = vector.extract_strided_slice %18 {offsets = [0, 0], sizes = [8, 8], strides = [1, 1]} : vector<8x32xf32> to vector<8x8xf32>
    %23 = tpu.transpose %21, [1, 0] : vector<8x8xf32> -> vector<8x8xf32>
    %cst_19 = arith.constant dense<0.000000e+00> : vector<8x8xf32>
    %24 = tpu.matmul %20, %23, %cst_19 {dimension_numbers = #tpu.dot_dimension_numbers<[1], [0], [0], [1], [0, 0, 1, 1], [], []>} : vector<8x8xf32>, vector<8x8xf32>, vector<8x8xf32> -> vector<8x8xf32>
    %cst_20 = arith.constant 0.353553385 : f32
    %25 = vector.broadcast %cst_20 : f32 to vector<8x8xf32>
    %26 = arith.mulf %24, %25 : vector<8x8xf32>
    %cst_21 = arith.constant dense<0xFF800000> : vector<8xf32>
    %27 = vector.multi_reduction <maximumf>, %26, %cst_21 [1] : vector<8x8xf32> to vector<8xf32>
    %28 = vector.shape_cast %27 : vector<8xf32> to vector<8x1xf32>
    %29 = vector.broadcast %28 : vector<8x1xf32> to vector<8x8xf32>
    %30 = arith.subf %26, %29 : vector<8x8xf32>
    %31 = math.exp %30 : vector<8x8xf32>
    %cst_22 = arith.constant dense<0.000000e+00> : vector<8xf32>
    %32 = vector.multi_reduction <add>, %31, %cst_22 [1] : vector<8x8xf32> to vector<8xf32>
    %33 = vector.shape_cast %32 : vector<8xf32> to vector<8x1xf32>
    %34 = tpu.reciprocal %33 {approx = true} : vector<8x1xf32> -> vector<8x1xf32>
    %35 = vector.broadcast %34 : vector<8x1xf32> to vector<8x8xf32>
    %36 = arith.mulf %31, %35 : vector<8x8xf32>
    %cst_23 = arith.constant dense<0.000000e+00> : vector<8x8xf32>
    %37 = tpu.matmul %36, %22, %cst_23 {dimension_numbers = #tpu.dot_dimension_numbers<[1], [0], [0], [1], [0, 0, 1, 1], [], []>} : vector<8x8xf32>, vector<8x8xf32>, vector<8x8xf32> -> vector<8x8xf32>
    %38 = vector.extract_strided_slice %19 {offsets = [0, 0], sizes = [8, 32], strides = [1, 1]} : vector<32x32xf32> to vector<8x32xf32>
    %cst_24 = arith.constant dense<0.000000e+00> : vector<8x32xf32>
    %39 = tpu.matmul %37, %38, %cst_24 {dimension_numbers = #tpu.dot_dimension_numbers<[1], [0], [0], [1], [0, 0, 1, 1], [], []>} : vector<8x8xf32>, vector<8x32xf32>, vector<8x32xf32> -> vector<8x32xf32>
    %40 = vector.extract_strided_slice %12 {offsets = [0, 8], sizes = [8, 8], strides = [1, 1]} : vector<8x32xf32> to vector<8x8xf32>
    %41 = vector.extract_strided_slice %13 {offsets = [0, 8], sizes = [8, 8], strides = [1, 1]} : vector<8x32xf32> to vector<8x8xf32>
    %42 = vector.extract_strided_slice %18 {offsets = [0, 8], sizes = [8, 8], strides = [1, 1]} : vector<8x32xf32> to vector<8x8xf32>
    %43 = tpu.transpose %41, [1, 0] : vector<8x8xf32> -> vector<8x8xf32>
    %cst_25 = arith.constant dense<0.000000e+00> : vector<8x8xf32>
    %44 = tpu.matmul %40, %43, %cst_25 {dimension_numbers = #tpu.dot_dimension_numbers<[1], [0], [0], [1], [0, 0, 1, 1], [], []>} : vector<8x8xf32>, vector<8x8xf32>, vector<8x8xf32> -> vector<8x8xf32>
    %cst_26 = arith.constant 0.353553385 : f32
    %45 = vector.broadcast %cst_26 : f32 to vector<8x8xf32>
    %46 = arith.mulf %44, %45 : vector<8x8xf32>
    %cst_27 = arith.constant dense<0xFF800000> : vector<8xf32>
    %47 = vector.multi_reduction <maximumf>, %46, %cst_27 [1] : vector<8x8xf32> to vector<8xf32>
    %48 = vector.shape_cast %47 : vector<8xf32> to vector<8x1xf32>
    %49 = vector.broadcast %48 : vector<8x1xf32> to vector<8x8xf32>
    %50 = arith.subf %46, %49 : vector<8x8xf32>
    %51 = math.exp %50 : vector<8x8xf32>
    %cst_28 = arith.constant dense<0.000000e+00> : vector<8xf32>
    %52 = vector.multi_reduction <add>, %51, %cst_28 [1] : vector<8x8xf32> to vector<8xf32>
    %53 = vector.shape_cast %52 : vector<8xf32> to vector<8x1xf32>
    %54 = tpu.reciprocal %53 {approx = true} : vector<8x1xf32> -> vector<8x1xf32>
    %55 = vector.broadcast %54 : vector<8x1xf32> to vector<8x8xf32>
    %56 = arith.mulf %51, %55 : vector<8x8xf32>
    %cst_29 = arith.constant dense<0.000000e+00> : vector<8x8xf32>
    %57 = tpu.matmul %56, %42, %cst_29 {dimension_numbers = #tpu.dot_dimension_numbers<[1], [0], [0], [1], [0, 0, 1, 1], [], []>} : vector<8x8xf32>, vector<8x8xf32>, vector<8x8xf32> -> vector<8x8xf32>
    %58 = vector.extract_strided_slice %19 {offsets = [8, 0], sizes = [8, 32], strides = [1, 1]} : vector<32x32xf32> to vector<8x32xf32>
    %cst_30 = arith.constant dense<0.000000e+00> : vector<8x32xf32>
    %59 = tpu.matmul %57, %58, %cst_30 {dimension_numbers = #tpu.dot_dimension_numbers<[1], [0], [0], [1], [0, 0, 1, 1], [], []>} : vector<8x8xf32>, vector<8x32xf32>, vector<8x32xf32> -> vector<8x32xf32>
    %60 = arith.addf %39, %59 : vector<8x32xf32>
    %61 = vector.extract_strided_slice %12 {offsets = [0, 16], sizes = [8, 8], strides = [1, 1]} : vector<8x32xf32> to vector<8x8xf32>
    %62 = vector.extract_strided_slice %13 {offsets = [0, 16], sizes = [8, 8], strides = [1, 1]} : vector<8x32xf32> to vector<8x8xf32>
    %63 = vector.extract_strided_slice %18 {offsets = [0, 16], sizes = [8, 8], strides = [1, 1]} : vector<8x32xf32> to vector<8x8xf32>
    %64 = tpu.transpose %62, [1, 0] : vector<8x8xf32> -> vector<8x8xf32>
    %cst_31 = arith.constant dense<0.000000e+00> : vector<8x8xf32>
    %65 = tpu.matmul %61, %64, %cst_31 {dimension_numbers = #tpu.dot_dimension_numbers<[1], [0], [0], [1], [0, 0, 1, 1], [], []>} : vector<8x8xf32>, vector<8x8xf32>, vector<8x8xf32> -> vector<8x8xf32>
    %cst_32 = arith.constant 0.353553385 : f32
    %66 = vector.broadcast %cst_32 : f32 to vector<8x8xf32>
    %67 = arith.mulf %65, %66 : vector<8x8xf32>
    %cst_33 = arith.constant dense<0xFF800000> : vector<8xf32>
    %68 = vector.multi_reduction <maximumf>, %67, %cst_33 [1] : vector<8x8xf32> to vector<8xf32>
    %69 = vector.shape_cast %68 : vector<8xf32> to vector<8x1xf32>
    %70 = vector.broadcast %69 : vector<8x1xf32> to vector<8x8xf32>
    %71 = arith.subf %67, %70 : vector<8x8xf32>
    %72 = math.exp %71 : vector<8x8xf32>
    %cst_34 = arith.constant dense<0.000000e+00> : vector<8xf32>
    %73 = vector.multi_reduction <add>, %72, %cst_34 [1] : vector<8x8xf32> to vector<8xf32>
    %74 = vector.shape_cast %73 : vector<8xf32> to vector<8x1xf32>
    %75 = tpu.reciprocal %74 {approx = true} : vector<8x1xf32> -> vector<8x1xf32>
    %76 = vector.broadcast %75 : vector<8x1xf32> to vector<8x8xf32>
    %77 = arith.mulf %72, %76 : vector<8x8xf32>
    %cst_35 = arith.constant dense<0.000000e+00> : vector<8x8xf32>
    %78 = tpu.matmul %77, %63, %cst_35 {dimension_numbers = #tpu.dot_dimension_numbers<[1], [0], [0], [1], [0, 0, 1, 1], [], []>} : vector<8x8xf32>, vector<8x8xf32>, vector<8x8xf32> -> vector<8x8xf32>
    %79 = vector.extract_strided_slice %19 {offsets = [16, 0], sizes = [8, 32], strides = [1, 1]} : vector<32x32xf32> to vector<8x32xf32>
    %cst_36 = arith.constant dense<0.000000e+00> : vector<8x32xf32>
    %80 = tpu.matmul %78, %79, %cst_36 {dimension_numbers = #tpu.dot_dimension_numbers<[1], [0], [0], [1], [0, 0, 1, 1], [], []>} : vector<8x8xf32>, vector<8x32xf32>, vector<8x32xf32> -> vector<8x32xf32>
    %81 = arith.addf %60, %80 : vector<8x32xf32>
    %82 = vector.extract_strided_slice %12 {offsets = [0, 24], sizes = [8, 8], strides = [1, 1]} : vector<8x32xf32> to vector<8x8xf32>
    %83 = vector.extract_strided_slice %13 {offsets = [0, 24], sizes = [8, 8], strides = [1, 1]} : vector<8x32xf32> to vector<8x8xf32>
    %84 = vector.extract_strided_slice %18 {offsets = [0, 24], sizes = [8, 8], strides = [1, 1]} : vector<8x32xf32> to vector<8x8xf32>
    %85 = tpu.transpose %83, [1, 0] : vector<8x8xf32> -> vector<8x8xf32>
    %cst_37 = arith.constant dense<0.000000e+00> : vector<8x8xf32>
    %86 = tpu.matmul %82, %85, %cst_37 {dimension_numbers = #tpu.dot_dimension_numbers<[1], [0], [0], [1], [0, 0, 1, 1], [], []>} : vector<8x8xf32>, vector<8x8xf32>, vector<8x8xf32> -> vector<8x8xf32>
    %cst_38 = arith.constant 0.353553385 : f32
    %87 = vector.broadcast %cst_38 : f32 to vector<8x8xf32>
    %88 = arith.mulf %86, %87 : vector<8x8xf32>
    %cst_39 = arith.constant dense<0xFF800000> : vector<8xf32>
    %89 = vector.multi_reduction <maximumf>, %88, %cst_39 [1] : vector<8x8xf32> to vector<8xf32>
    %90 = vector.shape_cast %89 : vector<8xf32> to vector<8x1xf32>
    %91 = vector.broadcast %90 : vector<8x1xf32> to vector<8x8xf32>
    %92 = arith.subf %88, %91 : vector<8x8xf32>
    %93 = math.exp %92 : vector<8x8xf32>
    %cst_40 = arith.constant dense<0.000000e+00> : vector<8xf32>
    %94 = vector.multi_reduction <add>, %93, %cst_40 [1] : vector<8x8xf32> to vector<8xf32>
    %95 = vector.shape_cast %94 : vector<8xf32> to vector<8x1xf32>
    %96 = tpu.reciprocal %95 {approx = true} : vector<8x1xf32> -> vector<8x1xf32>
    %97 = vector.broadcast %96 : vector<8x1xf32> to vector<8x8xf32>
    %98 = arith.mulf %93, %97 : vector<8x8xf32>
    %cst_41 = arith.constant dense<0.000000e+00> : vector<8x8xf32>
    %99 = tpu.matmul %98, %84, %cst_41 {dimension_numbers = #tpu.dot_dimension_numbers<[1], [0], [0], [1], [0, 0, 1, 1], [], []>} : vector<8x8xf32>, vector<8x8xf32>, vector<8x8xf32> -> vector<8x8xf32>
    %100 = vector.extract_strided_slice %19 {offsets = [24, 0], sizes = [8, 32], strides = [1, 1]} : vector<32x32xf32> to vector<8x32xf32>
    %cst_42 = arith.constant dense<0.000000e+00> : vector<8x32xf32>
    %101 = tpu.matmul %99, %100, %cst_42 {dimension_numbers = #tpu.dot_dimension_numbers<[1], [0], [0], [1], [0, 0, 1, 1], [], []>} : vector<8x8xf32>, vector<8x32xf32>, vector<8x32xf32> -> vector<8x32xf32>
    %102 = arith.addf %81, %101 : vector<8x32xf32>
    %c0_43 = arith.constant 0 : index
    %c0_44 = arith.constant 0 : index
    %103 = vector.load %arg9[%c0_43, %c0_44] : memref<1x32xf32, #tpu.memory_space<vmem>>, vector<1x32xf32>
    %104 = vector.broadcast %103 : vector<1x32xf32> to vector<8x32xf32>
    %105 = arith.addf %102, %104 : vector<8x32xf32>
    %106 = arith.addf %1, %105 : vector<8x32xf32>
    %cst_45 = arith.constant dense<0.000000e+00> : vector<8xf32>
    %107 = vector.multi_reduction <add>, %106, %cst_45 [1] : vector<8x32xf32> to vector<8xf32>
    %108 = vector.shape_cast %107 : vector<8xf32> to vector<8x1xf32>
    %cst_46 = arith.constant 3.200000e+01 : f32
    %109 = vector.broadcast %cst_46 : f32 to vector<8x1xf32>
    %110 = arith.divf %108, %109 : vector<8x1xf32>
    %111 = vector.broadcast %110 : vector<8x1xf32> to vector<8x32xf32>
    %112 = arith.subf %106, %111 : vector<8x32xf32>
    %113 = arith.mulf %112, %112 : vector<8x32xf32>
    %cst_47 = arith.constant dense<0.000000e+00> : vector<8xf32>
    %114 = vector.multi_reduction <add>, %113, %cst_47 [1] : vector<8x32xf32> to vector<8xf32>
    %115 = vector.shape_cast %114 : vector<8xf32> to vector<8x1xf32>
    %cst_48 = arith.constant 3.200000e+01 : f32
    %116 = vector.broadcast %cst_48 : f32 to vector<8x1xf32>
    %117 = arith.divf %115, %116 : vector<8x1xf32>
    %cst_49 = arith.constant 9.99999974E-6 : f32
    %118 = vector.broadcast %cst_49 : f32 to vector<8x1xf32>
    %119 = arith.addf %117, %118 : vector<8x1xf32>
    %120 = math.rsqrt %119 : vector<8x1xf32>
    %121 = vector.broadcast %120 : vector<8x1xf32> to vector<8x32xf32>
    %122 = arith.mulf %112, %121 : vector<8x32xf32>
    %c0_50 = arith.constant 0 : index
    %c0_51 = arith.constant 0 : index
    %123 = vector.load %arg10[%c0_50, %c0_51] : memref<1x32xf32, #tpu.memory_space<vmem>>, vector<1x32xf32>
    %124 = vector.broadcast %123 : vector<1x32xf32> to vector<8x32xf32>
    %125 = arith.mulf %122, %124 : vector<8x32xf32>
    %c0_52 = arith.constant 0 : index
    %c0_53 = arith.constant 0 : index
    %126 = vector.load %arg11[%c0_52, %c0_53] : memref<1x32xf32, #tpu.memory_space<vmem>>, vector<1x32xf32>
    %127 = vector.broadcast %126 : vector<1x32xf32> to vector<8x32xf32>
    %128 = arith.addf %125, %127 : vector<8x32xf32>
    %129 = arith.addf %128, %3 : vector<8x32xf32>
    %c0_54 = arith.constant 0 : index
    %c0_55 = arith.constant 0 : index
    %130 = vector.load %arg12[%c0_54, %c0_55] : memref<32x32xf32, #tpu.memory_space<vmem>>, vector<32x32xf32>
    %cst_56 = arith.constant dense<0.000000e+00> : vector<8x32xf32>
    %131 = tpu.matmul %129, %130, %cst_56 {dimension_numbers = #tpu.dot_dimension_numbers<[1], [0], [0], [1], [0, 0, 1, 1], [], []>} : vector<8x32xf32>, vector<32x32xf32>, vector<8x32xf32> -> vector<8x32xf32>
    %c0_57 = arith.constant 0 : index
    %c0_58 = arith.constant 0 : index
    %132 = vector.load %arg13[%c0_57, %c0_58] : memref<1x32xf32, #tpu.memory_space<vmem>>, vector<1x32xf32>
    %133 = vector.broadcast %132 : vector<1x32xf32> to vector<8x32xf32>
    %134 = arith.addf %131, %133 : vector<8x32xf32>
    %c0_59 = arith.constant 0 : index
    %c0_60 = arith.constant 0 : index
    %135 = vector.load %arg14[%c0_59, %c0_60] : memref<32x64xf32, #tpu.memory_space<vmem>>, vector<32x64xf32>
    %cst_61 = arith.constant dense<0.000000e+00> : vector<16x64xf32>
    %136 = tpu.matmul %5, %135, %cst_61 {dimension_numbers = #tpu.dot_dimension_numbers<[1], [0], [0], [1], [0, 0, 1, 1], [], []>} : vector<16x32xf32>, vector<32x64xf32>, vector<16x64xf32> -> vector<16x64xf32>
    %c0_62 = arith.constant 0 : index
    %c0_63 = arith.constant 0 : index
    %137 = vector.load %arg15[%c0_62, %c0_63] : memref<1x64xf32, #tpu.memory_space<vmem>>, vector<1x64xf32>
    %138 = vector.broadcast %137 : vector<1x64xf32> to vector<16x64xf32>
    %139 = arith.addf %136, %138 : vector<16x64xf32>
    %140 = vector.extract_strided_slice %139 {offsets = [0, 0], sizes = [16, 32], strides = [1, 1]} : vector<16x64xf32> to vector<16x32xf32>
    %141 = vector.extract_strided_slice %139 {offsets = [0, 32], sizes = [16, 32], strides = [1, 1]} : vector<16x64xf32> to vector<16x32xf32>
    %c0_64 = arith.constant 0 : index
    %c0_65 = arith.constant 0 : index
    %142 = vector.load %arg16[%c0_64, %c0_65] : memref<32x32xf32, #tpu.memory_space<vmem>>, vector<32x32xf32>
    %143 = vector.extract_strided_slice %134 {offsets = [0, 0], sizes = [8, 8], strides = [1, 1]} : vector<8x32xf32> to vector<8x8xf32>
    %144 = vector.extract_strided_slice %140 {offsets = [0, 0], sizes = [16, 8], strides = [1, 1]} : vector<16x32xf32> to vector<16x8xf32>
    %145 = vector.extract_strided_slice %141 {offsets = [0, 0], sizes = [16, 8], strides = [1, 1]} : vector<16x32xf32> to vector<16x8xf32>
    %146 = tpu.transpose %144, [1, 0] : vector<16x8xf32> -> vector<8x16xf32>
    %cst_66 = arith.constant dense<0.000000e+00> : vector<8x16xf32>
    %147 = tpu.matmul %143, %146, %cst_66 {dimension_numbers = #tpu.dot_dimension_numbers<[1], [0], [0], [1], [0, 0, 1, 1], [], []>} : vector<8x8xf32>, vector<8x16xf32>, vector<8x16xf32> -> vector<8x16xf32>
    %cst_67 = arith.constant 0.353553385 : f32
    %148 = vector.broadcast %cst_67 : f32 to vector<8x16xf32>
    %149 = arith.mulf %147, %148 : vector<8x16xf32>
    %cst_68 = arith.constant dense<0xFF800000> : vector<8xf32>
    %150 = vector.multi_reduction <maximumf>, %149, %cst_68 [1] : vector<8x16xf32> to vector<8xf32>
    %151 = vector.shape_cast %150 : vector<8xf32> to vector<8x1xf32>
    %152 = vector.broadcast %151 : vector<8x1xf32> to vector<8x16xf32>
    %153 = arith.subf %149, %152 : vector<8x16xf32>
    %154 = math.exp %153 : vector<8x16xf32>
    %cst_69 = arith.constant dense<0.000000e+00> : vector<8xf32>
    %155 = vector.multi_reduction <add>, %154, %cst_69 [1] : vector<8x16xf32> to vector<8xf32>
    %156 = vector.shape_cast %155 : vector<8xf32> to vector<8x1xf32>
    %157 = tpu.reciprocal %156 {approx = true} : vector<8x1xf32> -> vector<8x1xf32>
    %158 = vector.broadcast %157 : vector<8x1xf32> to vector<8x16xf32>
    %159 = arith.mulf %154, %158 : vector<8x16xf32>
    %cst_70 = arith.constant dense<0.000000e+00> : vector<8x8xf32>
    %160 = tpu.matmul %159, %145, %cst_70 {dimension_numbers = #tpu.dot_dimension_numbers<[1], [0], [0], [1], [0, 0, 1, 1], [], []>} : vector<8x16xf32>, vector<16x8xf32>, vector<8x8xf32> -> vector<8x8xf32>
    %161 = vector.extract_strided_slice %142 {offsets = [0, 0], sizes = [8, 32], strides = [1, 1]} : vector<32x32xf32> to vector<8x32xf32>
    %cst_71 = arith.constant dense<0.000000e+00> : vector<8x32xf32>
    %162 = tpu.matmul %160, %161, %cst_71 {dimension_numbers = #tpu.dot_dimension_numbers<[1], [0], [0], [1], [0, 0, 1, 1], [], []>} : vector<8x8xf32>, vector<8x32xf32>, vector<8x32xf32> -> vector<8x32xf32>
    %163 = vector.extract_strided_slice %134 {offsets = [0, 8], sizes = [8, 8], strides = [1, 1]} : vector<8x32xf32> to vector<8x8xf32>
    %164 = vector.extract_strided_slice %140 {offsets = [0, 8], sizes = [16, 8], strides = [1, 1]} : vector<16x32xf32> to vector<16x8xf32>
    %165 = vector.extract_strided_slice %141 {offsets = [0, 8], sizes = [16, 8], strides = [1, 1]} : vector<16x32xf32> to vector<16x8xf32>
    %166 = tpu.transpose %164, [1, 0] : vector<16x8xf32> -> vector<8x16xf32>
    %cst_72 = arith.constant dense<0.000000e+00> : vector<8x16xf32>
    %167 = tpu.matmul %163, %166, %cst_72 {dimension_numbers = #tpu.dot_dimension_numbers<[1], [0], [0], [1], [0, 0, 1, 1], [], []>} : vector<8x8xf32>, vector<8x16xf32>, vector<8x16xf32> -> vector<8x16xf32>
    %cst_73 = arith.constant 0.353553385 : f32
    %168 = vector.broadcast %cst_73 : f32 to vector<8x16xf32>
    %169 = arith.mulf %167, %168 : vector<8x16xf32>
    %cst_74 = arith.constant dense<0xFF800000> : vector<8xf32>
    %170 = vector.multi_reduction <maximumf>, %169, %cst_74 [1] : vector<8x16xf32> to vector<8xf32>
    %171 = vector.shape_cast %170 : vector<8xf32> to vector<8x1xf32>
    %172 = vector.broadcast %171 : vector<8x1xf32> to vector<8x16xf32>
    %173 = arith.subf %169, %172 : vector<8x16xf32>
    %174 = math.exp %173 : vector<8x16xf32>
    %cst_75 = arith.constant dense<0.000000e+00> : vector<8xf32>
    %175 = vector.multi_reduction <add>, %174, %cst_75 [1] : vector<8x16xf32> to vector<8xf32>
    %176 = vector.shape_cast %175 : vector<8xf32> to vector<8x1xf32>
    %177 = tpu.reciprocal %176 {approx = true} : vector<8x1xf32> -> vector<8x1xf32>
    %178 = vector.broadcast %177 : vector<8x1xf32> to vector<8x16xf32>
    %179 = arith.mulf %174, %178 : vector<8x16xf32>
    %cst_76 = arith.constant dense<0.000000e+00> : vector<8x8xf32>
    %180 = tpu.matmul %179, %165, %cst_76 {dimension_numbers = #tpu.dot_dimension_numbers<[1], [0], [0], [1], [0, 0, 1, 1], [], []>} : vector<8x16xf32>, vector<16x8xf32>, vector<8x8xf32> -> vector<8x8xf32>
    %181 = vector.extract_strided_slice %142 {offsets = [8, 0], sizes = [8, 32], strides = [1, 1]} : vector<32x32xf32> to vector<8x32xf32>
    %cst_77 = arith.constant dense<0.000000e+00> : vector<8x32xf32>
    %182 = tpu.matmul %180, %181, %cst_77 {dimension_numbers = #tpu.dot_dimension_numbers<[1], [0], [0], [1], [0, 0, 1, 1], [], []>} : vector<8x8xf32>, vector<8x32xf32>, vector<8x32xf32> -> vector<8x32xf32>
    %183 = arith.addf %162, %182 : vector<8x32xf32>
    %184 = vector.extract_strided_slice %134 {offsets = [0, 16], sizes = [8, 8], strides = [1, 1]} : vector<8x32xf32> to vector<8x8xf32>
    %185 = vector.extract_strided_slice %140 {offsets = [0, 16], sizes = [16, 8], strides = [1, 1]} : vector<16x32xf32> to vector<16x8xf32>
    %186 = vector.extract_strided_slice %141 {offsets = [0, 16], sizes = [16, 8], strides = [1, 1]} : vector<16x32xf32> to vector<16x8xf32>
    %187 = tpu.transpose %185, [1, 0] : vector<16x8xf32> -> vector<8x16xf32>
    %cst_78 = arith.constant dense<0.000000e+00> : vector<8x16xf32>
    %188 = tpu.matmul %184, %187, %cst_78 {dimension_numbers = #tpu.dot_dimension_numbers<[1], [0], [0], [1], [0, 0, 1, 1], [], []>} : vector<8x8xf32>, vector<8x16xf32>, vector<8x16xf32> -> vector<8x16xf32>
    %cst_79 = arith.constant 0.353553385 : f32
    %189 = vector.broadcast %cst_79 : f32 to vector<8x16xf32>
    %190 = arith.mulf %188, %189 : vector<8x16xf32>
    %cst_80 = arith.constant dense<0xFF800000> : vector<8xf32>
    %191 = vector.multi_reduction <maximumf>, %190, %cst_80 [1] : vector<8x16xf32> to vector<8xf32>
    %192 = vector.shape_cast %191 : vector<8xf32> to vector<8x1xf32>
    %193 = vector.broadcast %192 : vector<8x1xf32> to vector<8x16xf32>
    %194 = arith.subf %190, %193 : vector<8x16xf32>
    %195 = math.exp %194 : vector<8x16xf32>
    %cst_81 = arith.constant dense<0.000000e+00> : vector<8xf32>
    %196 = vector.multi_reduction <add>, %195, %cst_81 [1] : vector<8x16xf32> to vector<8xf32>
    %197 = vector.shape_cast %196 : vector<8xf32> to vector<8x1xf32>
    %198 = tpu.reciprocal %197 {approx = true} : vector<8x1xf32> -> vector<8x1xf32>
    %199 = vector.broadcast %198 : vector<8x1xf32> to vector<8x16xf32>
    %200 = arith.mulf %195, %199 : vector<8x16xf32>
    %cst_82 = arith.constant dense<0.000000e+00> : vector<8x8xf32>
    %201 = tpu.matmul %200, %186, %cst_82 {dimension_numbers = #tpu.dot_dimension_numbers<[1], [0], [0], [1], [0, 0, 1, 1], [], []>} : vector<8x16xf32>, vector<16x8xf32>, vector<8x8xf32> -> vector<8x8xf32>
    %202 = vector.extract_strided_slice %142 {offsets = [16, 0], sizes = [8, 32], strides = [1, 1]} : vector<32x32xf32> to vector<8x32xf32>
    %cst_83 = arith.constant dense<0.000000e+00> : vector<8x32xf32>
    %203 = tpu.matmul %201, %202, %cst_83 {dimension_numbers = #tpu.dot_dimension_numbers<[1], [0], [0], [1], [0, 0, 1, 1], [], []>} : vector<8x8xf32>, vector<8x32xf32>, vector<8x32xf32> -> vector<8x32xf32>
    %204 = arith.addf %183, %203 : vector<8x32xf32>
    %205 = vector.extract_strided_slice %134 {offsets = [0, 24], sizes = [8, 8], strides = [1, 1]} : vector<8x32xf32> to vector<8x8xf32>
    %206 = vector.extract_strided_slice %140 {offsets = [0, 24], sizes = [16, 8], strides = [1, 1]} : vector<16x32xf32> to vector<16x8xf32>
    %207 = vector.extract_strided_slice %141 {offsets = [0, 24], sizes = [16, 8], strides = [1, 1]} : vector<16x32xf32> to vector<16x8xf32>
    %208 = tpu.transpose %206, [1, 0] : vector<16x8xf32> -> vector<8x16xf32>
    %cst_84 = arith.constant dense<0.000000e+00> : vector<8x16xf32>
    %209 = tpu.matmul %205, %208, %cst_84 {dimension_numbers = #tpu.dot_dimension_numbers<[1], [0], [0], [1], [0, 0, 1, 1], [], []>} : vector<8x8xf32>, vector<8x16xf32>, vector<8x16xf32> -> vector<8x16xf32>
    %cst_85 = arith.constant 0.353553385 : f32
    %210 = vector.broadcast %cst_85 : f32 to vector<8x16xf32>
    %211 = arith.mulf %209, %210 : vector<8x16xf32>
    %cst_86 = arith.constant dense<0xFF800000> : vector<8xf32>
    %212 = vector.multi_reduction <maximumf>, %211, %cst_86 [1] : vector<8x16xf32> to vector<8xf32>
    %213 = vector.shape_cast %212 : vector<8xf32> to vector<8x1xf32>
    %214 = vector.broadcast %213 : vector<8x1xf32> to vector<8x16xf32>
    %215 = arith.subf %211, %214 : vector<8x16xf32>
    %216 = math.exp %215 : vector<8x16xf32>
    %cst_87 = arith.constant dense<0.000000e+00> : vector<8xf32>
    %217 = vector.multi_reduction <add>, %216, %cst_87 [1] : vector<8x16xf32> to vector<8xf32>
    %218 = vector.shape_cast %217 : vector<8xf32> to vector<8x1xf32>
    %219 = tpu.reciprocal %218 {approx = true} : vector<8x1xf32> -> vector<8x1xf32>
    %220 = vector.broadcast %219 : vector<8x1xf32> to vector<8x16xf32>
    %221 = arith.mulf %216, %220 : vector<8x16xf32>
    %cst_88 = arith.constant dense<0.000000e+00> : vector<8x8xf32>
    %222 = tpu.matmul %221, %207, %cst_88 {dimension_numbers = #tpu.dot_dimension_numbers<[1], [0], [0], [1], [0, 0, 1, 1], [], []>} : vector<8x16xf32>, vector<16x8xf32>, vector<8x8xf32> -> vector<8x8xf32>
    %223 = vector.extract_strided_slice %142 {offsets = [24, 0], sizes = [8, 32], strides = [1, 1]} : vector<32x32xf32> to vector<8x32xf32>
    %cst_89 = arith.constant dense<0.000000e+00> : vector<8x32xf32>
    %224 = tpu.matmul %222, %223, %cst_89 {dimension_numbers = #tpu.dot_dimension_numbers<[1], [0], [0], [1], [0, 0, 1, 1], [], []>} : vector<8x8xf32>, vector<8x32xf32>, vector<8x32xf32> -> vector<8x32xf32>
    %225 = arith.addf %204, %224 : vector<8x32xf32>
    %c0_90 = arith.constant 0 : index
    %c0_91 = arith.constant 0 : index
    %226 = vector.load %arg17[%c0_90, %c0_91] : memref<1x32xf32, #tpu.memory_space<vmem>>, vector<1x32xf32>
    %227 = vector.broadcast %226 : vector<1x32xf32> to vector<8x32xf32>
    %228 = arith.addf %225, %227 : vector<8x32xf32>
    %229 = arith.addf %128, %228 : vector<8x32xf32>
    %cst_92 = arith.constant dense<0.000000e+00> : vector<8xf32>
    %230 = vector.multi_reduction <add>, %229, %cst_92 [1] : vector<8x32xf32> to vector<8xf32>
    %231 = vector.shape_cast %230 : vector<8xf32> to vector<8x1xf32>
    %cst_93 = arith.constant 3.200000e+01 : f32
    %232 = vector.broadcast %cst_93 : f32 to vector<8x1xf32>
    %233 = arith.divf %231, %232 : vector<8x1xf32>
    %234 = vector.broadcast %233 : vector<8x1xf32> to vector<8x32xf32>
    %235 = arith.subf %229, %234 : vector<8x32xf32>
    %236 = arith.mulf %235, %235 : vector<8x32xf32>
    %cst_94 = arith.constant dense<0.000000e+00> : vector<8xf32>
    %237 = vector.multi_reduction <add>, %236, %cst_94 [1] : vector<8x32xf32> to vector<8xf32>
    %238 = vector.shape_cast %237 : vector<8xf32> to vector<8x1xf32>
    %cst_95 = arith.constant 3.200000e+01 : f32
    %239 = vector.broadcast %cst_95 : f32 to vector<8x1xf32>
    %240 = arith.divf %238, %239 : vector<8x1xf32>
    %cst_96 = arith.constant 9.99999974E-6 : f32
    %241 = vector.broadcast %cst_96 : f32 to vector<8x1xf32>
    %242 = arith.addf %240, %241 : vector<8x1xf32>
    %243 = math.rsqrt %242 : vector<8x1xf32>
    %244 = vector.broadcast %243 : vector<8x1xf32> to vector<8x32xf32>
    %245 = arith.mulf %235, %244 : vector<8x32xf32>
    %c0_97 = arith.constant 0 : index
    %c0_98 = arith.constant 0 : index
    %246 = vector.load %arg18[%c0_97, %c0_98] : memref<1x32xf32, #tpu.memory_space<vmem>>, vector<1x32xf32>
    %247 = vector.broadcast %246 : vector<1x32xf32> to vector<8x32xf32>
    %248 = arith.mulf %245, %247 : vector<8x32xf32>
    %c0_99 = arith.constant 0 : index
    %c0_100 = arith.constant 0 : index
    %249 = vector.load %arg19[%c0_99, %c0_100] : memref<1x32xf32, #tpu.memory_space<vmem>>, vector<1x32xf32>
    %250 = vector.broadcast %249 : vector<1x32xf32> to vector<8x32xf32>
    %251 = arith.addf %248, %250 : vector<8x32xf32>
    %c0_101 = arith.constant 0 : index
    %c0_102 = arith.constant 0 : index
    %252 = vector.load %arg20[%c0_101, %c0_102] : memref<32x64xf32, #tpu.memory_space<vmem>>, vector<32x64xf32>
    %cst_103 = arith.constant dense<0.000000e+00> : vector<8x64xf32>
    %253 = tpu.matmul %251, %252, %cst_103 {dimension_numbers = #tpu.dot_dimension_numbers<[1], [0], [0], [1], [0, 0, 1, 1], [], []>} : vector<8x32xf32>, vector<32x64xf32>, vector<8x64xf32> -> vector<8x64xf32>
    %c0_104 = arith.constant 0 : index
    %c0_105 = arith.constant 0 : index
    %254 = vector.load %arg21[%c0_104, %c0_105] : memref<1x64xf32, #tpu.memory_space<vmem>>, vector<1x64xf32>
    %255 = vector.broadcast %254 : vector<1x64xf32> to vector<8x64xf32>
    %256 = arith.addf %253, %255 : vector<8x64xf32>
    %cst_106 = arith.constant 0.000000e+00 : f32
    %257 = vector.broadcast %cst_106 : f32 to vector<8x64xf32>
    %258 = arith.maximumf %256, %257 : vector<8x64xf32>
    %c0_107 = arith.constant 0 : index
    %c0_108 = arith.constant 0 : index
    %259 = vector.load %arg22[%c0_107, %c0_108] : memref<64x32xf32, #tpu.memory_space<vmem>>, vector<64x32xf32>
    %cst_109 = arith.constant dense<0.000000e+00> : vector<8x32xf32>
    %260 = tpu.matmul %258, %259, %cst_109 {dimension_numbers = #tpu.dot_dimension_numbers<[1], [0], [0], [1], [0, 0, 1, 1], [], []>} : vector<8x64xf32>, vector<64x32xf32>, vector<8x32xf32> -> vector<8x32xf32>
    %c0_110 = arith.constant 0 : index
    %c0_111 = arith.constant 0 : index
    %261 = vector.load %arg23[%c0_110, %c0_111] : memref<1x32xf32, #tpu.memory_space<vmem>>, vector<1x32xf32>
    %262 = vector.broadcast %261 : vector<1x32xf32> to vector<8x32xf32>
    %263 = arith.addf %260, %262 : vector<8x32xf32>
    %264 = arith.addf %251, %263 : vector<8x32xf32>
    %cst_112 = arith.constant dense<0.000000e+00> : vector<8xf32>
    %265 = vector.multi_reduction <add>, %264, %cst_112 [1] : vector<8x32xf32> to vector<8xf32>
    %266 = vector.shape_cast %265 : vector<8xf32> to vector<8x1xf32>
    %cst_113 = arith.constant 3.200000e+01 : f32
    %267 = vector.broadcast %cst_113 : f32 to vector<8x1xf32>
    %268 = arith.divf %266, %267 : vector<8x1xf32>
    %269 = vector.broadcast %268 : vector<8x1xf32> to vector<8x32xf32>
    %270 = arith.subf %264, %269 : vector<8x32xf32>
    %271 = arith.mulf %270, %270 : vector<8x32xf32>
    %cst_114 = arith.constant dense<0.000000e+00> : vector<8xf32>
    %272 = vector.multi_reduction <add>, %271, %cst_114 [1] : vector<8x32xf32> to vector<8xf32>
    %273 = vector.shape_cast %272 : vector<8xf32> to vector<8x1xf32>
    %cst_115 = arith.constant 3.200000e+01 : f32
    %274 = vector.broadcast %cst_115 : f32 to vector<8x1xf32>
    %275 = arith.divf %273, %274 : vector<8x1xf32>
    %cst_116 = arith.constant 9.99999974E-6 : f32
    %276 = vector.broadcast %cst_116 : f32 to vector<8x1xf32>
    %277 = arith.addf %275, %276 : vector<8x1xf32>
    %278 = math.rsqrt %277 : vector<8x1xf32>
    %279 = vector.broadcast %278 : vector<8x1xf32> to vector<8x32xf32>
    %280 = arith.mulf %270, %279 : vector<8x32xf32>
    %c0_117 = arith.constant 0 : index
    %c0_118 = arith.constant 0 : index
    %281 = vector.load %arg24[%c0_117, %c0_118] : memref<1x32xf32, #tpu.memory_space<vmem>>, vector<1x32xf32>
    %282 = vector.broadcast %281 : vector<1x32xf32> to vector<8x32xf32>
    %283 = arith.mulf %280, %282 : vector<8x32xf32>
    %c0_119 = arith.constant 0 : index
    %c0_120 = arith.constant 0 : index
    %284 = vector.load %arg25[%c0_119, %c0_120] : memref<1x32xf32, #tpu.memory_space<vmem>>, vector<1x32xf32>
    %285 = vector.broadcast %284 : vector<1x32xf32> to vector<8x32xf32>
    %286 = arith.addf %283, %285 : vector<8x32xf32>
    %c0_121 = arith.constant 0 : index
    %c0_122 = arith.constant 0 : index
    %c0_123 = arith.constant 0 : index
    %287 = vector.load %arg28[%c0_121, %c0_122, %c0_123] : memref<1x8x32xf32, #tpu.memory_space<vmem>>, vector<1x8x32xf32>
    %288 = vector.shape_cast %287 : vector<1x8x32xf32> to vector<8x32xf32>
    %289 = vector.shape_cast %286 : vector<8x32xf32> to vector<1x8x32xf32>
    tpu.vector_store %arg28[%c0_121, %c0_122, %c0_123], %289 {strides = array<i32>} : memref<1x8x32xf32, #tpu.memory_space<vmem>>, vector<1x8x32xf32>,
    %c0_124 = arith.constant 0 : index
    %c0_125 = arith.constant 0 : index
    %290 = vector.load %arg26[%c0_124, %c0_125] : memref<32x128xf32, #tpu.memory_space<vmem>>, vector<32x128xf32>
    %cst_126 = arith.constant dense<0.000000e+00> : vector<8x128xf32>
    %291 = tpu.matmul %286, %290, %cst_126 {dimension_numbers = #tpu.dot_dimension_numbers<[1], [0], [0], [1], [0, 0, 1, 1], [], []>} : vector<8x32xf32>, vector<32x128xf32>, vector<8x128xf32> -> vector<8x128xf32>
    %c0_127 = arith.constant 0 : index
    %c0_128 = arith.constant 0 : index
    %292 = vector.load %arg27[%c0_127, %c0_128] : memref<1x128xf32, #tpu.memory_space<vmem>>, vector<1x128xf32>
    %293 = vector.broadcast %292 : vector<1x128xf32> to vector<8x128xf32>
    %294 = arith.addf %291, %293 : vector<8x128xf32>
    %c0_129 = arith.constant 0 : index
    %c0_130 = arith.constant 0 : index
    %c0_131 = arith.constant 0 : index
    %295 = vector.load %arg29[%c0_129, %c0_130, %c0_131] : memref<1x8x128xf32, #tpu.memory_space<vmem>>, vector<1x8x128xf32>
    %296 = vector.shape_cast %295 : vector<1x8x128xf32> to vector<8x128xf32>
    %297 = vector.shape_cast %294 : vector<8x128xf32> to vector<1x8x128xf32>
    tpu.vector_store %arg29[%c0_129, %c0_130, %c0_131], %297 {strides = array<i32>} : memref<1x8x128xf32, #tpu.memory_space<vmem>>, vector<1x8x128xf32>,
    return
  }
  func.func @transform_0(%arg0: i32) -> (i32, i32, i32) {
    %c0_i32 = arith.constant 0 : i32
    %c0_i32_0 = arith.constant 0 : i32
    %c0_i32_1 = arith.constant 0 : i32
    return %arg0, %c0_i32, %c0_i32_0 : i32, i32, i32
  }
  func.func @transform_1(%arg0: i32) -> (i32, i32, i32) {
    %c0_i32 = arith.constant 0 : i32
    %c0_i32_0 = arith.constant 0 : i32
    %c0_i32_1 = arith.constant 0 : i32
    return %arg0, %c0_i32, %c0_i32_0 : i32, i32, i32
  }
  func.func @transform_2(%arg0: i32) -> (i32, i32, i32) {
    %c0_i32 = arith.constant 0 : i32
    %c0_i32_0 = arith.constant 0 : i32
    %c0_i32_1 = arith.constant 0 : i32
    return %arg0, %c0_i32, %c0_i32_0 : i32, i32, i32
  }
  func.func @transform_3(%arg0: i32) -> (i32, i32) {
    %c0_i32 = arith.constant 0 : i32
    %c0_i32_0 = arith.constant 0 : i32
    %c0_i32_1 = arith.constant 0 : i32
    return %c0_i32, %c0_i32_0 : i32, i32
  }
  func.func @transform_4(%arg0: i32) -> (i32, i32) {
    %c0_i32 = arith.constant 0 : i32
    %c0_i32_0 = arith.constant 0 : i32
    %c0_i32_1 = arith.constant 0 : i32
    return %c0_i32, %c0_i32_0 : i32, i32
  }
  func.func @transform_5(%arg0: i32) -> (i32, i32) {
    %c0_i32 = arith.constant 0 : i32
    %c0_i32_0 = arith.constant 0 : i32
    %c0_i32_1 = arith.constant 0 : i32
    return %c0_i32, %c0_i32_0 : i32, i32
  }
  func.func @transform_6(%arg0: i32) -> (i32, i32) {
    %c0_i32 = arith.constant 0 : i32
    %c0_i32_0 = arith.constant 0 : i32
    %c0_i32_1 = arith.constant 0 : i32
    return %c0_i32, %c0_i32_0 : i32, i32
  }
  func.func @transform_7(%arg0: i32) -> (i32, i32) {
    %c0_i32 = arith.constant 0 : i32
    %c0_i32_0 = arith.constant 0 : i32
    %c0_i32_1 = arith.constant 0 : i32
    return %c0_i32, %c0_i32_0 : i32, i32
  }
  func.func @transform_8(%arg0: i32) -> (i32, i32) {
    %c0_i32 = arith.constant 0 : i32
    %c0_i32_0 = arith.constant 0 : i32
    %c0_i32_1 = arith.constant 0 : i32
    return %c0_i32, %c0_i32_0 : i32, i32
  }
  func.func @transform_9(%arg0: i32) -> (i32, i32) {
    %c0_i32 = arith.constant 0 : i32
    %c0_i32_0 = arith.constant 0 : i32
    %c0_i32_1 = arith.constant 0 : i32
    return %c0_i32, %c0_i32_0 : i32, i32
  }
  func.func @transform_10(%arg0: i32) -> (i32, i32) {
    %c0_i32 = arith.constant 0 : i32
    %c0_i32_0 = arith.constant 0 : i32
    %c0_i32_1 = arith.constant 0 : i32
    return %c0_i32, %c0_i32_0 : i32, i32
  }
  func.func @transform_11(%arg0: i32) -> (i32, i32) {
    %c0_i32 = arith.constant 0 : i32
    %c0_i32_0 = arith.constant 0 : i32
    %c0_i32_1 = arith.constant 0 : i32
    return %c0_i32, %c0_i32_0 : i32, i32
  }
  func.func @transform_12(%arg0: i32) -> (i32, i32) {
    %c0_i32 = arith.constant 0 : i32
    %c0_i32_0 = arith.constant 0 : i32
    %c0_i32_1 = arith.constant 0 : i32
    return %c0_i32, %c0_i32_0 : i32, i32
  }
  func.func @transform_13(%arg0: i32) -> (i32, i32) {
    %c0_i32 = arith.constant 0 : i32
    %c0_i32_0 = arith.constant 0 : i32
    %c0_i32_1 = arith.constant 0 : i32
    return %c0_i32, %c0_i32_0 : i32, i32
  }
  func.func @transform_14(%arg0: i32) -> (i32, i32) {
    %c0_i32 = arith.constant 0 : i32
    %c0_i32_0 = arith.constant 0 : i32
    %c0_i32_1 = arith.constant 0 : i32
    return %c0_i32, %c0_i32_0 : i32, i32
  }
  func.func @transform_15(%arg0: i32) -> (i32, i32) {
    %c0_i32 = arith.constant 0 : i32
    %c0_i32_0 = arith.constant 0 : i32
    %c0_i32_1 = arith.constant 0 : i32
    return %c0_i32, %c0_i32_0 : i32, i32
  }
  func.func @transform_16(%arg0: i32) -> (i32, i32) {
    %c0_i32 = arith.constant 0 : i32
    %c0_i32_0 = arith.constant 0 : i32
    %c0_i32_1 = arith.constant 0 : i32
    return %c0_i32, %c0_i32_0 : i32, i32
  }
  func.func @transform_17(%arg0: i32) -> (i32, i32) {
    %c0_i32 = arith.constant 0 : i32
    %c0_i32_0 = arith.constant 0 : i32
    %c0_i32_1 = arith.constant 0 : i32
    return %c0_i32, %c0_i32_0 : i32, i32
  }
  func.func @transform_18(%arg0: i32) -> (i32, i32) {
    %c0_i32 = arith.constant 0 : i32
    %c0_i32_0 = arith.constant 0 : i32
    %c0_i32_1 = arith.constant 0 : i32
    return %c0_i32, %c0_i32_0 : i32, i32
  }
  func.func @transform_19(%arg0: i32) -> (i32, i32) {
    %c0_i32 = arith.constant 0 : i32
    %c0_i32_0 = arith.constant 0 : i32
    %c0_i32_1 = arith.constant 0 : i32
    return %c0_i32, %c0_i32_0 : i32, i32
  }
  func.func @transform_20(%arg0: i32) -> (i32, i32) {
    %c0_i32 = arith.constant 0 : i32
    %c0_i32_0 = arith.constant 0 : i32
    %c0_i32_1 = arith.constant 0 : i32
    return %c0_i32, %c0_i32_0 : i32, i32
  }
  func.func @transform_21(%arg0: i32) -> (i32, i32) {
    %c0_i32 = arith.constant 0 : i32
    %c0_i32_0 = arith.constant 0 : i32
    %c0_i32_1 = arith.constant 0 : i32
    return %c0_i32, %c0_i32_0 : i32, i32
  }
  func.func @transform_22(%arg0: i32) -> (i32, i32) {
    %c0_i32 = arith.constant 0 : i32
    %c0_i32_0 = arith.constant 0 : i32
    %c0_i32_1 = arith.constant 0 : i32
    return %c0_i32, %c0_i32_0 : i32, i32
  }
  func.func @transform_23(%arg0: i32) -> (i32, i32) {
    %c0_i32 = arith.constant 0 : i32
    %c0_i32_0 = arith.constant 0 : i32
    %c0_i32_1 = arith.constant 0 : i32
    return %c0_i32, %c0_i32_0 : i32, i32
  }
  func.func @transform_24(%arg0: i32) -> (i32, i32) {
    %c0_i32 = arith.constant 0 : i32
    %c0_i32_0 = arith.constant 0 : i32
    %c0_i32_1 = arith.constant 0 : i32
    return %c0_i32, %c0_i32_0 : i32, i32
  }
  func.func @transform_25(%arg0: i32) -> (i32, i32) {
    %c0_i32 = arith.constant 0 : i32
    %c0_i32_0 = arith.constant 0 : i32
    %c0_i32_1 = arith.constant 0 : i32
    return %c0_i32, %c0_i32_0 : i32, i32
  }
  func.func @transform_26(%arg0: i32) -> (i32, i32) {
    %c0_i32 = arith.constant 0 : i32
    %c0_i32_0 = arith.constant 0 : i32
    %c0_i32_1 = arith.constant 0 : i32
    return %c0_i32, %c0_i32_0 : i32, i32
  }
  func.func @transform_27(%arg0: i32) -> (i32, i32, i32) {
    %c0_i32 = arith.constant 0 : i32
    %c0_i32_0 = arith.constant 0 : i32
    %c0_i32_1 = arith.constant 0 : i32
    return %arg0, %c0_i32, %c0_i32_0 : i32, i32, i32
  }
  func.func @transform_28(%arg0: i32) -> (i32, i32, i32) {
    %c0_i32 = arith.constant 0 : i32
    %c0_i32_0 = arith.constant 0 : i32
    %c0_i32_1 = arith.constant 0 : i32
    return %arg0, %c0_i32, %c0_i32_0 : i32, i32, i32
  }
}

</mosaic_0001>

<bundles_post_ra>
// kernel: seed_decoder_forward.3
= control target key start
LH: loop header
LB: loop body
LE: loop exit
PB: predicated region body
PF: predicated region fallthrough
CT: control target
= control target key end

     0   :  { %s4745_s0 = inlined_call_operand.vmem [shape: f32[2,8,32], index: 0, kind: input, shape index: {}]   ;;  %s4746_s1 = inlined_call_operand.vmem [shape: f32[2,8,32], index: 1, kind: input, shape index: {}]   ;;  %s4747_s2 = inlined_call_operand.vmem [shape: f32[2,16,32], index: 2, kind: input, shape index: {}]   ;;  %s4748_s3 = inlined_call_operand.vmem [shape: f32[32,64], index: 3, kind: input, shape index: {}]   ;;  %s4749_s4 = inlined_call_operand.vmem [shape: f32[1,64], index: 4, kind: input, shape index: {}]   ;;  %s4750_s5 = inlined_call_operand.vmem [shape: f32[32,32], index: 5, kind: input, shape index: {}]   ;;  %s4751_s6 = inlined_call_operand.vmem [shape: f32[1,32], index: 6, kind: input, shape index: {}]   ;;  %s4752_s7 = inlined_call_operand.vmem [shape: f32[32,32], index: 7, kind: input, shape index: {}]   ;;  %s4753_s8 = inlined_call_operand.vmem [shape: f32[1,32], index: 8, kind: input, shape index: {}]   ;;  %s4754_s9 = inlined_call_operand.vmem [shape: f32[1,32], index: 9, kind: input, shape index: {}]   ;;  %s4755_s10 = inlined_call_operand.vmem [shape: f32[1,32], index: 10, kind: input, shape index: {}]   ;;  %s4756_s11 = inlined_call_operand.vmem [shape: f32[32,32], index: 11, kind: input, shape index: {}]   ;;  %s4757_s12 = inlined_call_operand.vmem [shape: f32[1,32], index: 12, kind: input, shape index: {}]   ;;  %s4758_s13 = inlined_call_operand.vmem [shape: f32[32,64], index: 13, kind: input, shape index: {}]   ;;  %s4759_s14 = inlined_call_operand.vmem [shape: f32[1,64], index: 14, kind: input, shape index: {}]   ;;  %s4760_s15 = inlined_call_operand.vmem [shape: f32[32,32], index: 15, kind: input, shape index: {}]   ;;  %s4761_s16 = inlined_call_operand.vmem [shape: f32[1,32], index: 16, kind: input, shape index: {}]   ;;  %s4762_s17 = inlined_call_operand.vmem [shape: f32[1,32], index: 17, kind: input, shape index: {}]   ;;  %s4763_s18 = inlined_call_operand.vmem [shape: f32[1,32], index: 18, kind: input, shape index: {}]   ;;  %s4764_s19 = inlined_call_operand.vmem [shape: f32[32,64], index: 19, kind: input, shape index: {}]   ;;  %s4765_s20 = inlined_call_operand.vmem [shape: f32[1,64], index: 20, kind: input, shape index: {}]   ;;  %s4766_s21 = inlined_call_operand.vmem [shape: f32[64,32], index: 21, kind: input, shape index: {}]   ;;  %s4767_s22 = inlined_call_operand.vmem [shape: f32[1,32], index: 22, kind: input, shape index: {}]   ;;  %s4768_s23 = inlined_call_operand.vmem [shape: f32[1,32], index: 23, kind: input, shape index: {}]   ;;  %s4769_s24 = inlined_call_operand.vmem [shape: f32[1,32], index: 24, kind: input, shape index: {}]   ;;  %s4770_s25 = inlined_call_operand.vmem [shape: f32[32,128], index: 25, kind: input, shape index: {}]   ;;  %s4771_s26 = inlined_call_operand.vmem [shape: f32[1,128], index: 26, kind: input, shape index: {}]   ;;  %s4772_s27 = inlined_call_operand.vmem [shape: f32[2,8,32], index: 27, kind: output, shape index: {0}]   ;;  %s4773_s28 = inlined_call_operand.vmem [shape: f32[2,8,128], index: 28, kind: output, shape index: {1}]  }
   0x1   :  { %4794 = sst [smem:[#allocation2_spill]] %s4745_s0 }
   0x2   :  { %4795 = sst [smem:[#allocation3_spill]] %s4746_s1 }
   0x3   :  { %4796 = sst [smem:[#allocation4_spill]] %s4747_s2 }
   0x4   :  { %4797 = sst [smem:[#allocation5_spill]] %s4748_s3 }
   0x5   :  { %4798 = sst [smem:[#allocation6_spill]] %s4749_s4 }
   0x6   :  { %4799 = sst [smem:[#allocation7_spill]] %s4750_s5 }
   0x7   :  { %4800 = sst [smem:[#allocation8_spill]] %s4751_s6 }
   0x8   :  { %4801 = sst [smem:[#allocation9_spill]] %s4752_s7 }
   0x9   :  { %4802 = sst [smem:[#allocation10_spill]] %s4753_s8  ;;  %s4270_s8 = smov 0  }
   0xa   :  { %4803 = sst [smem:[#allocation11_spill]] %s4754_s9 }
   0xb   :  { %4804 = sst [smem:[#allocation12_spill]] %s4755_s10 }
   0xc   :  { %4805 = sst [smem:[#allocation13_spill]] %s4756_s11 }
   0xd   :  { %4806 = sst [smem:[#allocation14_spill]] %s4757_s12 }
   0xe LB: > { %s3663_s5 = sadd.s32 4294967295, %s4114_s8   ;;  %p3667_p0 = scmp.ge.s32.totalorder %s4114_s8, 1  ;;  %s4114_s8 = sphi %s4270_s8, %s39_s8  }
   0xf   : > { %p783_p1 = scmp.lt.s32.totalorder %s4114_s8, 3 }
  0x11   : > { %p784_p2 = pnand %p3667_p0, %p783_p1 }
  0x12   : > { %s4807_s3 = sld [smem:[#allocation5_spill]] (!%p784_p2)  ;;  %p868_p3 = scmp.lt.s32.totalorder (!%p784_p2), %s3663_s5, 1 }
  0x13   : > { %787 = sbr.rel (%p784_p2) target bundleno = 6494 (0x195e), region = 128  ;;  %s4808_s4 = sld [smem:[#allocation2_spill]] (!%p784_p2) }
  0x14   : > { %s4809_s10 = sld [smem:[#allocation3_spill]] (!%p784_p2)  ;;  %s4788_s6 = smov (!%p784_p2), 120  }
  0x15   : > { %s4810_s7 = sld [smem:[#allocation7_spill]] (!%p784_p2)  ;;  %s4780_s11 = smov (!%p784_p2), 80  }
  0x16   : > { %s4811_s30 = sld [smem:[#allocation6_spill]] (!%p784_p2)  ;;  %s4784_s2 = smov (!%p784_p2), 112  }
  0x17   : > { %s4782_s12 = smov (!%p784_p2), 104   ;;  %s4778_s1 = smov (!%p784_p2), 72  }
  0x18   : > { %v897_v0 = vld [vmem:[%s4807_s3 + $0x18] sm:$0xff]  ;;  %v4116_v1 = vmov 0.0   ;;  %v896_v2 = vld [vmem:[%s4807_s3 + $0x10] sm:$0xff]  ;;  %vm4117_vm0 = vmmov 0   ;;  %s4828_s5 = smov (!%p868_p3, %s3663_s5), 1  ;;  %v895_v3 = vld [vmem:[%s4807_s3 + $0x8] sm:$0xff] }
  0x19   : > { %3832 = vmatprep.subr.mxu0 %v4116_v1  ;;  %3840 = vmatprep.mubr.msk.f32.mxu0 %vm4117_vm0, %v4116_v1  ;;  %s4297_s29 = sshll.u32 %s4828_s5, 3  ;;  %v894_v4 = vld [vmem:[%s4807_s3] sm:$0xff]  ;;  %vm905_vm1 = vcmask 261120   ;;  %vm1070_vm2 = vcmask 64512   ;;  %s4815_s3 = sld [smem:[#allocation4_spill]]  ;;  %vm2323_vm3 = vcmask 130048  }
  0x1a   : > { %3833 = vmatpush3.msra.mxu0 %v897_v0  ;;  %3843 = vmatprep.subr.mxu1 %v4116_v1  ;;  %s871_s9 = scalar_lea.vmem %s4808_s4, %s4297_s29  ;;  %s875_s0 = scalar_lea.vmem %s4809_s10, %s4297_s29  ;;  %vm3365_vm4 = vcmask 523264  }
  0x1b   : > { %3834 = vmatprep.subr.mxu0 %v4116_v1  ;;  %3851 = vmatprep.mubr.msk.f32.mxu1 %vm4117_vm0, %v4116_v1  ;;  %v4311_v5 = vld [vmem:[%s871_s9] sm:$0xff]  ;;  %v982_v8 = vld [vmem:[%s4810_s7 + $0x18] sm:$0xff]  ;;  %v981_v9 = vld [vmem:[%s4810_s7 + $0x10] sm:$0xff]  ;;  %s4790_s10 = smov 96   ;;  %s4813_s4 = sld [smem:[#allocation9_spill]] }
  0x1c   : > { %3835 = vmatpush3.msra.mxu0 %v896_v2  ;;  %v4313_v6 = vld [vmem:[%s875_s0] sm:$0xff]  ;;  %3844 = vmatpush3.msra.mxu1 %v982_v8  ;;  %s4786_s0 = smov 88   ;;  %v980_v17 = vld [vmem:[%s4810_s7 + $0x8] sm:$0xff]  ;;  %s4826_s9 = smov 72  }
  0x1d   : > { %3836 = vmatprep.subr.mxu0 %v4116_v1  ;;  %v893_v7 = vadd.f32 %v4313_v6, %v4311_v5  ;;  %v3674_v10 = vld [vmem:[%s4811_s30] ss:$0 sm:$0xff]  ;;  %3845 = vmatprep.subr.mxu1 %v4116_v1  ;;  %s4812_s30 = sld [smem:[#allocation8_spill]] }
  0x1e   : > { %3837 = vmatpush3.msra.mxu0 %v895_v3  ;;  %3846 = vmatpush3.msra.mxu1 %v981_v9  ;;  %v979_v18 = vld [vmem:[%s4810_s7] sm:$0xff] }
  0x1f   : > { %3838 = vmatprep.subr.mxu0 %v4116_v1  ;;  %3847 = vmatprep.subr.mxu1 %v4116_v1 }
  0x20   : > { %3839 = vmatpush3.msra.mxu0 %v894_v4  ;;  %3848 = vmatpush3.msra.mxu1 %v980_v17 }
  0x21   : > { %3841 = vmatmul.mubr.msk.f32.vlgmr.msra.gmra.mxu0 %vm905_vm1, %v893_v7  ;;  %3854 = vmatprep.subr.mxu0 %v4116_v1  ;;  %v1063_v48 = vld [vmem:[%s4813_s4] sm:$0xff]  ;;  %v1064_v49 = vld [vmem:[%s4813_s4 + $0x8] sm:$0xff] }
  0x22   : > { %3856 = vmatprep.mubr.msk.f32.mxu0 %vm4117_vm0, %v4116_v1  ;;  %3849 = vmatprep.subr.mxu1 %v4116_v1 }
  0x23   : > { %3850 = vmatpush3.msra.mxu1 %v979_v18  ;;  %v3676_v27 = vld [vmem:[%s4812_s30] ss:$0 sm:$0xff] }
  0x24   : > { %3852 = vmatmul.mubr.msk.f32.vlgmr.msra.gmra.mxu1 %vm905_vm1, %v4311_v5  ;;  %3859 = vmatprep.subr.mxu1 %v4116_v1 }
  0x25   : > { %3861 = vmatprep.mubr.msk.f32.mxu1 %vm4117_vm0, %v4116_v1 }
  0xe1   : > { %v975_v11 = vpop.f32.mrf.mxu0 }
  0xe2   : > { %v4332_v12 = vadd.f32 %v3674_v10, %v975_v11 }
  0xe3   : > { %v3842_v13 = vpop.f32.mrf.mxu0 }
  0xe4   : > { %1230 = vrot.lane.b32.xlu1 %v4332_v12, %s4788_s6  ;;  %1068 = vrot.lane.b32.xlu0 %v4332_v12, %s4790_s10  ;;  %v1059_v28 = vpop.f32.mrf.mxu1  ;;  %s4816_s10 = sld [smem:[#allocation13_spill]] }
  0xe5   : > { %v4369_v29 = vadd.f32 %v3676_v27, %v1059_v28  ;;  %v1066_v27 = vld [vmem:[%s4813_s4 + $0x18] sm:$0xff] }
  0xe6   : > { %v3853_v30 = vpop.f32.mrf.mxu1 }
  0xe7   : > { %3860 = vmatpush3.msra.mxu1 %v4369_v29 }
  0xe8   : > { %1232 = vrot.lane.b32.xlu0 %v4332_v12, %s4786_s0  ;;  %3869 = vmatprep.subr.mxu1 %v4116_v1  ;;  %s3735_s0 = sshll.u32 %s4828_s5, 4 }
 0x156   : > { %v1069_v14 = vpop.permute.xlu0 %1068  ;;  %v1231_v16 = vpop.permute.xlu1 %1230 }
 0x157   : > { %3855 = vmatpush3.xpose.msk.msra.mxu0 %vm1070_vm2, %v1069_v14 }
 0x158   : > { %3864 = vmatprep.subr.mxu0 %v4116_v1 }
 0x15a   : > { %3857 = vmatmul.mubr.msk.f32.vlgmr.msra.gmra.mxu0 %vm1070_vm2, %v4332_v12  ;;  %v1233_v15 = vpop.permute.xlu0 %1232 }
 0x15b   : > { %3865 = vmatpush3.xpose.msk.msra.mxu0 %vm1070_vm2, %v1233_v15  ;;  %3866 = vmatprep.mubr.msk.f32.mxu0 %vm4117_vm0, %v4116_v1 }
 0x15c   : > { %3874 = vmatprep.subr.mxu0 %v4116_v1 }
 0x15e   : > { %3867 = vmatmul.mubr.msk.f32.vlgmr.msra.gmra.mxu0 %vm1070_vm2, %v1231_v16 }
 0x15f   : > { %3876 = vmatprep.mubr.msk.f32.mxu0 %vm4117_vm0, %v4116_v1  ;;  %3875 = vmatpush3.msra.mxu0 %v1064_v49  ;;  %v2150_v49 = vld [vmem:[%s4758_s13 + $0x18] sm:$0xff] }
 0x160   : > { %3884 = vmatprep.subr.mxu0 %v4116_v1 }
 0x21a   : > { %v1141_v19 = vpop.f32.mrf.mxu0 }
 0x21b   : > { %v1145_v20 = vmul.f32 0.35355338, %v1141_v19 }
 0x21c   : > { %v3858_v21 = vpop.f32.mrf.mxu0 }
 0x21d   : > { %v1146_v22 = vsel %vm1070_vm2, %v1145_v20, -inf }
 0x21e   : > { %1147 = vmax.xlane.f32.xlu1 %v1146_v22  ;;  %v1304_v23 = vpop.f32.mrf.mxu0 }
 0x21f   : > { %v1308_v24 = vmul.f32 0.35355338, %v1304_v23 }
 0x220   : > { %v3868_v25 = vpop.f32.mrf.mxu0 }
 0x221   : > { %v1309_v26 = vsel %vm1070_vm2, %v1308_v24, -inf }
 0x222   : > { %1310 = vmax.xlane.f32.xlu0 %v1309_v26 }
 0x2a7   : > { %v1148_v31 = vpop.xlane.xlu1 %1147 }
 0x2a8   : > { %v1149_v32 = vsub.f32 %v1145_v20, %v1148_v31 }
 0x2aa   : > { %v1150_v33 = vmul.f32 1.442695, %v1149_v32 }
 0x2ab   : > { %v1311_v34 = vpop.xlane.xlu0 %1310 }
 0x2ac   : > { %4070 = vpow2.f32 %v1150_v33  ;;  %v1312_v35 = vsub.f32 %v1308_v24, %v1311_v34 }
 0x2ae   : > { %v1313_v36 = vmul.f32 1.442695, %v1312_v35 }
 0x2b0   : > { %4072 = vpow2.f32 %v1313_v36 }
 0x2b9   : > { %v4071_v37 = vpop.eup %4070 }
 0x2ba   : > { %v1152_v38 = vsel %vm1070_vm2, %v4071_v37, 0.0 }
 0x2bb   : > { %1153 = vadd.xlane.f32.xlu0 %v1152_v38 }
 0x2bd   : > { %v4073_v39 = vpop.eup %4072 }
 0x2be   : > { %v1315_v40 = vsel %vm1070_vm2, %v4073_v39, 0.0 }
 0x2bf   : > { %1316 = vadd.xlane.f32.xlu1 %v1315_v40 }
 0x2d0   : > { %1545 = vrot.lane.b32.xlu1 %v4332_v12, %s4780_s11  ;;  %s4821_s11 = sld [smem:[#allocation14_spill]] }
 0x2d1   : > { %1321 = vrot.lane.b32.xlu0 %v4369_v29, %s4788_s6  ;;  %s4822_s6 = smov 88  }
 0x2d4   : > { %1543 = vrot.lane.b32.xlu1 %v4332_v12, %s4784_s2 }
 0x344   : > { %v1154_v41 = vpop.xlane.xlu0 %1153 }
 0x345   : > { %4074 = vrcp.f32 %v1154_v41 }
 0x348   : > { %v1317_v42 = vpop.xlane.xlu1 %1316  ;;  %v1322_v45 = vpop.permute.xlu0 %1321 }
 0x349   : > { %4076 = vrcp.f32 %v1317_v42 }
 0x34c   : > { %v1546_v51 = vpop.permute.xlu1 %1545 }
 0x350   : > { %v1544_v55 = vpop.permute.xlu1 %1543 }
 0x352   : > { %v4075_v43 = vpop.eup %4074 }
 0x353   : > { %v1156_v44 = vmul.f32 %v4075_v43, %v4071_v37 }
 0x355   : > { %3862 = vmatmul.mubr.msk.f32.vlgmr.msra.gmra.mxu1 %vm1070_vm2, %v1156_v44 }
 0x356   : > { %v4077_v46 = vpop.eup %4076  ;;  %3870 = vmatpush3.msra.mxu1 %v1322_v45  ;;  %3871 = vmatprep.mubr.msk.f32.mxu1 %vm4117_vm0, %v4116_v1 }
 0x357   : > { %v1319_v47 = vmul.f32 %v4077_v46, %v4073_v39  ;;  %3879 = vmatprep.subr.mxu1 %v4116_v1 }
 0x359   : > { %3872 = vmatmul.mubr.msk.f32.vlgmr.msra.gmra.mxu1 %vm1070_vm2, %v1319_v47 }
 0x35a   : > { %3881 = vmatprep.mubr.msk.f32.mxu1 %vm4117_vm0, %v4116_v1  ;;  %3880 = vmatpush3.msra.mxu1 %v1063_v48 }
 0x35b   : > { %3889 = vmatprep.subr.mxu1 %v4116_v1 }
 0x415   : > { %v1226_v50 = vpop.f32.mrf.mxu1 }
 0x416   : > { %3882 = vmatmul.mubr.msk.f32.vlgmr.msra.gmra.mxu1 %vm1070_vm2, %v1226_v50  ;;  %v2148_v50 = vld [vmem:[%s4758_s13 + $0x8] sm:$0xff] }
 0x417   : > { %v3863_v52 = vpop.f32.mrf.mxu1  ;;  %3891 = vmatprep.mubr.msk.f32.mxu1 %vm4117_vm0, %v4116_v1 }
 0x419   : > { %v1393_v53 = vpop.f32.mrf.mxu1 }
 0x41a   : > { %3877 = vmatmul.mubr.msk.f32.vlgmr.msra.gmra.mxu0 %vm1070_vm2, %v1393_v53 }
 0x41b   : > { %3885 = vmatpush3.xpose.msk.msra.mxu0 %vm1070_vm2, %v1546_v51  ;;  %v3873_v54 = vpop.f32.mrf.mxu1  ;;  %3886 = vmatprep.mubr.msk.f32.mxu0 %vm4117_vm0, %v4116_v1  ;;  %v2147_v51 = vld [vmem:[%s4758_s13] sm:$0xff] }
 0x41c   : > { %3894 = vmatprep.subr.mxu0 %v4116_v1  ;;  %v2066_v54 = vld [vmem:[%s4816_s10 + $0x18] sm:$0xff] }
 0x41e   : > { %3887 = vmatmul.mubr.msk.f32.vlgmr.msra.gmra.mxu0 %vm1070_vm2, %v1544_v55  ;;  %v2065_v55 = vld [vmem:[%s4816_s10 + $0x10] sm:$0xff] }
 0x41f   : > { %3896 = vmatprep.mubr.msk.f32.mxu0 %vm4117_vm0, %v4116_v1 }
 0x4d6   : > { %v1539_v56 = vpop.f32.mrf.mxu1 }
 0x4d8   : > { %v3883_v57 = vpop.f32.mrf.mxu1 }
 0x4d9   : > { %v2063_v57 = vld [vmem:[%s4816_s10] sm:$0xff] }
 0x4da   : > { %v1466_v58 = vpop.f32.mrf.mxu0 }
 0x4db   : > { %v1540_v59 = vadd.f32 %v1539_v56, %v1466_v58  ;;  %v2064_v56 = vld [vmem:[%s4816_s10 + $0x8] sm:$0xff] }
 0x4dc   : > { %v3878_v60 = vpop.f32.mrf.mxu0 }
 0x4de   : > { %v1617_v61 = vpop.f32.mrf.mxu0 }
 0x4df   : > { %v1621_v62 = vmul.f32 0.35355338, %v1617_v61 }
 0x4e0   : > { %v3888_v63 = vpop.f32.mrf.mxu0 }
 0x4e1   : > { %v1622_v0 = vsel %vm1070_vm2, %v1621_v62, -inf }
 0x4e2   : > { %1623 = vmax.xlane.f32.xlu0 %v1622_v0 }
 0x4f8   : > { %1633 = vrot.lane.b32.xlu0 %v4369_v29, %s4784_s2  ;;  %s4818_s2 = sld [smem:[#allocation12_spill]] }
 0x4fc   : > { %1783 = vrot.lane.b32.xlu0 %v4332_v12, %s4782_s12 }
 0x4fe   : > { %v3696_v0 = vld [vmem:[%s4818_s2] ss:$0 sm:$0xff]  ;;  %s4823_s2 = smov 112  }
 0x56b   : > { %v1624_v2 = vpop.xlane.xlu0 %1623 }
 0x56c   : > { %v1625_v3 = vsub.f32 %v1621_v62, %v1624_v2 }
 0x56e   : > { %v1626_v4 = vmul.f32 1.442695, %v1625_v3 }
 0x56f   : > { %v1634_v7 = vpop.permute.xlu0 %1633 }
 0x570   : > { %4078 = vpow2.f32 %v1626_v4  ;;  %3890 = vmatpush3.msra.mxu1 %v1634_v7 }
 0x571   : > { %3899 = vmatprep.subr.mxu1 %v4116_v1 }
 0x573   : > { %v1784_v15 = vpop.permute.xlu0 %1783 }
 0x57d   : > { %v4079_v8 = vpop.eup %4078 }
 0x57e   : > { %v1628_v9 = vsel %vm1070_vm2, %v4079_v8, 0.0 }
 0x57f   : > { %1629 = vadd.xlane.f32.xlu1 %v1628_v9 }
 0x590   : > { %1785 = vrot.lane.b32.xlu1 %v4332_v12, %s4778_s1  ;;  %v1065_v12 = vld [vmem:[%s4813_s4 + $0x10] sm:$0xff]  ;;  %s4814_s1 = sld [smem:[#allocation10_spill]]  ;;  %s880_s4 = scalar_lea.vmem %s4815_s3, %s3735_s0 }
 0x591   : > { %3895 = vmatpush3.msra.mxu0 %v1065_v12  ;;  %v891_v52 = vld [vmem:[%s880_s4] sm:$0xff]  ;;  %v892_v53 = vld [vmem:[%s880_s4 + $0x8] sm:$0xff]  ;;  %s4819_s0 = smov 96   ;;  %s4820_s4 = smov 120  }
 0x592   : > { %3904 = vmatprep.subr.mxu0 %v4116_v1 }
 0x596   : > { %v3694_v38 = vld [vmem:[%s4814_s1] ss:$0 sm:$0xff]  ;;  %s4824_s1 = smov 104  }
 0x608   : > { %v1630_v10 = vpop.xlane.xlu1 %1629 }
 0x609   : > { %4080 = vrcp.f32 %v1630_v10 }
 0x60c   : > { %v1786_v14 = vpop.permute.xlu1 %1785 }
 0x616   : > { %v4081_v11 = vpop.eup %4080 }
 0x617   : > { %v1632_v13 = vmul.f32 %v4081_v11, %v4079_v8  ;;  %v3699_v8 = vld [vmem:[%s4759_s14] ss:$0 sm:$0xff] }
 0x619   : > { %3892 = vmatmul.mubr.msk.f32.vlgmr.msra.gmra.mxu1 %vm1070_vm2, %v1632_v13 }
 0x61a   : > { %3900 = vmatpush3.xpose.msk.msra.mxu1 %vm1070_vm2, %v1786_v14  ;;  %3901 = vmatprep.mubr.msk.f32.mxu1 %vm4117_vm0, %v4116_v1 }
 0x61b   : > { %3909 = vmatprep.subr.mxu1 %v4116_v1 }
 0x61d   : > { %3902 = vmatmul.mubr.msk.f32.vlgmr.msra.gmra.mxu1 %vm1070_vm2, %v1784_v15 }
 0x61e   : > { %3911 = vmatprep.mubr.msk.f32.mxu1 %vm4117_vm0, %v4116_v1  ;;  %3910 = vmatpush3.msra.mxu1 %v1066_v27 }
 0x61f   : > { %3925 = vmatprep.subr.mxu1 %v2150_v49 }
 0x6d9   : > { %v1705_v16 = vpop.f32.mrf.mxu1 }
 0x6da   : > { %3897 = vmatmul.mubr.msk.f32.vlgmr.msra.gmra.mxu0 %vm1070_vm2, %v1705_v16 }
 0x6db   : > { %v3893_v17 = vpop.f32.mrf.mxu1  ;;  %3906 = vmatprep.mubr.msk.f32.mxu0 %vm4117_vm0, %v4116_v1 }
 0x6dd   : > { %v1857_v18 = vpop.f32.mrf.mxu1 }
 0x6de   : > { %v1861_v19 = vmul.f32 0.35355338, %v1857_v18 }
 0x6df   : > { %v3903_v20 = vpop.f32.mrf.mxu1 }
 0x6e0   : > { %v1862_v21 = vsel %vm1070_vm2, %v1861_v19, -inf }
 0x6e1   : > { %1863 = vmax.xlane.f32.xlu1 %v1862_v21 }
 0x76a   : > { %v1864_v22 = vpop.xlane.xlu1 %1863 }
 0x76b   : > { %v1865_v23 = vsub.f32 %v1861_v19, %v1864_v22 }
 0x76d   : > { %v1866_v24 = vmul.f32 1.442695, %v1865_v23 }
 0x76f   : > { %4082 = vpow2.f32 %v1866_v24 }
 0x77c   : > { %v4083_v25 = vpop.eup %4082 }
 0x77d   : > { %v1868_v26 = vsel %vm1070_vm2, %v4083_v25, 0.0 }
 0x77e   : > { %1869 = vadd.xlane.f32.xlu0 %v1868_v26 }
 0x794   : > { %1873 = vrot.lane.b32.xlu0 %v4369_v29, %s4782_s12  ;;  %s4817_s12 = sld [smem:[#allocation11_spill]] }
 0x79a   : > { %v1778_v28 = vpop.f32.mrf.mxu0  ;;  %v3695_v62 = vld [vmem:[%s4817_s12] ss:$0 sm:$0xff]  ;;  %s888_s12 = scalar_lea.vmem %s4773_s28, %s4297_s29 }
 0x79b   : > { %v1782_v30 = vadd.f32 %v1778_v28, %v1540_v59 }
 0x79c   : > { %v3898_v31 = vpop.f32.mrf.mxu0 }
 0x807   : > { %v1870_v32 = vpop.xlane.xlu0 %1869 }
 0x808   : > { %4084 = vrcp.f32 %v1870_v32 }
 0x80b   : > { %v1874_v33 = vpop.permute.xlu0 %1873 }
 0x80c   : > { %3905 = vmatpush3.msra.mxu0 %v1874_v33  ;;  %v2239_v33 = vld [vmem:[%s4760_s15] sm:$0xff] }
 0x80d   : > { %3914 = vmatprep.subr.mxu0 %v4116_v1 }
 0x815   : > { %v4085_v34 = vpop.eup %4084 }
 0x816   : > { %v1872_v35 = vmul.f32 %v4085_v34, %v4083_v25 }
 0x818   : > { %3907 = vmatmul.mubr.msk.f32.vlgmr.msra.gmra.mxu0 %vm1070_vm2, %v1872_v35 }
 0x819   : > { %3922 = vmatprep.mubr.msk.f32.mxu0 %vm4117_vm0, %v4116_v1  ;;  %3915 = vmatpush3.msra.mxu0 %v2066_v54 }
 0x81a   : > { %3916 = vmatprep.subr.mxu0 %v4116_v1 }
 0x81b   : > { %3917 = vmatpush3.msra.mxu0 %v2065_v55 }
 0x81c   : > { %3918 = vmatprep.subr.mxu0 %v4116_v1 }
 0x81d   : > { %3919 = vmatpush3.msra.mxu0 %v2064_v56 }
 0x81e   : > { %3920 = vmatprep.subr.mxu0 %v4116_v1 }
 0x81f   : > { %3921 = vmatpush3.msra.mxu0 %v2063_v57 }
 0x820   : > { %3936 = vmatprep.subr.mxu0 %v4116_v1 }
 0x8d8   : > { %v1945_v29 = vpop.f32.mrf.mxu0 }
 0x8d9   : > { %3912 = vmatmul.mubr.msk.f32.vlgmr.msra.gmra.mxu1 %vm1070_vm2, %v1945_v29 }
 0x8da   : > { %v3908_v36 = vpop.f32.mrf.mxu0  ;;  %3926 = vmatpush3.msra.mxu1 %v2150_v49  ;;  %3933 = vmatprep.mubr.msk.f32.mxu1 %vm905_vm1, %v891_v52 }
 0x999   : > { %v2018_v37 = vpop.f32.mrf.mxu1 }
 0x99a   : > { %v2022_v39 = vadd.f32 %v2018_v37, %v1782_v30 }
 0x99b   : > { %v3913_v40 = vpop.f32.mrf.mxu1 }
 0x99c   : > { %v2030_v41 = vadd.f32 %v3694_v38, %v2022_v39 }
 0x99e   : > { %v2031_v42 = vadd.f32 %v2030_v41, %v4311_v5  ;;  %v2149_v5 = vld [vmem:[%s4758_s13 + $0x10] sm:$0xff] }
 0x99f   : > { %3927 = vmatprep.subr.mxu1 %v2149_v5 }
 0x9a0   : > { %v2032_v43 = vsel %vm905_vm1, %v2031_v42, 0.0  ;;  %3928 = vmatpush3.msra.mxu1 %v2149_v5 }
 0x9a1   : > { %2033 = vadd.xlane.f32.xlu1 %v2032_v43  ;;  %3929 = vmatprep.subr.mxu1 %v2148_v50 }
 0x9a2   : > { %3930 = vmatpush3.msra.mxu1 %v2148_v50  ;;  %v2240_v50 = vld [vmem:[%s4760_s15 + $0x8] sm:$0xff] }
 0x9a3   : > { %3931 = vmatprep.subr.mxu1 %v2147_v51 }
 0x9a4   : > { %3932 = vmatpush3.msra.mxu1 %v2147_v51 }
 0x9a5   : > { %3934 = vmatmul.mubr.msk.f32.vlgmr.msra.gmra.mxu1 %vm905_vm1, %v892_v53  ;;  %3943 = vmatprep.subr.mxu1 %v4116_v1 }
 0x9a6   : > { %3947 = vmatprep.mubr.msk.f32.mxu1 %vm4117_vm0, %v4116_v1 }
 0xa2a   : > { %v2034_v44 = vpop.xlane.xlu1 %2033 }
 0xa2b   : > { %v2036_v45 = vmul.f32 0.03125, %v2034_v44 }
 0xa2d   : > { %v2037_v46 = vsub.f32 %v2031_v42, %v2036_v45 }
 0xa2f   : > { %v2038_v47 = vmul.f32 %v2037_v46, %v2037_v46 }
 0xa31   : > { %v2039_v48 = vsel %vm905_vm1, %v2038_v47, 0.0 }
 0xa32   : > { %2040 = vadd.xlane.f32.xlu1 %v2039_v48 }
 0xa65   : > { %v3935_v7 = vpop.f32.mrf.mxu1 }
 0xa66   : > { %v4502_v9 = vadd.f32 %v3935_v7, %v3699_v8 }
 0xa67   : > { %v2230_v10 = vpop.f32.mrf.mxu1 }
 0xa68   : > { %v4504_v11 = vadd.f32 %v3699_v8, %v2230_v10 }
 0xa6a   : > { %2335 = vrot.lane.b32.xlu0 %v4504_v11, %s4819_s0 }
 0xa6e   : > { %2418 = vrot.lane.b32.xlu0 %v4502_v9, %s4820_s4 }
 0xa72   : > { %2416 = vrot.lane.b32.xlu0 %v4504_v11, %s4820_s4 }
 0xabb   : > { %v2041_v58 = vpop.xlane.xlu1 %2040 }
 0xabc   : > { %v2042_v59 = vmul.f32 0.03125, %v2041_v58 }
 0xabe   : > { %v2043_v60 = vadd.f32 1e-05, %v2042_v59 }
 0xac0   : > { %4086 = vrsqrt.f32 %v2043_v60 }
 0xacd   : > { %v4087_v61 = vpop.eup %4086 }
 0xace   : > { %v2045_v63 = vmul.f32 %v4087_v61, %v2037_v46 }
 0xad0   : > { %v2053_v2 = vmul.f32 %v3695_v62, %v2045_v63 }
 0xad2   : > { %v4492_v3 = vadd.f32 %v3696_v0, %v2053_v2 }
 0xad4   : > { %v2062_v4 = vadd.f32 %v4492_v3, %v4313_v6  ;;  %v3697_v6 = vld [vmem:[%s4821_s11] ss:$0 sm:$0xff] }
 0xad6   : > { %3923 = vmatmul.mubr.msk.f32.vlgmr.msra.gmra.mxu0 %vm905_vm1, %v2062_v4 }
 0xad7   : > { %3940 = vmatprep.mubr.msk.f32.mxu0 %vm4117_vm0, %v4116_v1  ;;  %3937 = vmatpush3.xpose.msk.msra.mxu0 %vm1070_vm2, %v4502_v9 }
 0xad8   : > { %3938 = vmatprep.subr.mxu0 %v4116_v1 }
 0xadb   : > { %3939 = vmatpush3.xpose.msk.msra.mxu0 %vm1070_vm2, %v4504_v11 }
 0xadc   : > { %3957 = vmatprep.subr.mxu0 %v4116_v1  ;;  %v2336_v26 = vpop.permute.xlu0 %2335 }
 0xae0   : > { %v2419_v28 = vpop.permute.xlu0 %2418 }
 0xae4   : > { %v2417_v31 = vpop.permute.xlu0 %2416 }
 0xb96   : > { %v2143_v13 = vpop.f32.mrf.mxu0 }
 0xb97   : > { %v4521_v14 = vadd.f32 %v3697_v6, %v2143_v13 }
 0xb98   : > { %v3924_v15 = vpop.f32.mrf.mxu0 }
 0xb99   : > { %2414 = vrot.lane.b32.xlu0 %v4521_v14, %s4820_s4  ;;  %3941 = vmatmul.mubr.msk.f32.vlgmr.msra.gmra.mxu0 %vm1070_vm2, %v4521_v14  ;;  %s4825_s4 = smov 80  }
 0xb9a   : > { %3961 = vmatprep.mubr.msk.f32.mxu0 %vm4117_vm0, %v4116_v1 }
 0xc0b   : > { %v2415_v32 = vpop.permute.xlu0 %2414 }
 0xc59   : > { %v2318_v12 = vpop.f32.mrf.mxu0 }
 0xc5a   : > { %v2322_v16 = vmul.f32 0.35355338, %v2318_v12 }
 0xc5b   : > { %v3942_v17 = vpop.f32.mrf.mxu0 }
 0xc5c   : > { %v2324_v18 = vsel %vm2323_vm3, %v2322_v16, -inf }
 0xc5d   : > { %2325 = vmax.xlane.f32.xlu1 %v2324_v18 }
 0xce6   : > { %v2326_v19 = vpop.xlane.xlu1 %2325 }
 0xce7   : > { %v2327_v20 = vsub.f32 %v2322_v16, %v2326_v19 }
 0xce9   : > { %v2328_v21 = vmul.f32 1.442695, %v2327_v20 }
 0xceb   : > { %4088 = vpow2.f32 %v2328_v21 }
 0xcf8   : > { %v4089_v22 = vpop.eup %4088 }
 0xcf9   : > { %v2330_v23 = vsel %vm2323_vm3, %v4089_v22, 0.0 }
 0xcfa   : > { %2331 = vadd.xlane.f32.xlu1 %v2330_v23 }
 0xd0b   : > { %2337 = vrot.lane.b32.xlu1 %v4502_v9, %s4819_s0  ;;  %s884_s0 = scalar_lea.vmem %s4772_s27, %s4297_s29 }
 0xd83   : > { %v2332_v24 = vpop.xlane.xlu1 %2331 }
 0xd84   : > { %4090 = vrcp.f32 %v2332_v24  ;;  %v2241_v24 = vld [vmem:[%s4760_s15 + $0x10] sm:$0xff] }
 0xd87   : > { %v2338_v25 = vpop.permute.xlu1 %2337 }
 0xd88   : > { %3944 = vmatpush3.msra.mxu1 %v2338_v25 }
 0xd89   : > { %3945 = vmatprep.subr.mxu1 %v4116_v1 }
 0xd8a   : > { %3946 = vmatpush3.msra.mxu1 %v2336_v26 }
 0xd8b   : > { %3950 = vmatprep.subr.mxu1 %v4116_v1 }
 0xd91   : > { %v4091_v27 = vpop.eup %4090 }
 0xd92   : > { %v2334_v30 = vmul.f32 %v4091_v27, %v4089_v22 }
 0xd94   : > { %3948 = vmatmul.mubr.msk.f32.vlgmr.msra.gmra.mxu1 %vm2323_vm3, %v2334_v30 }
 0xd95   : > { %3951 = vmatpush3.xpose.msk.msra.mxu1 %vm1070_vm2, %v2419_v28  ;;  %3954 = vmatprep.mubr.msk.f32.mxu1 %vm4117_vm0, %v4116_v1 }
 0xd96   : > { %3952 = vmatprep.subr.mxu1 %v4116_v1 }
 0xd99   : > { %3953 = vmatpush3.xpose.msk.msra.mxu1 %vm1070_vm2, %v2417_v31 }
 0xd9a   : > { %3969 = vmatprep.subr.mxu1 %v4116_v1 }
 0xd9c   : > { %3955 = vmatmul.mubr.msk.f32.vlgmr.msra.gmra.mxu1 %vm1070_vm2, %v2415_v32  ;;  %v2242_v32 = vld [vmem:[%s4760_s15 + $0x18] sm:$0xff] }
 0xd9d   : > { %3971 = vmatprep.mubr.msk.f32.mxu1 %vm4117_vm0, %v4116_v1  ;;  %3970 = vmatpush3.msra.mxu1 %v2239_v33 }
 0xd9e   : > { %3981 = vmatprep.subr.mxu1 %v4116_v1 }
 0xe54   : > { %v2410_v34 = vpop.f32.mrf.mxu1 }
 0xe55   : > { %3972 = vmatmul.mubr.msk.f32.vlgmr.msra.gmra.mxu1 %vm1070_vm2, %v2410_v34 }
 0xe56   : > { %v3949_v35 = vpop.f32.mrf.mxu1  ;;  %3985 = vmatprep.mubr.msk.f32.mxu1 %vm4117_vm0, %v4116_v1 }
 0xe5c   : > { %v2492_v29 = vpop.f32.mrf.mxu1 }
 0xe5d   : > { %v2496_v36 = vmul.f32 0.35355338, %v2492_v29 }
 0xe5e   : > { %v3956_v37 = vpop.f32.mrf.mxu1 }
 0xe5f   : > { %v2497_v38 = vsel %vm2323_vm3, %v2496_v36, -inf }
 0xe60   : > { %2498 = vmax.xlane.f32.xlu1 %v2497_v38 }
 0xe71   : > { %2508 = vrot.lane.b32.xlu1 %v4504_v11, %s4822_s6 }
 0xe75   : > { %2737 = vrot.lane.b32.xlu1 %v4502_v9, %s4823_s2 }
 0xe79   : > { %2733 = vrot.lane.b32.xlu1 %v4521_v14, %s4823_s2 }
 0xe7d   : > { %2982 = vrot.lane.b32.xlu1 %v4504_v11, %s4824_s1 }
 0xee9   : > { %v2499_v39 = vpop.xlane.xlu1 %2498 }
 0xeea   : > { %v2500_v40 = vsub.f32 %v2496_v36, %v2499_v39  ;;  %v3722_v39 = vld [vmem:[%s4761_s16] ss:$0 sm:$0xff] }
 0xeec   : > { %v2501_v41 = vmul.f32 1.442695, %v2500_v40 }
 0xeed   : > { %v2509_v48 = vpop.permute.xlu1 %2508 }
 0xeee   : > { %4092 = vpow2.f32 %v2501_v41 }
 0xef1   : > { %v2738_v52 = vpop.permute.xlu1 %2737 }
 0xef5   : > { %v2734_v55 = vpop.permute.xlu1 %2733 }
 0xef9   : > { %v2983_v57 = vpop.permute.xlu1 %2982 }
 0xefb   : > { %v4093_v42 = vpop.eup %4092 }
 0xefc   : > { %v2503_v43 = vsel %vm2323_vm3, %v4093_v42, 0.0 }
 0xefd   : > { %2504 = vadd.xlane.f32.xlu0 %v2503_v43 }
 0xf13   : > { %2510 = vrot.lane.b32.xlu0 %v4502_v9, %s4822_s6 }
 0xf15   : > { %v4564_v44 = vpop.f32.mrf.mxu1 }
 0xf17   : > { %2735 = vrot.lane.b32.xlu0 %v4504_v11, %s4823_s2  ;;  %v3973_v45 = vpop.f32.mrf.mxu1 }
 0xf1b   : > { %2984 = vrot.lane.b32.xlu0 %v4502_v9, %s4824_s1 }
 0xf1f   : > { %2980 = vrot.lane.b32.xlu0 %v4521_v14, %s4824_s1 }
 0xf86   : > { %v2505_v46 = vpop.xlane.xlu0 %2504 }
 0xf87   : > { %4094 = vrcp.f32 %v2505_v46 }
 0xf8a   : > { %v2511_v47 = vpop.permute.xlu0 %2510 }
 0xf8b   : > { %3958 = vmatpush3.msra.mxu0 %v2511_v47 }
 0xf8c   : > { %3959 = vmatprep.subr.mxu0 %v4116_v1 }
 0xf8d   : > { %3960 = vmatpush3.msra.mxu0 %v2509_v48 }
 0xf8e   : > { %3964 = vmatprep.subr.mxu0 %v4116_v1  ;;  %v2736_v54 = vpop.permute.xlu0 %2735 }
 0xf92   : > { %v2985_v56 = vpop.permute.xlu0 %2984 }
 0xf94   : > { %v4095_v49 = vpop.eup %4094 }
 0xf95   : > { %v2507_v5 = vmul.f32 %v4095_v49, %v4093_v42 }
 0xf96   : > { %v2981_v58 = vpop.permute.xlu0 %2980 }
 0xf97   : > { %3962 = vmatmul.mubr.msk.f32.vlgmr.msra.gmra.mxu0 %vm2323_vm3, %v2507_v5  ;;  %v3268_v5 = vld [vmem:[%s4764_s19 + $0x18] sm:$0xff] }
 0xf98   : > { %3965 = vmatpush3.msra.mxu0 %v2240_v50  ;;  %3966 = vmatprep.mubr.msk.f32.mxu0 %vm4117_vm0, %v4116_v1  ;;  %v3267_v50 = vld [vmem:[%s4764_s19 + $0x10] sm:$0xff] }
 0xf99   : > { %3974 = vmatprep.subr.mxu0 %v4116_v1 }
0x1057   : > { %v2583_v51 = vpop.f32.mrf.mxu0 }
0x1058   : > { %3967 = vmatmul.mubr.msk.f32.vlgmr.msra.gmra.mxu0 %vm1070_vm2, %v2583_v51  ;;  %v3265_v51 = vld [vmem:[%s4764_s19] sm:$0xff] }
0x1059   : > { %3975 = vmatpush3.xpose.msk.msra.mxu0 %vm1070_vm2, %v2738_v52  ;;  %v3963_v53 = vpop.f32.mrf.mxu0  ;;  %3978 = vmatprep.mubr.msk.f32.mxu0 %vm4117_vm0, %v4116_v1  ;;  %v3357_v52 = vld [vmem:[%s4766_s21 + $0x38] sm:$0xff] }
0x105a   : > { %3976 = vmatprep.subr.mxu0 %v4116_v1  ;;  %v3356_v53 = vld [vmem:[%s4766_s21 + $0x30] sm:$0xff] }
0x105d   : > { %3977 = vmatpush3.xpose.msk.msra.mxu0 %vm1070_vm2, %v2736_v54  ;;  %v3355_v54 = vld [vmem:[%s4766_s21 + $0x28] sm:$0xff] }
0x105e   : > { %3993 = vmatprep.subr.mxu0 %v4116_v1 }
0x1060   : > { %3979 = vmatmul.mubr.msk.f32.vlgmr.msra.gmra.mxu0 %vm1070_vm2, %v2734_v55  ;;  %v3354_v55 = vld [vmem:[%s4766_s21 + $0x20] sm:$0xff] }
0x1061   : > { %3994 = vmatpush3.xpose.msk.msra.mxu0 %vm1070_vm2, %v2985_v56  ;;  %3997 = vmatprep.mubr.msk.f32.mxu0 %vm4117_vm0, %v4116_v1  ;;  %v3353_v56 = vld [vmem:[%s4766_s21 + $0x18] sm:$0xff] }
0x1062   : > { %3995 = vmatprep.subr.mxu0 %v4116_v1 }
0x1065   : > { %3996 = vmatpush3.xpose.msk.msra.mxu0 %vm1070_vm2, %v2983_v57 }
0x1066   : > { %4012 = vmatprep.subr.mxu0 %v4116_v1 }
0x1068   : > { %3998 = vmatmul.mubr.msk.f32.vlgmr.msra.gmra.mxu0 %vm1070_vm2, %v2981_v58 }
0x1069   : > { %4020 = vmatprep.mubr.msk.f32.mxu0 %vm4117_vm0, %v4116_v1  ;;  %4013 = vmatpush3.msra.mxu0 %v3268_v5 }
0x106a   : > { %4014 = vmatprep.subr.mxu0 %v4116_v1 }
0x106b   : > { %4015 = vmatpush3.msra.mxu0 %v3267_v50 }
0x106c   : > { %4016 = vmatprep.subr.mxu0 %v4116_v1 }
0x1118   : > { %v4598_v59 = vpop.f32.mrf.mxu0 }
0x1119   : > { %v2730_v33 = vadd.f32 %v4564_v44, %v4598_v59 }
0x111a   : > { %v3968_v60 = vpop.f32.mrf.mxu0 }
0x1120   : > { %v2811_v61 = vpop.f32.mrf.mxu0 }
0x1121   : > { %v2815_v62 = vmul.f32 0.35355338, %v2811_v61  ;;  %v3723_v61 = vld [vmem:[%s4762_s17] ss:$0 sm:$0xff] }
0x1122   : > { %v3980_v63 = vpop.f32.mrf.mxu0 }
0x1123   : > { %v2816_v0 = vsel %vm2323_vm3, %v2815_v62, -inf  ;;  %v3724_v63 = vld [vmem:[%s4763_s18] ss:$0 sm:$0xff] }
0x1124   : > { %2817 = vmax.xlane.f32.xlu1 %v2816_v0 }
0x1128   : > { %v3058_v2 = vpop.f32.mrf.mxu0 }
0x1129   : > { %v3062_v7 = vmul.f32 0.35355338, %v3058_v2 }
0x112a   : > { %v3999_v4 = vpop.f32.mrf.mxu0 }
0x112b   : > { %v3063_v8 = vsel %vm2323_vm3, %v3062_v7, -inf  ;;  %v3352_v4 = vld [vmem:[%s4766_s21 + $0x10] sm:$0xff] }
0x1135   : > { %2827 = vrot.lane.b32.xlu1 %v4504_v11, %s4825_s4 }
0x1159   : > { %3064 = vmax.xlane.f32.xlu1 %v3063_v8  ;;  %v3350_v8 = vld [vmem:[%s4766_s21] sm:$0xff] }
0x116a   : > { %3074 = vrot.lane.b32.xlu1 %v4504_v11, %s4826_s9 }
0x11ad   : > { %v2818_v10 = vpop.xlane.xlu1 %2817 }
0x11ae   : > { %v2819_v6 = vsub.f32 %v2815_v62, %v2818_v10  ;;  %v3725_v10 = vld [vmem:[%s4765_s20] ss:$0 sm:$0xff] }
0x11b0   : > { %v2820_v13 = vmul.f32 1.442695, %v2819_v6 }
0x11b1   : > { %v2828_v12 = vpop.permute.xlu1 %2827 }
0x11b2   : > { %4096 = vpow2.f32 %v2820_v13 }
0x11bf   : > { %v4097_v14 = vpop.eup %4096 }
0x11c0   : > { %v2822_v15 = vsel %vm2323_vm3, %v4097_v14, 0.0 }
0x11c1   : > { %2823 = vadd.xlane.f32.xlu0 %v2822_v15 }
0x11d7   : > { %2829 = vrot.lane.b32.xlu0 %v4502_v9, %s4825_s4 }
0x11e2   : > { %v3065_v16 = vpop.xlane.xlu1 %3064 }
0x11e3   : > { %v3066_v17 = vsub.f32 %v3062_v7, %v3065_v16  ;;  %v3351_v7 = vld [vmem:[%s4766_s21 + $0x8] sm:$0xff] }
0x11e5   : > { %v3067_v18 = vmul.f32 1.442695, %v3066_v17 }
0x11e6   : > { %v3075_v30 = vpop.permute.xlu1 %3074 }
0x11e7   : > { %4098 = vpow2.f32 %v3067_v18 }
0x11f4   : > { %v4099_v19 = vpop.eup %4098 }
0x11f5   : > { %v3069_v20 = vsel %vm2323_vm3, %v4099_v19, 0.0 }
0x11f6   : > { %3070 = vadd.xlane.f32.xlu0 %v3069_v20 }
0x120c   : > { %3076 = vrot.lane.b32.xlu0 %v4502_v9, %s4826_s9 }
0x124a   : > { %v2824_v11 = vpop.xlane.xlu0 %2823 }
0x124b   : > { %4100 = vrcp.f32 %v2824_v11 }
0x124e   : > { %v2830_v21 = vpop.permute.xlu0 %2829 }
0x124f   : > { %3982 = vmatpush3.msra.mxu1 %v2830_v21 }
0x1250   : > { %3983 = vmatprep.subr.mxu1 %v4116_v1 }
0x1251   : > { %3984 = vmatpush3.msra.mxu1 %v2828_v12  ;;  %v3727_v12 = vld [vmem:[%s4767_s22] ss:$0 sm:$0xff] }
0x1252   : > { %3988 = vmatprep.subr.mxu1 %v4116_v1 }
0x1258   : > { %v4101_v22 = vpop.eup %4100 }
0x1259   : > { %v2826_v23 = vmul.f32 %v4101_v22, %v4097_v14 }
0x125b   : > { %3986 = vmatmul.mubr.msk.f32.vlgmr.msra.gmra.mxu1 %vm2323_vm3, %v2826_v23 }
0x125c   : > { %3989 = vmatpush3.msra.mxu1 %v2241_v24  ;;  %3990 = vmatprep.mubr.msk.f32.mxu1 %vm4117_vm0, %v4116_v1 }
0x125d   : > { %4000 = vmatprep.subr.mxu1 %v4116_v1 }
0x127f   : > { %v3071_v9 = vpop.xlane.xlu0 %3070 }
0x1280   : > { %4102 = vrcp.f32 %v3071_v9  ;;  %v3473_v9 = vld [vmem:[%s4770_s25 + $0x18] sm:$0xff] }
0x1283   : > { %v3077_v27 = vpop.permute.xlu0 %3076 }
0x128d   : > { %v4103_v25 = vpop.eup %4102 }
0x128e   : > { %v3073_v31 = vmul.f32 %v4103_v25, %v4099_v19  ;;  %v3472_v25 = vld [vmem:[%s4770_s25 + $0x10] sm:$0xff] }
0x131b   : > { %v2902_v26 = vpop.f32.mrf.mxu1 }
0x131c   : > { %3991 = vmatmul.mubr.msk.f32.vlgmr.msra.gmra.mxu1 %vm1070_vm2, %v2902_v26  ;;  %v3471_v26 = vld [vmem:[%s4770_s25 + $0x8] sm:$0xff] }
0x131d   : > { %4001 = vmatpush3.msra.mxu1 %v3077_v27  ;;  %v3987_v28 = vpop.f32.mrf.mxu1  ;;  %4004 = vmatprep.mubr.msk.f32.mxu1 %vm4117_vm0, %v4116_v1  ;;  %v3470_v27 = vld [vmem:[%s4770_s25] sm:$0xff] }
0x131e   : > { %4002 = vmatprep.subr.mxu1 %v4116_v1 }
0x131f   : > { %4003 = vmatpush3.msra.mxu1 %v3075_v30 }
0x1320   : > { %4005 = vmatmul.mubr.msk.f32.vlgmr.msra.gmra.mxu1 %vm2323_vm3, %v3073_v31  ;;  %4007 = vmatprep.subr.mxu1 %v4116_v1 }
0x1321   : > { %4009 = vmatprep.mubr.msk.f32.mxu1 %vm4117_vm0, %v4116_v1  ;;  %4008 = vmatpush3.msra.mxu1 %v2242_v32 }
0x1322   : > { %4023 = vmatprep.subr.mxu1 %v4116_v1 }
0x13dc   : > { %v2975_v34 = vpop.f32.mrf.mxu1 }
0x13dd   : > { %v2979_v35 = vadd.f32 %v2975_v34, %v2730_v33  ;;  %v3729_v33 = vld [vmem:[%s4768_s23] ss:$0 sm:$0xff] }
0x13de   : > { %v3992_v29 = vpop.f32.mrf.mxu1 }
0x13e0   : > { %v3149_v36 = vpop.f32.mrf.mxu1 }
0x13e1   : > { %4010 = vmatmul.mubr.msk.f32.vlgmr.msra.gmra.mxu1 %vm1070_vm2, %v3149_v36  ;;  %v3731_v36 = vld [vmem:[%s4771_s26] ss:$0 sm:$0xff] }
0x13e2   : > { %v4006_v37 = vpop.f32.mrf.mxu1  ;;  %4039 = vmatprep.mubr.msk.f32.mxu1 %vm4117_vm0, %v4116_v1  ;;  %4024 = vmatpush3.msra.mxu1 %v3357_v52 }
0x13e3   : > { %4025 = vmatprep.subr.mxu1 %v4116_v1 }
0x13e4   : > { %4026 = vmatpush3.msra.mxu1 %v3356_v53 }
0x13e5   : > { %4027 = vmatprep.subr.mxu1 %v4116_v1 }
0x13e6   : > { %4028 = vmatpush3.msra.mxu1 %v3355_v54 }
0x13e7   : > { %4029 = vmatprep.subr.mxu1 %v4116_v1 }
0x13e8   : > { %4030 = vmatpush3.msra.mxu1 %v3354_v55 }
0x13e9   : > { %4031 = vmatprep.subr.mxu1 %v4116_v1 }
0x13ea   : > { %4032 = vmatpush3.msra.mxu1 %v3353_v56 }
0x13eb   : > { %4033 = vmatprep.subr.mxu1 %v4116_v1 }
0x13ec   : > { %4034 = vmatpush3.msra.mxu1 %v3352_v4 }
0x13ed   : > { %4035 = vmatprep.subr.mxu1 %v4116_v1 }
0x13ee   : > { %4036 = vmatpush3.msra.mxu1 %v3351_v7 }
0x13ef   : > { %4037 = vmatprep.subr.mxu1 %v4116_v1 }
0x13f0   : > { %4038 = vmatpush3.msra.mxu1 %v3350_v8 }
0x14a1   : > { %v3222_v38 = vpop.f32.mrf.mxu1 }
0x14a2   : > { %v3226_v40 = vadd.f32 %v3222_v38, %v2979_v35  ;;  %v3730_v35 = vld [vmem:[%s4769_s24] ss:$0 sm:$0xff] }
0x14a3   : > { %v4011_v41 = vpop.f32.mrf.mxu1 }
0x14a4   : > { %v3234_v42 = vadd.f32 %v3722_v39, %v3226_v40 }
0x14a6   : > { %v3235_v43 = vadd.f32 %v3234_v42, %v4492_v3  ;;  %v3266_v3 = vld [vmem:[%s4764_s19 + $0x8] sm:$0xff] }
0x14a7   : > { %4017 = vmatpush3.msra.mxu0 %v3266_v3 }
0x14a8   : > { %v3236_v44 = vsel %vm905_vm1, %v3235_v43, 0.0  ;;  %4018 = vmatprep.subr.mxu0 %v4116_v1 }
0x14a9   : > { %3237 = vadd.xlane.f32.xlu1 %v3236_v44  ;;  %4019 = vmatpush3.msra.mxu0 %v3265_v51 }
0x14aa   : > { %4042 = vmatprep.subr.mxu0 %v4116_v1 }
0x1532   : > { %v3238_v45 = vpop.xlane.xlu1 %3237 }
0x1533   : > { %v3239_v46 = vmul.f32 0.03125, %v3238_v45 }
0x1535   : > { %v3240_v47 = vsub.f32 %v3235_v43, %v3239_v46 }
0x1537   : > { %v3241_v48 = vmul.f32 %v3240_v47, %v3240_v47 }
0x1539   : > { %v3242_v49 = vsel %vm905_vm1, %v3241_v48, 0.0 }
0x153a   : > { %3243 = vadd.xlane.f32.xlu0 %v3242_v49 }
0x15c3   : > { %v3244_v57 = vpop.xlane.xlu0 %3243 }
0x15c4   : > { %v3245_v58 = vmul.f32 0.03125, %v3244_v57 }
0x15c6   : > { %v3246_v59 = vadd.f32 1e-05, %v3245_v58 }
0x15c8   : > { %4104 = vrsqrt.f32 %v3246_v59 }
0x15d5   : > { %v4105_v60 = vpop.eup %4104 }
0x15d6   : > { %v3248_v62 = vmul.f32 %v4105_v60, %v3240_v47 }
0x15d8   : > { %v3256_v0 = vmul.f32 %v3723_v61, %v3248_v62 }
0x15da   : > { %v3264_v2 = vadd.f32 %v3724_v63, %v3256_v0 }
0x15dc   : > { %4021 = vmatmul.mubr.msk.f32.vlgmr.msra.gmra.mxu0 %vm905_vm1, %v3264_v2 }
0x15dd   : > { %4050 = vmatprep.mubr.msk.f32.mxu0 %vm4117_vm0, %v4116_v1  ;;  %4043 = vmatpush3.msra.mxu0 %v3473_v9 }
0x15de   : > { %4044 = vmatprep.subr.mxu0 %v4116_v1 }
0x15df   : > { %4045 = vmatpush3.msra.mxu0 %v3472_v25 }
0x15e0   : > { %4046 = vmatprep.subr.mxu0 %v4116_v1 }
0x15e1   : > { %4047 = vmatpush3.msra.mxu0 %v3471_v26 }
0x15e2   : > { %4048 = vmatprep.subr.mxu0 %v4116_v1 }
0x15e3   : > { %4049 = vmatpush3.msra.mxu0 %v3470_v27 }
0x169c   : > { %v3345_v6 = vpop.f32.mrf.mxu0 }
0x169d   : > { %v3346_v13 = vadd.f32 %v3725_v10, %v3345_v6 }
0x169e   : > { %v4022_v14 = vpop.f32.mrf.mxu0 }
0x169f   : > { %v3349_v15 = vmax.f32 %v3346_v13, 0.0 }
0x16a1   : > { %4040 = vmatmul.mubr.msk.f32.vlgmr.msra.gmra.mxu1 %vm3365_vm4, %v3349_v15 }
0x1761   : > { %v3435_v16 = vpop.f32.mrf.mxu1 }
0x1762   : > { %v3436_v17 = vadd.f32 %v3727_v12, %v3435_v16 }
0x1763   : > { %v4041_v18 = vpop.f32.mrf.mxu1 }
0x1764   : > { %v3439_v19 = vadd.f32 %v3436_v17, %v3264_v2 }
0x1766   : > { %v3440_v20 = vsel %vm905_vm1, %v3439_v19, 0.0 }
0x1767   : > { %3441 = vadd.xlane.f32.xlu0 %v3440_v20 }
0x17f0   : > { %v3442_v11 = vpop.xlane.xlu0 %3441 }
0x17f1   : > { %v3443_v21 = vmul.f32 0.03125, %v3442_v11 }
0x17f3   : > { %v3444_v22 = vsub.f32 %v3439_v19, %v3443_v21 }
0x17f5   : > { %v3445_v23 = vmul.f32 %v3444_v22, %v3444_v22 }
0x17f7   : > { %v3446_v24 = vsel %vm905_vm1, %v3445_v23, 0.0 }
0x17f8   : > { %3447 = vadd.xlane.f32.xlu1 %v3446_v24 }
0x1881   : > { %v3448_v28 = vpop.xlane.xlu1 %3447 }
0x1882   : > { %v3449_v30 = vmul.f32 0.03125, %v3448_v28 }
0x1884   : > { %v3450_v31 = vadd.f32 1e-05, %v3449_v30 }
0x1886   : > { %4106 = vrsqrt.f32 %v3450_v31 }
0x1893   : > { %v4107_v32 = vpop.eup %4106 }
0x1894   : > { %v3452_v34 = vmul.f32 %v4107_v32, %v3444_v22 }
0x1896   : > { %v3460_v29 = vmul.f32 %v3729_v33, %v3452_v34 }
0x1898   : > { %v3468_v1 = vadd.f32 %v3730_v35, %v3460_v29 }
0x189a   : > { %3469 = vst.msk [vmem:[%s884_s0] sm:$0xff] %vm905_vm1, %v3468_v1  ;;  %4051 = vmatmul.mubr.msk.f32.vlgmr.msra.gmra.mxu0 %vm905_vm1, %v3468_v1 }
0x195a   : > { %v3550_v37 = vpop.f32.mrf.mxu0 }
0x195b   : > { %v3551_v38 = vadd.f32 %v3731_v36, %v3550_v37 }
0x195c   : > { %v4052_v39 = vpop.f32.mrf.mxu0 }
0x195d   : > { %3554 = vst [vmem:[%s888_s12] sm:$0xff] %v3551_v38 }
0x195e PF: > { %s39_s8 = sadd.s32 1, %s4114_s8  }
0x195f   : > { %p36_p4 = scmp.ge.s32.totalorder %s39_s8, 4  }
0x1961   :  { %38 = sbr.rel (!%p36_p4) target bundleno = 14 (0xe), region = 176 }

// kernel: seed_decoder_forward.2
= control target key start
LH: loop header
LB: loop body
LE: loop exit
PB: predicated region body
PF: predicated region fallthrough
CT: control target
= control target key end

     0   :  { %s6022_s0 = inlined_call_operand.vmem [shape: f32[2,8,32], index: 0, kind: input, shape index: {}]   ;;  %s6023_s1 = inlined_call_operand.vmem [shape: f32[2,8,32], index: 1, kind: input, shape index: {}]   ;;  %s6024_s2 = inlined_call_operand.vmem [shape: f32[2,16,32], index: 2, kind: input, shape index: {}]   ;;  %s6025_s3 = inlined_call_operand.vmem [shape: f32[32,64], index: 3, kind: input, shape index: {}]   ;;  %s6026_s4 = inlined_call_operand.vmem [shape: f32[1,64], index: 4, kind: input, shape index: {}]   ;;  %s6027_s5 = inlined_call_operand.vmem [shape: f32[32,32], index: 5, kind: input, shape index: {}]   ;;  %s6028_s6 = inlined_call_operand.vmem [shape: f32[1,32], index: 6, kind: input, shape index: {}]   ;;  %s6029_s7 = inlined_call_operand.hbm [shape: f32[32,32], index: 7, kind: input, shape index: {}]   ;;  %s6030_s8 = inlined_call_operand.vmem [shape: f32[1,32], index: 8, kind: input, shape index: {}]   ;;  %s6031_s9 = inlined_call_operand.hbm [shape: f32[1,32], index: 9, kind: input, shape index: {}]   ;;  %s6032_s10 = inlined_call_operand.hbm [shape: f32[1,32], index: 10, kind: input, shape index: {}]   ;;  %s6033_s11 = inlined_call_operand.hbm [shape: f32[32,32], index: 11, kind: input, shape index: {}]   ;;  %s6034_s12 = inlined_call_operand.hbm [shape: f32[1,32], index: 12, kind: input, shape index: {}]   ;;  %s6035_s13 = inlined_call_operand.hbm [shape: f32[32,64], index: 13, kind: input, shape index: {}]   ;;  %s6036_s14 = inlined_call_operand.hbm [shape: f32[1,64], index: 14, kind: input, shape index: {}]   ;;  %s6037_s15 = inlined_call_operand.hbm [shape: f32[32,32], index: 15, kind: input, shape index: {}]   ;;  %s6038_s16 = inlined_call_operand.hbm [shape: f32[1,32], index: 16, kind: input, shape index: {}]   ;;  %s6039_s17 = inlined_call_operand.hbm [shape: f32[1,32], index: 17, kind: input, shape index: {}]   ;;  %s6040_s18 = inlined_call_operand.hbm [shape: f32[1,32], index: 18, kind: input, shape index: {}]   ;;  %s6041_s19 = inlined_call_operand.hbm [shape: f32[32,64], index: 19, kind: input, shape index: {}]   ;;  %s6042_s20 = inlined_call_operand.hbm [shape: f32[1,64], index: 20, kind: input, shape index: {}]   ;;  %s6043_s21 = inlined_call_operand.vmem [shape: f32[64,32], index: 21, kind: input, shape index: {}]   ;;  %s6044_s22 = inlined_call_operand.hbm [shape: f32[1,32], index: 22, kind: input, shape index: {}]   ;;  %s6045_s23 = inlined_call_operand.hbm [shape: f32[1,32], index: 23, kind: input, shape index: {}]   ;;  %s6046_s24 = inlined_call_operand.hbm [shape: f32[1,32], index: 24, kind: input, shape index: {}]   ;;  %s6047_s25 = inlined_call_operand.hbm [shape: f32[32,128], index: 25, kind: input, shape index: {}]   ;;  %s6048_s26 = inlined_call_operand.hbm [shape: f32[1,128], index: 26, kind: input, shape index: {}]   ;;  %s6049_s27 = inlined_call_operand.vmem [shape: f32[2,8,32], index: 27, kind: output, shape index: {0}]   ;;  %s6050_s28 = inlined_call_operand.vmem [shape: f32[2,8,128], index: 28, kind: output, shape index: {1}]  }
   0x1   :  { %6058 = sst [smem:[#allocation40_spill]] %s6022_s0 }
   0x2   :  { %6059 = sst [smem:[#allocation41_spill]] %s6023_s1 }
   0x3   :  { %6060 = sst [smem:[#allocation42_spill]] %s6024_s2 }
   0x4   :  { %6061 = sst [smem:[#allocation43_spill]] %s6025_s3 }
   0x5   :  { %6062 = sst [smem:[#allocation44_spill]] %s6026_s4 }
   0x6   :  { %6063 = sst [smem:[#allocation45_spill]] %s6027_s5 }
   0x7   :  { %6064 = sst [smem:[#allocation46_spill]] %s6028_s6 }
   0x8   :  { %6065 = sst [smem:[#allocation47_spill]] %s6029_s7 }
   0x9   :  { %6066 = sst [smem:[#allocation48_spill]] %s6030_s8 }
   0xa   :  { %6067 = sst [smem:[#allocation49_spill]] %s6031_s9 }
   0xb   :  { %6068 = sst [smem:[#allocation50_spill]] %s6032_s10 }
   0xc   :  { %6069 = sst [smem:[#allocation51_spill]] %s6033_s11 }
   0xd   :  { %6070 = sst [smem:[#allocation52_spill]] %s6034_s12 }
   0xe   :  { %6071 = sst [smem:[#allocation53_spill]] %s6035_s13 }
   0xf   :  { %6072 = sst [smem:[#allocation54_spill]] %s6037_s15 }
  0x10   :  { %34 = vsyncpa [#allocation3], 0 }
  0x11   :  { %35 = vsyncpa [#allocation5], 0 }
  0x12   :  { %36 = vsyncpa [#allocation8], 0 }
  0x13   :  { %37 = vsyncpa [#allocation11], 0 }
  0x14   :  { %38 = vsyncpa [#allocation14], 0 }
  0x15   :  { %39 = vsyncpa [#allocation17], 0 }
  0x16   :  { %40 = vsyncpa [#allocation20], 0 }
  0x17   :  { %41 = vsyncpa [#allocation23], 0 }
  0x18   :  { %42 = vsyncpa [#allocation26], 0 }
  0x19   :  { %43 = vsyncpa [#allocation29], 0  ;;  %s5429_s8 = smov 0  }
  0x1a LB: > { %s5255_s5 = smov [#allocation4]   ;;  %s5435_s30 = sadd.s32 4294967295, %s5253_s8   ;;  %s5253_s8 = sphi %s5429_s8, %s49_s8  }
  0x1b   : > { %s729_s9 = sshll.u32 %s5255_s5, 4  ;;  %p4077_p0 = scmp.ge.s32.totalorder %s5253_s8, 1  ;;  %s730_s9 = int_to_ptr.vmem [resolvable:$true] %s729_s9 }
  0x1c   : > { %p688_p1 = scmp.lt.s32.totalorder %s5253_s8, 3  ;;  %p6053_p2 = scmp.eq.s32.totalorder %s5435_s30, 0 }
  0x1d   : > { %s5256_s6 = smov [#allocation7]   ;;  %s5257_s11 = smov [#allocation10]  }
  0x1e   : > { %p5440_p3 = pnand %p4077_p0, %p688_p1  ;;  %s750_s10 = sshll.u32 %s5256_s6, 4  ;;  %s5446_s10 = int_to_ptr.vmem [resolvable:$true] %s750_s10 }
  0x1f   : > { %s774_s29 = sshll.u32 %s5257_s11, 4  ;;  %s5258_s2 = smov [#allocation13]   ;;  %s5454_s29 = int_to_ptr.vmem [resolvable:$true] %s774_s29 }
  0x20   : > { %s6073_s3 = scalar_select %p5440_p3, 1, 0 }
  0x21   : > { %p4573_p4 = pneg %p5440_p3  ;;  %s5456_s7 = sshll.u32 %s5258_s2, 4  ;;  %s799_s7 = int_to_ptr.vmem [resolvable:$true] %s5456_s7 }
  0x22   : > { %s4750_s1 = scalar_lea.vmem %s730_s9, 16  ;;  %s4757_s4 = scalar_lea.vmem %s730_s9, 32 }
  0x23   : > { %p5450_p5 = pnand %p6053_p2, %p4573_p4  ;;  %p4751_p7 = scmp.ne.s32.totalorder %s730_s9, %s4750_s1 }
  0x24   : > { %p4758_p10 = scmp.lt.s32.totalorder %s730_s9, %s730_s9  ;;  %p4759_p11 = scmp.lt.s32.totalorder %s4757_s4, %s4750_s1 }
  0x25   : > { %p5460_p6 = pneg %p5450_p5 }
  0x26   : > { %p4760_p12 = por %p4759_p11, %p4758_p10 }
  0x27   : > { %p4753_p8 = pnand %p4751_p7, %p5460_p6 }
  0x29   : > { %p4754_p9 = pneg %p4753_p8 }
  0x2b   : > { %p4761_p13 = pnand %p4760_p12, %p4754_p9 }
  0x2d   : > { %4764 = shalt.err (!%p4761_p13)
}
  0x2e   : > { %s6076_s11 = sld [smem:[#allocation49_spill]]  ;;  %s4776_s2 = scalar_lea.vmem %s5446_s10, 512 }
  0x2f   : > { %p4777_p0 = scmp.ne.s32.totalorder %s5446_s10, %s4776_s2  ;;  %p4784_p7 = scmp.lt.s32.totalorder %s5446_s10, %s5446_s10 }
  0x30   : > { %p4785_p8 = scmp.lt.s32.totalorder %s4776_s2, %s4776_s2 }
  0x31   : > { %p4779_p1 = pnand %p4777_p0, %p5460_p6 }
  0x32   : > { %p4786_p9 = por %p4785_p8, %p4784_p7 }
  0x33   : > { %p4780_p4 = pneg %p4779_p1 }
  0x34   : > { %4579 = dma.hbm_to_vmem [thread:$0]  (!%p5450_p5), %s6076_s11, 16, %s730_s9, [#allocation5]  }
  0x35   : > { %p4787_p10 = pnand %p4786_p9, %p4780_p4 }
  0x37   : > { %4790 = shalt.err (!%p4787_p10)
}
  0x38   : > { %s6055_s1 = smov 128   ;;  %s6057_s4 = smov 8  }
  0x39   : > { %s6077_s6 = sld [smem:[#allocation51_spill]]  ;;  %s4802_s11 = scalar_lea.vmem %s5454_s29, 512 }
  0x3a   : > { %p4803_p11 = scmp.ne.s32.totalorder %s5454_s29, %s4802_s11  ;;  %p4810_p0 = scmp.lt.s32.totalorder %s5454_s29, %s5454_s29 }
  0x3b   : > { %p4811_p1 = scmp.lt.s32.totalorder %s4802_s11, %s4802_s11 }
  0x3c   : > { %p4805_p12 = pnand %p4803_p11, %p5460_p6 }
  0x3d   : > { %p4812_p4 = por %p4811_p1, %p4810_p0 }
  0x3e   : > { %p4806_p13 = pneg %p4805_p12 }
  0x3f   : > { %4585 = dma.hbm_to_vmem [thread:$0]  (!%p5450_p5), %s6077_s6, 512, %s5446_s10, [#allocation8], %s6055_s1, %s6055_s1, %s6057_s4  }
  0x40   : > { %p4813_p7 = pnand %p4812_p4, %p4806_p13 }
  0x42   : > { %4816 = shalt.err (!%p4813_p7)
}
  0x43   : > { %s6078_s13 = sld [smem:[#allocation53_spill]]  ;;  %s4828_s10 = scalar_lea.vmem %s799_s7, 512 }
  0x44   : > { %p4829_p8 = scmp.ne.s32.totalorder %s799_s7, %s4828_s10  ;;  %p4836_p11 = scmp.lt.s32.totalorder %s799_s7, %s799_s7 }
  0x45   : > { %p4837_p12 = scmp.lt.s32.totalorder %s4828_s10, %s4828_s10 }
  0x46   : > { %p4831_p9 = pnand %p4829_p8, %p5460_p6 }
  0x47   : > { %p4838_p13 = por %p4837_p12, %p4836_p11 }
  0x48   : > { %p4832_p10 = pneg %p4831_p9 }
  0x49   : > { %4591 = dma.hbm_to_vmem [thread:$0]  (!%p5450_p5), %s6078_s13, 512, %s5454_s29, [#allocation11], %s6055_s1, %s6055_s1, %s6057_s4  }
  0x4a   : > { %p4839_p0 = pnand %p4838_p13, %p4832_p10 }
  0x4c   : > { %4842 = shalt.err (!%p4839_p0)
}
  0x4d   : > { %s6079_s15 = sld [smem:[#allocation54_spill]]  ;;  %s5261_s29 = smov [#allocation16]  }
  0x4e   : > { %s823_s11 = sshll.u32 %s5261_s29, 4  ;;  %s5262_s2 = smov [#allocation19]   ;;  %s824_s11 = int_to_ptr.vmem [resolvable:$true] %s823_s11 }
  0x4f   : > { %s844_s9 = sshll.u32 %s5262_s2, 4  ;;  %s4854_s13 = scalar_lea.vmem %s824_s11, 16  ;;  %s845_s9 = int_to_ptr.vmem [resolvable:$true] %s844_s9 }
  0x50   : > { %p4855_p1 = scmp.ne.s32.totalorder %s824_s11, %s4854_s13  ;;  %s4861_s10 = scalar_lea.vmem %s824_s11, 32 }
  0x51   : > { %p4862_p8 = scmp.lt.s32.totalorder %s824_s11, %s824_s11  ;;  %p4863_p9 = scmp.lt.s32.totalorder %s4861_s10, %s4854_s13 }
  0x52   : > { %p4857_p4 = pnand %p4855_p1, %p5460_p6 }
  0x53   : > { %4597 = dma.hbm_to_vmem [thread:$0]  (!%p5450_p5), %s6079_s15, 512, %s799_s7, [#allocation14], %s6055_s1, %s6055_s1, %s6057_s4  }
  0x54   : > { %p4858_p7 = pneg %p4857_p4  ;;  %p4864_p10 = por %p4863_p9, %p4862_p8 }
  0x56   : > { %p4865_p11 = pnand %p4864_p10, %p4858_p7 }
  0x58   : > { %4868 = shalt.err (!%p4865_p11)
}
  0x59   : > { %4603 = dma.hbm_to_vmem [thread:$0]  (!%p5450_p5), %s6039_s17, 16, %s824_s11, [#allocation17]  }
  0x5a   : > { %s4880_s6 = scalar_lea.vmem %s845_s9, 512  ;;  %p4888_p1 = scmp.lt.s32.totalorder %s845_s9, %s845_s9 }
  0x5b   : > { %p4881_p12 = scmp.ne.s32.totalorder %s845_s9, %s4880_s6  ;;  %p4889_p4 = scmp.lt.s32.totalorder %s4880_s6, %s4880_s6 }
  0x5d   : > { %p4883_p13 = pnand %p4881_p12, %p5460_p6  ;;  %p4890_p2 = por %p4889_p4, %p4888_p1 }
  0x5f   : > { %p4884_p0 = pneg %p4883_p13 }
  0x61   : > { %p4891_p3 = pnand %p4890_p2, %p4884_p0 }
  0x63   : > { %4894 = shalt.err (!%p4891_p3)
}
  0x64   : > { %4609 = dma.hbm_to_vmem [thread:$0]  (!%p5450_p5), %s6041_s19, 512, %s845_s9, [#allocation20], %s6055_s1, %s6055_s1, %s6057_s4  }
  0x65   : > { %s5263_s11 = smov [#allocation22]   ;;  %s5264_s10 = smov [#allocation25]  }
  0x66   : > { %s872_s2 = sshll.u32 %s5263_s11, 4  ;;  %s894_s5 = sshll.u32 %s5264_s10, 4  ;;  %s873_s2 = int_to_ptr.vmem [resolvable:$true] %s872_s2  ;;  %s895_s5 = int_to_ptr.vmem [resolvable:$true] %s894_s5 }
  0x67   : > { %s4906_s7 = scalar_lea.vmem %s873_s2, 16  ;;  %s4913_s6 = scalar_lea.vmem %s873_s2, 32 }
  0x68   : > { %p4907_p7 = scmp.ne.s32.totalorder %s873_s2, %s4906_s7  ;;  %p4914_p8 = scmp.lt.s32.totalorder %s873_s2, %s873_s2 }
  0x69   : > { %p4915_p9 = scmp.lt.s32.totalorder %s4913_s6, %s4906_s7 }
  0x6a   : > { %p4909_p2 = pnand %p4907_p7, %p5460_p6 }
  0x6b   : > { %p4916_p10 = por %p4915_p9, %p4914_p8 }
  0x6c   : > { %p4910_p3 = pneg %p4909_p2 }
  0x6e   : > { %p4917_p11 = pnand %p4916_p10, %p4910_p3 }
  0x70   : > { %4920 = shalt.err (!%p4917_p11)
}
  0x71   : > { %4615 = dma.hbm_to_vmem [thread:$0]  (!%p5450_p5), %s6044_s22, 16, %s873_s2, [#allocation23]  }
  0x72   : > { %s4932_s29 = scalar_lea.vmem %s895_s5, 16  ;;  %s4939_s11 = scalar_lea.vmem %s895_s5, 32 }
  0x73   : > { %p4933_p12 = scmp.ne.s32.totalorder %s895_s5, %s4932_s29  ;;  %p4940_p1 = scmp.lt.s32.totalorder %s895_s5, %s895_s5 }
  0x74   : > { %p4941_p4 = scmp.lt.s32.totalorder %s4939_s11, %s4932_s29 }
  0x75   : > { %p4935_p13 = pnand %p4933_p12, %p5460_p6 }
  0x76   : > { %p4942_p7 = por %p4941_p4, %p4940_p1 }
  0x77   : > { %p4936_p0 = pneg %p4935_p13 }
  0x79   : > { %p4943_p2 = pnand %p4942_p7, %p4936_p0 }
  0x7b   : > { %4946 = shalt.err (!%p4943_p2)
}
  0x7c   : > { %4621 = dma.hbm_to_vmem [thread:$0]  (!%p5450_p5), %s6046_s24, 16, %s895_s5, [#allocation26]  }
  0x7d   : > { %s5265_s2 = smov [#allocation2]   ;;  %s5266_s13 = smov [#allocation6]  }
  0x7e   : > { %s712_s6 = sshll.u32 %s5265_s2, 4  ;;  %s740_s9 = sshll.u32 %s5266_s13, 4  ;;  %s713_s6 = int_to_ptr.vmem [resolvable:$true] %s712_s6  ;;  %s741_s9 = int_to_ptr.vmem [resolvable:$true] %s740_s9 }
  0x7f   : > { %s4958_s1 = scalar_lea.vmem %s713_s6, 512  ;;  %p4966_p10 = scmp.lt.s32.totalorder %s713_s6, %s713_s6 }
  0x80   : > { %p4959_p3 = scmp.ne.s32.totalorder %s713_s6, %s4958_s1  ;;  %p4967_p11 = scmp.lt.s32.totalorder %s4958_s1, %s4958_s1 }
  0x82   : > { %p4961_p8 = pnand %p4959_p3, %p5460_p6  ;;  %p4968_p12 = por %p4967_p11, %p4966_p10 }
  0x84   : > { %p4962_p9 = pneg %p4961_p8 }
  0x86   : > { %p4969_p13 = pnand %p4968_p12, %p4962_p9 }
  0x88   : > { %4972 = shalt.err (!%p4969_p13)
}
  0x89   : > { %s6080_s29 = smov 128   ;;  %s6081_s10 = sld [smem:[#allocation47_spill]] }
  0x8a   : > { %s4984_s7 = scalar_lea.vmem %s741_s9, 16  ;;  %s4991_s1 = scalar_lea.vmem %s741_s9, 32 }
  0x8b   : > { %p4985_p0 = scmp.ne.s32.totalorder %s741_s9, %s4984_s7  ;;  %p4992_p7 = scmp.lt.s32.totalorder %s741_s9, %s741_s9 }
  0x8c   : > { %p4993_p2 = scmp.lt.s32.totalorder %s4991_s1, %s4984_s7 }
  0x8d   : > { %p4987_p1 = pnand %p4985_p0, %p5460_p6 }
  0x8e   : > { %p4994_p3 = por %p4993_p2, %p4992_p7 }
  0x8f   : > { %4576 = dma.hbm_to_vmem [thread:$0]  (!%p5450_p5), %s6081_s10, 512, %s713_s6, [#allocation3], %s6080_s29, %s6080_s29, %s6057_s4  }
  0x90   : > { %p4988_p4 = pneg %p4987_p1 }
  0x92   : > { %p4995_p8 = pnand %p4994_p3, %p4988_p4 }
  0x94   : > { %4998 = shalt.err (!%p4995_p8)
}
  0x95   : > { %s6082_s15 = sld [smem:[#allocation50_spill]]  ;;  %s5267_s6 = smov [#allocation9]  }
  0x96   : > { %s764_s5 = sshll.u32 %s5267_s6, 4  ;;  %s5268_s11 = smov [#allocation12]   ;;  %s765_s5 = int_to_ptr.vmem [resolvable:$true] %s764_s5 }
  0x97   : > { %s788_s10 = sshll.u32 %s5268_s11, 4  ;;  %s5010_s4 = scalar_lea.vmem %s765_s5, 16  ;;  %s789_s10 = int_to_ptr.vmem [resolvable:$true] %s788_s10 }
  0x98   : > { %p5011_p9 = scmp.ne.s32.totalorder %s765_s5, %s5010_s4  ;;  %s5017_s7 = scalar_lea.vmem %s765_s5, 32 }
  0x99   : > { %p5018_p12 = scmp.lt.s32.totalorder %s765_s5, %s765_s5  ;;  %p5019_p13 = scmp.lt.s32.totalorder %s5017_s7, %s5010_s4 }
  0x9a   : > { %p5013_p10 = pnand %p5011_p9, %p5460_p6 }
  0x9b   : > { %4582 = dma.hbm_to_vmem [thread:$0]  (!%p5450_p5), %s6082_s15, 16, %s741_s9, [#allocation5]  }
  0x9c   : > { %p5014_p11 = pneg %p5013_p10  ;;  %p5020_p0 = por %p5019_p13, %p5018_p12 }
  0x9e   : > { %p5021_p1 = pnand %p5020_p0, %p5014_p11 }
  0xa0   : > { %5024 = shalt.err (!%p5021_p1)
}
  0xa1   : > { %s6083_s9 = sld [smem:[#allocation52_spill]]  ;;  %s5036_s2 = scalar_lea.vmem %s789_s10, 16 }
  0xa2   : > { %p5037_p4 = scmp.ne.s32.totalorder %s789_s10, %s5036_s2  ;;  %s5043_s13 = scalar_lea.vmem %s789_s10, 32 }
  0xa3   : > { %p5044_p3 = scmp.lt.s32.totalorder %s789_s10, %s789_s10  ;;  %p5045_p8 = scmp.lt.s32.totalorder %s5043_s13, %s5036_s2 }
  0xa4   : > { %p5039_p7 = pnand %p5037_p4, %p5460_p6 }
  0xa5   : > { %p5046_p9 = por %p5045_p8, %p5044_p3 }
  0xa6   : > { %p5040_p2 = pneg %p5039_p7 }
  0xa7   : > { %4588 = dma.hbm_to_vmem [thread:$0]  (!%p5450_p5), %s6083_s9, 16, %s765_s5, [#allocation8]  }
  0xa8   : > { %p5047_p10 = pnand %p5046_p9, %p5040_p2 }
  0xaa   : > { %5050 = shalt.err (!%p5047_p10)
}
  0xab   : > { %4594 = dma.hbm_to_vmem [thread:$0]  (!%p5450_p5), %s6036_s14, 16, %s789_s10, [#allocation11]  }
  0xac   : > { %s5269_s5 = smov [#allocation15]   ;;  %s5270_s7 = smov [#allocation18]  }
  0xad   : > { %s812_s11 = sshll.u32 %s5269_s5, 4  ;;  %s834_s1 = sshll.u32 %s5270_s7, 4  ;;  %s813_s11 = int_to_ptr.vmem [resolvable:$true] %s812_s11  ;;  %s835_s1 = int_to_ptr.vmem [resolvable:$true] %s834_s1 }
  0xae   : > { %s5062_s15 = scalar_lea.vmem %s813_s11, 16  ;;  %s5069_s9 = scalar_lea.vmem %s813_s11, 32 }
  0xaf   : > { %p5063_p11 = scmp.ne.s32.totalorder %s813_s11, %s5062_s15  ;;  %p5070_p0 = scmp.lt.s32.totalorder %s813_s11, %s813_s11 }
  0xb0   : > { %p5071_p1 = scmp.lt.s32.totalorder %s5069_s9, %s5062_s15 }
  0xb1   : > { %p5065_p12 = pnand %p5063_p11, %p5460_p6 }
  0xb2   : > { %p5072_p4 = por %p5071_p1, %p5070_p0 }
  0xb3   : > { %p5066_p13 = pneg %p5065_p12 }
  0xb5   : > { %p5073_p7 = pnand %p5072_p4, %p5066_p13 }
  0xb7   : > { %5076 = shalt.err (!%p5073_p7)
}
  0xb8   : > { %4600 = dma.hbm_to_vmem [thread:$0]  (!%p5450_p5), %s6038_s16, 16, %s813_s11, [#allocation14]  }
  0xb9   : > { %s5088_s13 = scalar_lea.vmem %s835_s1, 16  ;;  %s5095_s4 = scalar_lea.vmem %s835_s1, 32 }
  0xba   : > { %p5089_p2 = scmp.ne.s32.totalorder %s835_s1, %s5088_s13  ;;  %p5096_p9 = scmp.lt.s32.totalorder %s835_s1, %s835_s1 }
  0xbb   : > { %p5097_p10 = scmp.lt.s32.totalorder %s5095_s4, %s5088_s13 }
  0xbc   : > { %p5091_p3 = pnand %p5089_p2, %p5460_p6 }
  0xbd   : > { %p5098_p11 = por %p5097_p10, %p5096_p9 }
  0xbe   : > { %p5092_p8 = pneg %p5091_p3 }
  0xc0   : > { %p5099_p12 = pnand %p5098_p11, %p5092_p8 }
  0xc2   : > { %5102 = shalt.err (!%p5099_p12)
}
  0xc3   : > { %4606 = dma.hbm_to_vmem [thread:$0]  (!%p5450_p5), %s6040_s18, 16, %s835_s1, [#allocation17]  }
  0xc4   : > { %s5271_s11 = smov [#allocation21]   ;;  %s5272_s15 = smov [#allocation24]  }
  0xc5   : > { %s858_s7 = sshll.u32 %s5271_s11, 4  ;;  %s883_s9 = sshll.u32 %s5272_s15, 4  ;;  %s859_s7 = int_to_ptr.vmem [resolvable:$true] %s858_s7  ;;  %s884_s9 = int_to_ptr.vmem [resolvable:$true] %s883_s9 }
  0xc6   : > { %s5114_s2 = scalar_lea.vmem %s859_s7, 16  ;;  %s5121_s10 = scalar_lea.vmem %s859_s7, 32 }
  0xc7   : > { %p5115_p13 = scmp.ne.s32.totalorder %s859_s7, %s5114_s2  ;;  %p5122_p4 = scmp.lt.s32.totalorder %s859_s7, %s859_s7 }
  0xc8   : > { %p5123_p7 = scmp.lt.s32.totalorder %s5121_s10, %s5114_s2 }
  0xc9   : > { %p5117_p0 = pnand %p5115_p13, %p5460_p6 }
  0xca   : > { %p5124_p2 = por %p5123_p7, %p5122_p4 }
  0xcb   : > { %p5118_p1 = pneg %p5117_p0 }
  0xcd   : > { %p5125_p3 = pnand %p5124_p2, %p5118_p1 }
  0xcf   : > { %5128 = shalt.err (!%p5125_p3)
}
  0xd0   : > { %4612 = dma.hbm_to_vmem [thread:$0]  (!%p5450_p5), %s6042_s20, 16, %s859_s7, [#allocation20]  }
  0xd1   : > { %s5140_s4 = scalar_lea.vmem %s884_s9, 16  ;;  %s5147_s6 = scalar_lea.vmem %s884_s9, 32 }
  0xd2   : > { %p5141_p8 = scmp.ne.s32.totalorder %s884_s9, %s5140_s4  ;;  %p5148_p11 = scmp.lt.s32.totalorder %s884_s9, %s884_s9 }
  0xd3   : > { %p5149_p12 = scmp.lt.s32.totalorder %s5147_s6, %s5140_s4 }
  0xd4   : > { %p5143_p9 = pnand %p5141_p8, %p5460_p6 }
  0xd5   : > { %p5150_p13 = por %p5149_p12, %p5148_p11 }
  0xd6   : > { %p5144_p10 = pneg %p5143_p9 }
  0xd8   : > { %p5151_p0 = pnand %p5150_p13, %p5144_p10 }
  0xda   : > { %5154 = shalt.err (!%p5151_p0)
}
  0xdb   : > { %4618 = dma.hbm_to_vmem [thread:$0]  (!%p5450_p5), %s6045_s23, 16, %s884_s9, [#allocation23]  }
  0xdc   : > { %s5273_s7 = smov [#allocation27]   ;;  %s5274_s2 = smov [#allocation28]  }
  0xdd   : > { %s904_s15 = sshll.u32 %s5273_s7, 4  ;;  %s918_s10 = sshll.u32 %s5274_s2, 4  ;;  %s905_s15 = int_to_ptr.vmem [resolvable:$true] %s904_s15  ;;  %s919_s10 = int_to_ptr.vmem [resolvable:$true] %s918_s10 }
  0xde   : > { %s5166_s13 = scalar_lea.vmem %s905_s15, 512  ;;  %p5174_p2 = scmp.lt.s32.totalorder %s905_s15, %s905_s15 }
  0xdf   : > { %p5167_p1 = scmp.ne.s32.totalorder %s905_s15, %s5166_s13  ;;  %p5175_p3 = scmp.lt.s32.totalorder %s5166_s13, %s5166_s13 }
  0xe1   : > { %p5169_p4 = pnand %p5167_p1, %p5460_p6  ;;  %p5176_p8 = por %p5175_p3, %p5174_p2 }
  0xe3   : > { %p5170_p7 = pneg %p5169_p4 }
  0xe5   : > { %p5177_p9 = pnand %p5176_p8, %p5170_p7 }
  0xe7   : > { %5180 = shalt.err (!%p5177_p9)
}
  0xe8   : > { %s6084_s1 = smov 8   ;;  %s5192_s6 = scalar_lea.vmem %s919_s10, 16 }
  0xe9   : > { %4624 = dma.hbm_to_vmem [thread:$0]  (!%p5450_p5), %s6047_s25, 512, %s905_s15, [#allocation26], %s6080_s29, %s6080_s29, %s6084_s1  }
  0xea   : > { %p5193_p10 = scmp.ne.s32.totalorder %s919_s10, %s5192_s6  ;;  %s5199_s5 = scalar_lea.vmem %s919_s10, 32 }
  0xeb   : > { %p5200_p13 = scmp.lt.s32.totalorder %s919_s10, %s919_s10  ;;  %p5201_p0 = scmp.lt.s32.totalorder %s5199_s5, %s5192_s6 }
  0xec   : > { %p5195_p11 = pnand %p5193_p10, %p5460_p6 }
  0xed   : > { %p5202_p1 = por %p5201_p0, %p5200_p13 }
  0xee   : > { %p5196_p12 = pneg %p5195_p11 }
  0xf0   : > { %p5203_p4 = pnand %p5202_p1, %p5196_p12 }
  0xf2   : > { %5206 = shalt.err (!%p5203_p4)
}
  0xf3   : > { %4627 = dma.hbm_to_vmem [thread:$0]  (!%p5450_p5), %s6048_s26, 16, %s919_s10, [#allocation29]  }
  0xf4   : > { %p6085_p7 = scmp.ne.s32.totalorder %s6073_s3, 0 }
  0xf5   : > { %p6086_p2 = scmp.eq.s32.totalorder (!%p6085_p7), %s5435_s30, 0 }
  0xf6   : > { %953 = sbr.rel (%p6085_p7) target bundleno = 6756 (0x1a64), region = 128 }
  0xfb   : > { %5212 = dma.done.wait (%p6086_p2), [#allocation3], 512   ;;  %p6087_p6 = pmov %p6086_p2 }
  0xfc   : > { %p6088_p3 = pmov %p6086_p2 }
  0xfd   : > { %5214 = vsyncadd (%p6087_p6), [#allocation3], 4294966784 }
  0xfe   : > { %5216 = dma.done.wait (%p6088_p3), [#allocation5], 32   ;;  %p6089_p8 = pmov %p6086_p2 }
  0xff   : > { %p6090_p9 = pmov %p6086_p2 }
 0x100   : > { %5218 = vsyncadd (%p6089_p8), [#allocation5], 4294967264 }
 0x101   : > { %5220 = dma.done.wait (%p6090_p9), [#allocation8], 528   ;;  %p6091_p5 = pmov %p6086_p2 }
 0x102   : > { %p6092_p10 = pmov %p6086_p2 }
 0x103   : > { %5222 = vsyncadd (%p6091_p5), [#allocation8], 4294966768 }
 0x104   : > { %5224 = dma.done.wait (%p6092_p10), [#allocation11], 528   ;;  %p6093_p11 = pmov %p6086_p2 }
 0x105   : > { %p6094_p12 = pmov %p6086_p2 }
 0x106   : > { %5226 = vsyncadd (%p6093_p11), [#allocation11], 4294966768 }
 0x107   : > { %5228 = dma.done.wait (%p6094_p12), [#allocation14], 528   ;;  %p6095_p13 = pmov %p6086_p2 }
 0x108   : > { %p6096_p0 = pmov %p6086_p2 }
 0x109   : > { %5230 = vsyncadd (%p6095_p13), [#allocation14], 4294966768 }
 0x10a   : > { %5232 = dma.done.wait (%p6096_p0), [#allocation17], 32   ;;  %p6097_p1 = pmov %p6096_p0 }
 0x10b   : > { %p6098_p4 = pmov %p6096_p0 }
 0x10c   : > { %5234 = vsyncadd (%p6097_p1), [#allocation17], 4294967264 }
 0x10d   : > { %5236 = dma.done.wait (%p6098_p4), [#allocation20], 528   ;;  %p6099_p7 = pmov %p6096_p0 }
 0x10e   : > { %p6100_p2 = pmov %p6096_p0 }
 0x10f   : > { %5238 = vsyncadd (%p6099_p7), [#allocation20], 4294966768 }
 0x110   : > { %5240 = dma.done.wait (%p6100_p2), [#allocation23], 32   ;;  %p6101_p6 = pmov %p6096_p0 }
 0x111   : > { %p6102_p3 = pmov %p6096_p0 }
 0x112   : > { %5242 = vsyncadd (%p6101_p6), [#allocation23], 4294967264 }
 0x113   : > { %5244 = dma.done.wait (%p6102_p3), [#allocation26], 528   ;;  %p6103_p8 = pmov %p6096_p0 }
 0x114   : > { %p6104_p9 = pmov %p6096_p0 }
 0x115   : > { %5246 = vsyncadd (%p6103_p8), [#allocation26], 4294966768 }
 0x116   : > { %5248 = dma.done.wait (%p6104_p9), [#allocation29], 16   ;;  %p6105_p5 = pmov %p6096_p0 }
 0x117   : > { %p1106_p10 = scmp.lt.s32.totalorder %s5435_s30, 1  ;;  %v5275_v0 = vmov 0.0   ;;  %vm5276_vm0 = vmmov 0   ;;  %s6106_s29 = sld [smem:[#allocation40_spill]]  ;;  %vm1143_vm1 = vcmask 261120   ;;  %vm1308_vm2 = vcmask 64512  }
 0x118   : > { %5250 = vsyncadd (%p6105_p5), [#allocation29], 4294967280  ;;  %4280 = vmatprep.subr.mxu0 %v5275_v0  ;;  %4288 = vmatprep.mubr.msk.f32.mxu0 %vm5276_vm0, %v5275_v0  ;;  %s6107_s13 = sld [smem:[#allocation41_spill]]  ;;  %s5277_s11 = smov 120   ;;  %v1301_v48 = vld [vmem:[#allocation2] sm:$0xff]  ;;  %v1302_v49 = vld [vmem:[#allocation2 + $0x8] sm:$0xff] }
 0x119   : > { %s6115_s30 = smov (!%p1106_p10, %s5435_s30), 1  ;;  %4291 = vmatprep.subr.mxu1 %v5275_v0  ;;  %4299 = vmatprep.mubr.msk.f32.mxu1 %vm5276_vm0, %v5275_v0  ;;  %s6108_s6 = sld [smem:[#allocation43_spill]]  ;;  %vm2561_vm3 = vcmask 130048   ;;  %vm3603_vm4 = vcmask 523264  }
 0x11a   : > { %s5672_s3 = sshll.u32 %s6115_s30, 3  ;;  %s6109_s10 = sld [smem:[#allocation45_spill]] }
 0x11b   : > { %s6110_s5 = sld [smem:[#allocation44_spill]]  ;;  %s5278_s7 = smov 96  }
 0x11c   : > { %s5279_s0 = smov 88   ;;  %s6111_s9 = sld [smem:[#allocation46_spill]] }
 0x11d   : > { %s1109_s15 = scalar_lea.vmem %s6106_s29, %s5672_s3  ;;  %s5280_s4 = smov 80  }
 0x11e   : > { %s1113_s1 = scalar_lea.vmem %s6107_s13, %s5672_s3  ;;  %v5688_v3 = vld [vmem:[%s1109_s15] sm:$0xff]  ;;  %s5282_s12 = smov 104  }
 0x11f   : > { %v1135_v1 = vld [vmem:[%s6108_s6 + $0x18] sm:$0xff]  ;;  %v1134_v2 = vld [vmem:[%s6108_s6 + $0x10] sm:$0xff]  ;;  %v5690_v4 = vld [vmem:[%s1113_s1] sm:$0xff]  ;;  %s5283_s29 = smov 72   ;;  %s6112_s13 = sld [smem:[#allocation48_spill]] }
 0x120   : > { %4281 = vmatpush3.msra.mxu0 %v1135_v1  ;;  %v1133_v5 = vld [vmem:[%s6108_s6 + $0x8] sm:$0xff]  ;;  %v1132_v6 = vld [vmem:[%s6108_s6] sm:$0xff]  ;;  %v1131_v7 = vadd.f32 %v5690_v4, %v5688_v3  ;;  %v1220_v8 = vld [vmem:[%s6109_s10 + $0x18] sm:$0xff]  ;;  %s4183_s1 = sshll.u32 %s6115_s30, 4  ;;  %s6113_s2 = sld [smem:[#allocation42_spill]] }
 0x121   : > { %4282 = vmatprep.subr.mxu0 %v5275_v0  ;;  %v1219_v9 = vld [vmem:[%s6109_s10 + $0x10] sm:$0xff]  ;;  %v4122_v10 = vld [vmem:[%s6110_s5] ss:$0 sm:$0xff]  ;;  %4292 = vmatpush3.msra.mxu1 %v1220_v8  ;;  %v1218_v17 = vld [vmem:[%s6109_s10 + $0x8] sm:$0xff]  ;;  %s5281_s5 = smov 112  }
 0x122   : > { %4283 = vmatpush3.msra.mxu0 %v1134_v2  ;;  %4293 = vmatprep.subr.mxu1 %v5275_v0  ;;  %v1217_v18 = vld [vmem:[%s6109_s10] sm:$0xff] }
 0x123   : > { %4284 = vmatprep.subr.mxu0 %v5275_v0  ;;  %4294 = vmatpush3.msra.mxu1 %v1219_v9  ;;  %v4124_v27 = vld [vmem:[%s6111_s9] ss:$0 sm:$0xff] }
 0x124   : > { %4285 = vmatpush3.msra.mxu0 %v1133_v5  ;;  %4295 = vmatprep.subr.mxu1 %v5275_v0 }
 0x125   : > { %4286 = vmatprep.subr.mxu0 %v5275_v0  ;;  %4296 = vmatpush3.msra.mxu1 %v1218_v17 }
 0x126   : > { %4287 = vmatpush3.msra.mxu0 %v1132_v6  ;;  %4297 = vmatprep.subr.mxu1 %v5275_v0 }
 0x127   : > { %4289 = vmatmul.mubr.msk.f32.vlgmr.msra.gmra.mxu0 %vm1143_vm1, %v1131_v7  ;;  %4302 = vmatprep.subr.mxu0 %v5275_v0 }
 0x128   : > { %4304 = vmatprep.mubr.msk.f32.mxu0 %vm5276_vm0, %v5275_v0  ;;  %4298 = vmatpush3.msra.mxu1 %v1217_v18 }
 0x129   : > { %4300 = vmatmul.mubr.msk.f32.vlgmr.msra.gmra.mxu1 %vm1143_vm1, %v5688_v3  ;;  %4307 = vmatprep.subr.mxu1 %v5275_v0 }
 0x12a   : > { %4309 = vmatprep.mubr.msk.f32.mxu1 %vm5276_vm0, %v5275_v0 }
 0x1e7   : > { %v1213_v11 = vpop.f32.mrf.mxu0 }
 0x1e8   : > { %v5717_v12 = vadd.f32 %v4122_v10, %v1213_v11 }
 0x1e9   : > { %v4290_v13 = vpop.f32.mrf.mxu0  ;;  %v1297_v28 = vpop.f32.mrf.mxu1 }
 0x1ea   : > { %1468 = vrot.lane.b32.xlu1 %v5717_v12, %s5277_s11  ;;  %1306 = vrot.lane.b32.xlu0 %v5717_v12, %s5278_s7  ;;  %v5754_v29 = vadd.f32 %v4124_v27, %v1297_v28  ;;  %v1304_v27 = vld [vmem:[#allocation2 + $0x18] sm:$0xff] }
 0x1eb   : > { %v4301_v30 = vpop.f32.mrf.mxu1 }
 0x1ec   : > { %4308 = vmatpush3.msra.mxu1 %v5754_v29 }
 0x1ed   : > { %4317 = vmatprep.subr.mxu1 %v5275_v0 }
 0x1ee   : > { %1470 = vrot.lane.b32.xlu0 %v5717_v12, %s5279_s0 }
 0x25c   : > { %v1307_v14 = vpop.permute.xlu0 %1306  ;;  %v1469_v16 = vpop.permute.xlu1 %1468 }
 0x25d   : > { %4303 = vmatpush3.xpose.msk.msra.mxu0 %vm1308_vm2, %v1307_v14 }
 0x25e   : > { %4312 = vmatprep.subr.mxu0 %v5275_v0 }
 0x260   : > { %4305 = vmatmul.mubr.msk.f32.vlgmr.msra.gmra.mxu0 %vm1308_vm2, %v5717_v12  ;;  %v1471_v15 = vpop.permute.xlu0 %1470 }
 0x261   : > { %4313 = vmatpush3.xpose.msk.msra.mxu0 %vm1308_vm2, %v1471_v15  ;;  %4314 = vmatprep.mubr.msk.f32.mxu0 %vm5276_vm0, %v5275_v0 }
 0x262   : > { %4322 = vmatprep.subr.mxu0 %v5275_v0 }
 0x264   : > { %4315 = vmatmul.mubr.msk.f32.vlgmr.msra.gmra.mxu0 %vm1308_vm2, %v1469_v16 }
 0x265   : > { %4324 = vmatprep.mubr.msk.f32.mxu0 %vm5276_vm0, %v5275_v0  ;;  %4323 = vmatpush3.msra.mxu0 %v1302_v49  ;;  %v2388_v49 = vld [vmem:[#allocation10 + $0x18] sm:$0xff] }
 0x266   : > { %4332 = vmatprep.subr.mxu0 %v5275_v0 }
 0x320   : > { %v1379_v19 = vpop.f32.mrf.mxu0 }
 0x321   : > { %v1383_v20 = vmul.f32 0.35355338, %v1379_v19 }
 0x322   : > { %v4306_v21 = vpop.f32.mrf.mxu0 }
 0x323   : > { %v1384_v22 = vsel %vm1308_vm2, %v1383_v20, -inf }
 0x324   : > { %1385 = vmax.xlane.f32.xlu1 %v1384_v22  ;;  %v1542_v23 = vpop.f32.mrf.mxu0 }
 0x325   : > { %v1546_v24 = vmul.f32 0.35355338, %v1542_v23 }
 0x326   : > { %v4316_v25 = vpop.f32.mrf.mxu0 }
 0x327   : > { %v1547_v26 = vsel %vm1308_vm2, %v1546_v24, -inf }
 0x328   : > { %1548 = vmax.xlane.f32.xlu0 %v1547_v26 }
 0x3ad   : > { %v1386_v31 = vpop.xlane.xlu1 %1385 }
 0x3ae   : > { %v1387_v32 = vsub.f32 %v1383_v20, %v1386_v31 }
 0x3b0   : > { %v1388_v33 = vmul.f32 1.442695, %v1387_v32 }
 0x3b1   : > { %v1549_v34 = vpop.xlane.xlu0 %1548 }
 0x3b2   : > { %4701 = vpow2.f32 %v1388_v33  ;;  %v1550_v35 = vsub.f32 %v1546_v24, %v1549_v34 }
 0x3b4   : > { %v1551_v36 = vmul.f32 1.442695, %v1550_v35 }
 0x3b6   : > { %4703 = vpow2.f32 %v1551_v36 }
 0x3bf   : > { %v4702_v37 = vpop.eup %4701 }
 0x3c0   : > { %v1390_v38 = vsel %vm1308_vm2, %v4702_v37, 0.0 }
 0x3c1   : > { %1391 = vadd.xlane.f32.xlu0 %v1390_v38  ;;  %v4142_v38 = vld [vmem:[%s6112_s13] ss:$0 sm:$0xff]  ;;  %s1118_s13 = scalar_lea.vmem %s6113_s2, %s4183_s1  ;;  %s1126_s1 = scalar_lea.vmem %s6050_s28, %s5672_s3 }
 0x3c3   : > { %v4704_v39 = vpop.eup %4703 }
 0x3c4   : > { %v1553_v40 = vsel %vm1308_vm2, %v4704_v39, 0.0 }
 0x3c5   : > { %1554 = vadd.xlane.f32.xlu1 %v1553_v40 }
 0x3d6   : > { %1783 = vrot.lane.b32.xlu1 %v5717_v12, %s5280_s4 }
 0x3d7   : > { %1559 = vrot.lane.b32.xlu0 %v5754_v29, %s5277_s11 }
 0x3da   : > { %1781 = vrot.lane.b32.xlu1 %v5717_v12, %s5281_s5 }
 0x44a   : > { %v1392_v41 = vpop.xlane.xlu0 %1391 }
 0x44b   : > { %4705 = vrcp.f32 %v1392_v41 }
 0x44e   : > { %v1555_v42 = vpop.xlane.xlu1 %1554  ;;  %v1560_v45 = vpop.permute.xlu0 %1559 }
 0x44f   : > { %4707 = vrcp.f32 %v1555_v42 }
 0x452   : > { %v1784_v51 = vpop.permute.xlu1 %1783 }
 0x456   : > { %v1782_v55 = vpop.permute.xlu1 %1781 }
 0x458   : > { %v4706_v43 = vpop.eup %4705 }
 0x459   : > { %v1394_v44 = vmul.f32 %v4706_v43, %v4702_v37 }
 0x45b   : > { %4310 = vmatmul.mubr.msk.f32.vlgmr.msra.gmra.mxu1 %vm1308_vm2, %v1394_v44 }
 0x45c   : > { %v4708_v46 = vpop.eup %4707  ;;  %4318 = vmatpush3.msra.mxu1 %v1560_v45  ;;  %4319 = vmatprep.mubr.msk.f32.mxu1 %vm5276_vm0, %v5275_v0 }
 0x45d   : > { %v1557_v47 = vmul.f32 %v4708_v46, %v4704_v39  ;;  %4327 = vmatprep.subr.mxu1 %v5275_v0 }
 0x45f   : > { %4320 = vmatmul.mubr.msk.f32.vlgmr.msra.gmra.mxu1 %vm1308_vm2, %v1557_v47 }
 0x460   : > { %4329 = vmatprep.mubr.msk.f32.mxu1 %vm5276_vm0, %v5275_v0  ;;  %4328 = vmatpush3.msra.mxu1 %v1301_v48 }
 0x461   : > { %4337 = vmatprep.subr.mxu1 %v5275_v0 }
 0x51b   : > { %v1464_v50 = vpop.f32.mrf.mxu1 }
 0x51c   : > { %4330 = vmatmul.mubr.msk.f32.vlgmr.msra.gmra.mxu1 %vm1308_vm2, %v1464_v50  ;;  %v2387_v50 = vld [vmem:[#allocation10 + $0x10] sm:$0xff] }
 0x51d   : > { %v4311_v52 = vpop.f32.mrf.mxu1  ;;  %4339 = vmatprep.mubr.msk.f32.mxu1 %vm5276_vm0, %v5275_v0 }
 0x51e   : > { %v1129_v52 = vld [vmem:[%s1118_s13] sm:$0xff] }
 0x51f   : > { %v1631_v53 = vpop.f32.mrf.mxu1 }
 0x520   : > { %4325 = vmatmul.mubr.msk.f32.vlgmr.msra.gmra.mxu0 %vm1308_vm2, %v1631_v53  ;;  %v1130_v53 = vld [vmem:[%s1118_s13 + $0x8] sm:$0xff] }
 0x521   : > { %4333 = vmatpush3.xpose.msk.msra.mxu0 %vm1308_vm2, %v1784_v51  ;;  %v4321_v54 = vpop.f32.mrf.mxu1  ;;  %4334 = vmatprep.mubr.msk.f32.mxu0 %vm5276_vm0, %v5275_v0  ;;  %v2386_v51 = vld [vmem:[#allocation10 + $0x8] sm:$0xff] }
 0x522   : > { %4342 = vmatprep.subr.mxu0 %v5275_v0  ;;  %v2304_v54 = vld [vmem:[#allocation7 + $0x18] sm:$0xff] }
 0x524   : > { %4335 = vmatmul.mubr.msk.f32.vlgmr.msra.gmra.mxu0 %vm1308_vm2, %v1782_v55  ;;  %v2303_v55 = vld [vmem:[#allocation7 + $0x10] sm:$0xff] }
 0x525   : > { %4344 = vmatprep.mubr.msk.f32.mxu0 %vm5276_vm0, %v5275_v0 }
 0x5dc   : > { %v1777_v56 = vpop.f32.mrf.mxu1 }
 0x5de   : > { %v4331_v57 = vpop.f32.mrf.mxu1 }
 0x5df   : > { %v2301_v57 = vld [vmem:[#allocation7] sm:$0xff] }
 0x5e0   : > { %v1704_v58 = vpop.f32.mrf.mxu0 }
 0x5e1   : > { %v1778_v59 = vadd.f32 %v1777_v56, %v1704_v58  ;;  %v2302_v56 = vld [vmem:[#allocation7 + $0x8] sm:$0xff] }
 0x5e2   : > { %v4326_v60 = vpop.f32.mrf.mxu0 }
 0x5e4   : > { %v1855_v61 = vpop.f32.mrf.mxu0 }
 0x5e5   : > { %v1859_v62 = vmul.f32 0.35355338, %v1855_v61 }
 0x5e6   : > { %v4336_v63 = vpop.f32.mrf.mxu0 }
 0x5e7   : > { %v1860_v1 = vsel %vm1308_vm2, %v1859_v62, -inf }
 0x5e8   : > { %1861 = vmax.xlane.f32.xlu0 %v1860_v1  ;;  %v4144_v1 = vld [vmem:[#allocation6] ss:$0 sm:$0xff] }
 0x5fe   : > { %1871 = vrot.lane.b32.xlu0 %v5754_v29, %s5281_s5 }
 0x602   : > { %2021 = vrot.lane.b32.xlu0 %v5717_v12, %s5282_s12 }
 0x671   : > { %v1862_v2 = vpop.xlane.xlu0 %1861 }
 0x672   : > { %v1863_v5 = vsub.f32 %v1859_v62, %v1862_v2  ;;  %v4143_v62 = vld [vmem:[#allocation4] ss:$0 sm:$0xff] }
 0x674   : > { %v1864_v6 = vmul.f32 1.442695, %v1863_v5 }
 0x675   : > { %v1872_v7 = vpop.permute.xlu0 %1871 }
 0x676   : > { %4709 = vpow2.f32 %v1864_v6  ;;  %4338 = vmatpush3.msra.mxu1 %v1872_v7 }
 0x677   : > { %4347 = vmatprep.subr.mxu1 %v5275_v0 }
 0x679   : > { %v2022_v15 = vpop.permute.xlu0 %2021 }
 0x683   : > { %v4710_v8 = vpop.eup %4709 }
 0x684   : > { %v1866_v9 = vsel %vm1308_vm2, %v4710_v8, 0.0 }
 0x685   : > { %1867 = vadd.xlane.f32.xlu1 %v1866_v9 }
 0x696   : > { %2023 = vrot.lane.b32.xlu1 %v5717_v12, %s5283_s29  ;;  %v1303_v12 = vld [vmem:[#allocation2 + $0x10] sm:$0xff] }
 0x697   : > { %4343 = vmatpush3.msra.mxu0 %v1303_v12 }
 0x698   : > { %4352 = vmatprep.subr.mxu0 %v5275_v0 }
 0x70e   : > { %v1868_v10 = vpop.xlane.xlu1 %1867 }
 0x70f   : > { %4711 = vrcp.f32 %v1868_v10 }
 0x712   : > { %v2024_v14 = vpop.permute.xlu1 %2023 }
 0x71c   : > { %v4712_v11 = vpop.eup %4711 }
 0x71d   : > { %v1870_v13 = vmul.f32 %v4712_v11, %v4710_v8  ;;  %v4147_v8 = vld [vmem:[#allocation12] ss:$0 sm:$0xff] }
 0x71f   : > { %4340 = vmatmul.mubr.msk.f32.vlgmr.msra.gmra.mxu1 %vm1308_vm2, %v1870_v13 }
 0x720   : > { %4348 = vmatpush3.xpose.msk.msra.mxu1 %vm1308_vm2, %v2024_v14  ;;  %4349 = vmatprep.mubr.msk.f32.mxu1 %vm5276_vm0, %v5275_v0 }
 0x721   : > { %4357 = vmatprep.subr.mxu1 %v5275_v0 }
 0x723   : > { %4350 = vmatmul.mubr.msk.f32.vlgmr.msra.gmra.mxu1 %vm1308_vm2, %v2022_v15 }
 0x724   : > { %4359 = vmatprep.mubr.msk.f32.mxu1 %vm5276_vm0, %v5275_v0  ;;  %4358 = vmatpush3.msra.mxu1 %v1304_v27 }
 0x725   : > { %4373 = vmatprep.subr.mxu1 %v2388_v49 }
 0x7df   : > { %v1943_v16 = vpop.f32.mrf.mxu1 }
 0x7e0   : > { %4345 = vmatmul.mubr.msk.f32.vlgmr.msra.gmra.mxu0 %vm1308_vm2, %v1943_v16 }
 0x7e1   : > { %v4341_v17 = vpop.f32.mrf.mxu1  ;;  %4354 = vmatprep.mubr.msk.f32.mxu0 %vm5276_vm0, %v5275_v0 }
 0x7e3   : > { %v2095_v18 = vpop.f32.mrf.mxu1 }
 0x7e4   : > { %v2099_v19 = vmul.f32 0.35355338, %v2095_v18 }
 0x7e5   : > { %v4351_v20 = vpop.f32.mrf.mxu1 }
 0x7e6   : > { %v2100_v21 = vsel %vm1308_vm2, %v2099_v19, -inf }
 0x7e7   : > { %2101 = vmax.xlane.f32.xlu1 %v2100_v21 }
 0x870   : > { %v2102_v22 = vpop.xlane.xlu1 %2101 }
 0x871   : > { %v2103_v23 = vsub.f32 %v2099_v19, %v2102_v22 }
 0x873   : > { %v2104_v24 = vmul.f32 1.442695, %v2103_v23 }
 0x875   : > { %4713 = vpow2.f32 %v2104_v24 }
 0x882   : > { %v4714_v25 = vpop.eup %4713 }
 0x883   : > { %v2106_v26 = vsel %vm1308_vm2, %v4714_v25, 0.0 }
 0x884   : > { %2107 = vadd.xlane.f32.xlu0 %v2106_v26 }
 0x89a   : > { %2111 = vrot.lane.b32.xlu0 %v5754_v29, %s5282_s12 }
 0x8a0   : > { %v2016_v28 = vpop.f32.mrf.mxu0 }
 0x8a1   : > { %v2020_v30 = vadd.f32 %v2016_v28, %v1778_v59 }
 0x8a2   : > { %v4346_v31 = vpop.f32.mrf.mxu0 }
 0x90d   : > { %v2108_v32 = vpop.xlane.xlu0 %2107 }
 0x90e   : > { %4715 = vrcp.f32 %v2108_v32 }
 0x911   : > { %v2112_v33 = vpop.permute.xlu0 %2111 }
 0x912   : > { %4353 = vmatpush3.msra.mxu0 %v2112_v33  ;;  %v2477_v33 = vld [vmem:[#allocation13] sm:$0xff] }
 0x913   : > { %4362 = vmatprep.subr.mxu0 %v5275_v0 }
 0x91b   : > { %v4716_v34 = vpop.eup %4715 }
 0x91c   : > { %v2110_v35 = vmul.f32 %v4716_v34, %v4714_v25 }
 0x91e   : > { %4355 = vmatmul.mubr.msk.f32.vlgmr.msra.gmra.mxu0 %vm1308_vm2, %v2110_v35 }
 0x91f   : > { %4370 = vmatprep.mubr.msk.f32.mxu0 %vm5276_vm0, %v5275_v0  ;;  %4363 = vmatpush3.msra.mxu0 %v2304_v54 }
 0x920   : > { %4364 = vmatprep.subr.mxu0 %v5275_v0 }
 0x921   : > { %4365 = vmatpush3.msra.mxu0 %v2303_v55 }
 0x922   : > { %4366 = vmatprep.subr.mxu0 %v5275_v0 }
 0x923   : > { %4367 = vmatpush3.msra.mxu0 %v2302_v56 }
 0x924   : > { %4368 = vmatprep.subr.mxu0 %v5275_v0 }
 0x925   : > { %4369 = vmatpush3.msra.mxu0 %v2301_v57 }
 0x926   : > { %4384 = vmatprep.subr.mxu0 %v5275_v0 }
 0x9de   : > { %v2183_v36 = vpop.f32.mrf.mxu0 }
 0x9df   : > { %4360 = vmatmul.mubr.msk.f32.vlgmr.msra.gmra.mxu1 %vm1308_vm2, %v2183_v36 }
 0x9e0   : > { %v4356_v29 = vpop.f32.mrf.mxu0  ;;  %4374 = vmatpush3.msra.mxu1 %v2388_v49  ;;  %4381 = vmatprep.mubr.msk.f32.mxu1 %vm1143_vm1, %v1129_v52 }
 0x9e1   : > { %4375 = vmatprep.subr.mxu1 %v2387_v50 }
 0x9e2   : > { %4376 = vmatpush3.msra.mxu1 %v2387_v50 }
 0x9e3   : > { %4377 = vmatprep.subr.mxu1 %v2386_v51 }
 0x9e4   : > { %4378 = vmatpush3.msra.mxu1 %v2386_v51  ;;  %v2478_v51 = vld [vmem:[#allocation13 + $0x8] sm:$0xff] }
 0xa9f   : > { %v2256_v37 = vpop.f32.mrf.mxu1 }
 0xaa0   : > { %v2260_v39 = vadd.f32 %v2256_v37, %v2020_v30 }
 0xaa1   : > { %v4361_v40 = vpop.f32.mrf.mxu1 }
 0xaa2   : > { %v2268_v41 = vadd.f32 %v4142_v38, %v2260_v39 }
 0xaa4   : > { %v2269_v42 = vadd.f32 %v2268_v41, %v5688_v3  ;;  %v2385_v3 = vld [vmem:[#allocation10] sm:$0xff] }
 0xaa5   : > { %4379 = vmatprep.subr.mxu1 %v2385_v3 }
 0xaa6   : > { %v2270_v43 = vsel %vm1143_vm1, %v2269_v42, 0.0  ;;  %4380 = vmatpush3.msra.mxu1 %v2385_v3 }
 0xaa7   : > { %2271 = vadd.xlane.f32.xlu1 %v2270_v43  ;;  %4382 = vmatmul.mubr.msk.f32.vlgmr.msra.gmra.mxu1 %vm1143_vm1, %v1130_v53 }
 0xaa8   : > { %4391 = vmatprep.subr.mxu1 %v5275_v0  ;;  %4395 = vmatprep.mubr.msk.f32.mxu1 %vm5276_vm0, %v5275_v0 }
 0xb30   : > { %v2272_v44 = vpop.xlane.xlu1 %2271 }
 0xb31   : > { %v2274_v45 = vmul.f32 0.03125, %v2272_v44 }
 0xb33   : > { %v2275_v46 = vsub.f32 %v2269_v42, %v2274_v45 }
 0xb35   : > { %v2276_v47 = vmul.f32 %v2275_v46, %v2275_v46 }
 0xb37   : > { %v2277_v48 = vsel %vm1143_vm1, %v2276_v47, 0.0 }
 0xb38   : > { %2278 = vadd.xlane.f32.xlu1 %v2277_v48 }
 0xb67   : > { %v4383_v7 = vpop.f32.mrf.mxu1 }
 0xb68   : > { %v5842_v9 = vadd.f32 %v4383_v7, %v4147_v8 }
 0xb69   : > { %v2468_v10 = vpop.f32.mrf.mxu1 }
 0xb6a   : > { %v5844_v11 = vadd.f32 %v4147_v8, %v2468_v10 }
 0xb6c   : > { %2573 = vrot.lane.b32.xlu0 %v5844_v11, %s5278_s7 }
 0xb70   : > { %2656 = vrot.lane.b32.xlu0 %v5842_v9, %s5277_s11 }
 0xb74   : > { %2654 = vrot.lane.b32.xlu0 %v5844_v11, %s5277_s11 }
 0xbc1   : > { %v2279_v58 = vpop.xlane.xlu1 %2278 }
 0xbc2   : > { %v2280_v59 = vmul.f32 0.03125, %v2279_v58 }
 0xbc4   : > { %v2281_v60 = vadd.f32 1e-05, %v2280_v59 }
 0xbc6   : > { %4717 = vrsqrt.f32 %v2281_v60 }
 0xbd3   : > { %v4718_v61 = vpop.eup %4717 }
 0xbd4   : > { %v2283_v63 = vmul.f32 %v4718_v61, %v2275_v46 }
 0xbd6   : > { %v2291_v2 = vmul.f32 %v4143_v62, %v2283_v63 }
 0xbd8   : > { %v5835_v5 = vadd.f32 %v4144_v1, %v2291_v2 }
 0xbda   : > { %v2300_v6 = vadd.f32 %v5835_v5, %v5690_v4  ;;  %v4145_v4 = vld [vmem:[#allocation9] ss:$0 sm:$0xff] }
 0xbdc   : > { %4371 = vmatmul.mubr.msk.f32.vlgmr.msra.gmra.mxu0 %vm1143_vm1, %v2300_v6 }
 0xbdd   : > { %4388 = vmatprep.mubr.msk.f32.mxu0 %vm5276_vm0, %v5275_v0  ;;  %4385 = vmatpush3.xpose.msk.msra.mxu0 %vm1308_vm2, %v5842_v9 }
 0xbde   : > { %4386 = vmatprep.subr.mxu0 %v5275_v0  ;;  %v2574_v26 = vpop.permute.xlu0 %2573 }
 0xbe1   : > { %4387 = vmatpush3.xpose.msk.msra.mxu0 %vm1308_vm2, %v5844_v11 }
 0xbe2   : > { %4405 = vmatprep.subr.mxu0 %v5275_v0  ;;  %v2657_v28 = vpop.permute.xlu0 %2656 }
 0xbe6   : > { %v2655_v31 = vpop.permute.xlu0 %2654 }
 0xc9c   : > { %v2381_v13 = vpop.f32.mrf.mxu0 }
 0xc9d   : > { %v5858_v14 = vadd.f32 %v4145_v4, %v2381_v13 }
 0xc9e   : > { %v4372_v15 = vpop.f32.mrf.mxu0 }
 0xc9f   : > { %2652 = vrot.lane.b32.xlu0 %v5858_v14, %s5277_s11  ;;  %4389 = vmatmul.mubr.msk.f32.vlgmr.msra.gmra.mxu0 %vm1308_vm2, %v5858_v14 }
 0xca0   : > { %4409 = vmatprep.mubr.msk.f32.mxu0 %vm5276_vm0, %v5275_v0 }
 0xd11   : > { %v2653_v32 = vpop.permute.xlu0 %2652 }
 0xd5f   : > { %v2556_v12 = vpop.f32.mrf.mxu0 }
 0xd60   : > { %v2560_v16 = vmul.f32 0.35355338, %v2556_v12 }
 0xd61   : > { %v4390_v17 = vpop.f32.mrf.mxu0 }
 0xd62   : > { %v2562_v18 = vsel %vm2561_vm3, %v2560_v16, -inf }
 0xd63   : > { %2563 = vmax.xlane.f32.xlu1 %v2562_v18 }
 0xdec   : > { %v2564_v19 = vpop.xlane.xlu1 %2563 }
 0xded   : > { %v2565_v20 = vsub.f32 %v2560_v16, %v2564_v19 }
 0xdef   : > { %v2566_v21 = vmul.f32 1.442695, %v2565_v20 }
 0xdf1   : > { %4719 = vpow2.f32 %v2566_v21 }
 0xdfe   : > { %v4720_v22 = vpop.eup %4719 }
 0xdff   : > { %v2568_v23 = vsel %vm2561_vm3, %v4720_v22, 0.0 }
 0xe00   : > { %2569 = vadd.xlane.f32.xlu1 %v2568_v23 }
 0xe11   : > { %2575 = vrot.lane.b32.xlu1 %v5842_v9, %s5278_s7 }
 0xe89   : > { %v2570_v24 = vpop.xlane.xlu1 %2569 }
 0xe8a   : > { %4721 = vrcp.f32 %v2570_v24  ;;  %v2479_v24 = vld [vmem:[#allocation13 + $0x10] sm:$0xff] }
 0xe8d   : > { %v2576_v25 = vpop.permute.xlu1 %2575 }
 0xe8e   : > { %4392 = vmatpush3.msra.mxu1 %v2576_v25 }
 0xe8f   : > { %4393 = vmatprep.subr.mxu1 %v5275_v0 }
 0xe90   : > { %4394 = vmatpush3.msra.mxu1 %v2574_v26 }
 0xe91   : > { %4398 = vmatprep.subr.mxu1 %v5275_v0 }
 0xe97   : > { %v4722_v27 = vpop.eup %4721 }
 0xe98   : > { %v2572_v30 = vmul.f32 %v4722_v27, %v4720_v22 }
 0xe9a   : > { %4396 = vmatmul.mubr.msk.f32.vlgmr.msra.gmra.mxu1 %vm2561_vm3, %v2572_v30 }
 0xe9b   : > { %4399 = vmatpush3.xpose.msk.msra.mxu1 %vm1308_vm2, %v2657_v28  ;;  %4402 = vmatprep.mubr.msk.f32.mxu1 %vm5276_vm0, %v5275_v0 }
 0xe9c   : > { %4400 = vmatprep.subr.mxu1 %v5275_v0 }
 0xe9f   : > { %4401 = vmatpush3.xpose.msk.msra.mxu1 %vm1308_vm2, %v2655_v31 }
 0xea0   : > { %4417 = vmatprep.subr.mxu1 %v5275_v0 }
 0xea2   : > { %4403 = vmatmul.mubr.msk.f32.vlgmr.msra.gmra.mxu1 %vm1308_vm2, %v2653_v32  ;;  %v2480_v32 = vld [vmem:[#allocation13 + $0x18] sm:$0xff] }
 0xea3   : > { %4419 = vmatprep.mubr.msk.f32.mxu1 %vm5276_vm0, %v5275_v0  ;;  %4418 = vmatpush3.msra.mxu1 %v2477_v33 }
 0xea4   : > { %4429 = vmatprep.subr.mxu1 %v5275_v0 }
 0xf5a   : > { %v2648_v34 = vpop.f32.mrf.mxu1 }
 0xf5b   : > { %4420 = vmatmul.mubr.msk.f32.vlgmr.msra.gmra.mxu1 %vm1308_vm2, %v2648_v34 }
 0xf5c   : > { %v4397_v35 = vpop.f32.mrf.mxu1  ;;  %4433 = vmatprep.mubr.msk.f32.mxu1 %vm5276_vm0, %v5275_v0 }
 0xf62   : > { %v2730_v36 = vpop.f32.mrf.mxu1 }
 0xf63   : > { %v2734_v29 = vmul.f32 0.35355338, %v2730_v36 }
 0xf64   : > { %v4404_v37 = vpop.f32.mrf.mxu1 }
 0xf65   : > { %v2735_v38 = vsel %vm2561_vm3, %v2734_v29, -inf }
 0xf66   : > { %2736 = vmax.xlane.f32.xlu1 %v2735_v38 }
 0xf77   : > { %2746 = vrot.lane.b32.xlu1 %v5844_v11, %s5279_s0 }
 0xf7b   : > { %2975 = vrot.lane.b32.xlu1 %v5842_v9, %s5281_s5 }
 0xf7f   : > { %2971 = vrot.lane.b32.xlu1 %v5858_v14, %s5281_s5 }
 0xf83   : > { %3220 = vrot.lane.b32.xlu1 %v5844_v11, %s5282_s12 }
 0xfef   : > { %v2737_v39 = vpop.xlane.xlu1 %2736 }
 0xff0   : > { %v2738_v40 = vsub.f32 %v2734_v29, %v2737_v39  ;;  %v4170_v39 = vld [vmem:[#allocation15] ss:$0 sm:$0xff] }
 0xff2   : > { %v2739_v41 = vmul.f32 1.442695, %v2738_v40 }
 0xff3   : > { %v2747_v48 = vpop.permute.xlu1 %2746 }
 0xff4   : > { %4723 = vpow2.f32 %v2739_v41 }
 0xff7   : > { %v2976_v52 = vpop.permute.xlu1 %2975 }
 0xffb   : > { %v2972_v55 = vpop.permute.xlu1 %2971 }
 0xfff   : > { %v3221_v57 = vpop.permute.xlu1 %3220 }
0x1001   : > { %v4724_v42 = vpop.eup %4723 }
0x1002   : > { %v2741_v43 = vsel %vm2561_vm3, %v4724_v42, 0.0 }
0x1003   : > { %2742 = vadd.xlane.f32.xlu0 %v2741_v43 }
0x1019   : > { %2748 = vrot.lane.b32.xlu0 %v5842_v9, %s5279_s0 }
0x101b   : > { %v5898_v44 = vpop.f32.mrf.mxu1 }
0x101d   : > { %2973 = vrot.lane.b32.xlu0 %v5844_v11, %s5281_s5  ;;  %v4421_v45 = vpop.f32.mrf.mxu1  ;;  %s1122_s5 = scalar_lea.vmem %s6049_s27, %s5672_s3 }
0x1021   : > { %3222 = vrot.lane.b32.xlu0 %v5842_v9, %s5282_s12 }
0x1025   : > { %3218 = vrot.lane.b32.xlu0 %v5858_v14, %s5282_s12 }
0x108c   : > { %v2743_v46 = vpop.xlane.xlu0 %2742 }
0x108d   : > { %4725 = vrcp.f32 %v2743_v46 }
0x1090   : > { %v2749_v47 = vpop.permute.xlu0 %2748 }
0x1091   : > { %4406 = vmatpush3.msra.mxu0 %v2749_v47 }
0x1092   : > { %4407 = vmatprep.subr.mxu0 %v5275_v0 }
0x1093   : > { %4408 = vmatpush3.msra.mxu0 %v2747_v48 }
0x1094   : > { %4412 = vmatprep.subr.mxu0 %v5275_v0  ;;  %v2974_v54 = vpop.permute.xlu0 %2973 }
0x1098   : > { %v3223_v56 = vpop.permute.xlu0 %3222 }
0x109a   : > { %v4726_v49 = vpop.eup %4725 }
0x109b   : > { %v2745_v50 = vmul.f32 %v4726_v49, %v4724_v42 }
0x109c   : > { %v3219_v58 = vpop.permute.xlu0 %3218 }
0x109d   : > { %4410 = vmatmul.mubr.msk.f32.vlgmr.msra.gmra.mxu0 %vm2561_vm3, %v2745_v50  ;;  %v3506_v50 = vld [vmem:[#allocation19 + $0x18] sm:$0xff] }
0x109e   : > { %4413 = vmatpush3.msra.mxu0 %v2478_v51  ;;  %4414 = vmatprep.mubr.msk.f32.mxu0 %vm5276_vm0, %v5275_v0  ;;  %v3505_v51 = vld [vmem:[#allocation19 + $0x10] sm:$0xff] }
0x109f   : > { %4422 = vmatprep.subr.mxu0 %v5275_v0 }
0x115d   : > { %v2821_v3 = vpop.f32.mrf.mxu0 }
0x115e   : > { %4415 = vmatmul.mubr.msk.f32.vlgmr.msra.gmra.mxu0 %vm1308_vm2, %v2821_v3  ;;  %v3504_v3 = vld [vmem:[#allocation19 + $0x8] sm:$0xff] }
0x115f   : > { %4423 = vmatpush3.xpose.msk.msra.mxu0 %vm1308_vm2, %v2976_v52  ;;  %v4411_v53 = vpop.f32.mrf.mxu0  ;;  %4426 = vmatprep.mubr.msk.f32.mxu0 %vm5276_vm0, %v5275_v0  ;;  %v3595_v52 = vld [vmem:[%s6043_s21 + $0x38] sm:$0xff] }
0x1160   : > { %4424 = vmatprep.subr.mxu0 %v5275_v0  ;;  %v3594_v53 = vld [vmem:[%s6043_s21 + $0x30] sm:$0xff] }
0x1163   : > { %4425 = vmatpush3.xpose.msk.msra.mxu0 %vm1308_vm2, %v2974_v54  ;;  %v3593_v54 = vld [vmem:[%s6043_s21 + $0x28] sm:$0xff] }
0x1164   : > { %4441 = vmatprep.subr.mxu0 %v5275_v0 }
0x1166   : > { %4427 = vmatmul.mubr.msk.f32.vlgmr.msra.gmra.mxu0 %vm1308_vm2, %v2972_v55  ;;  %v3592_v55 = vld [vmem:[%s6043_s21 + $0x20] sm:$0xff] }
0x1167   : > { %4442 = vmatpush3.xpose.msk.msra.mxu0 %vm1308_vm2, %v3223_v56  ;;  %4445 = vmatprep.mubr.msk.f32.mxu0 %vm5276_vm0, %v5275_v0  ;;  %v3591_v56 = vld [vmem:[%s6043_s21 + $0x18] sm:$0xff] }
0x1168   : > { %4443 = vmatprep.subr.mxu0 %v5275_v0 }
0x116b   : > { %4444 = vmatpush3.xpose.msk.msra.mxu0 %vm1308_vm2, %v3221_v57 }
0x116c   : > { %4460 = vmatprep.subr.mxu0 %v5275_v0 }
0x116e   : > { %4446 = vmatmul.mubr.msk.f32.vlgmr.msra.gmra.mxu0 %vm1308_vm2, %v3219_v58 }
0x116f   : > { %4468 = vmatprep.mubr.msk.f32.mxu0 %vm5276_vm0, %v5275_v0  ;;  %4461 = vmatpush3.msra.mxu0 %v3506_v50 }
0x1170   : > { %4462 = vmatprep.subr.mxu0 %v5275_v0 }
0x1171   : > { %4463 = vmatpush3.msra.mxu0 %v3505_v51 }
0x1172   : > { %4464 = vmatprep.subr.mxu0 %v5275_v0 }
0x1173   : > { %4465 = vmatpush3.msra.mxu0 %v3504_v3 }
0x1174   : > { %4466 = vmatprep.subr.mxu0 %v5275_v0 }
0x121e   : > { %v5929_v59 = vpop.f32.mrf.mxu0 }
0x121f   : > { %v2968_v33 = vadd.f32 %v5898_v44, %v5929_v59 }
0x1220   : > { %v4416_v60 = vpop.f32.mrf.mxu0 }
0x1226   : > { %v3049_v61 = vpop.f32.mrf.mxu0 }
0x1227   : > { %v3053_v62 = vmul.f32 0.35355338, %v3049_v61  ;;  %v4171_v61 = vld [vmem:[#allocation16] ss:$0 sm:$0xff] }
0x1228   : > { %v4428_v63 = vpop.f32.mrf.mxu0 }
0x1229   : > { %v3054_v1 = vsel %vm2561_vm3, %v3053_v62, -inf  ;;  %v4172_v63 = vld [vmem:[#allocation18] ss:$0 sm:$0xff] }
0x122a   : > { %3055 = vmax.xlane.f32.xlu1 %v3054_v1 }
0x122e   : > { %v3296_v2 = vpop.f32.mrf.mxu0 }
0x122f   : > { %v3300_v7 = vmul.f32 0.35355338, %v3296_v2 }
0x1230   : > { %v4447_v6 = vpop.f32.mrf.mxu0 }
0x1231   : > { %v3301_v8 = vsel %vm2561_vm3, %v3300_v7, -inf  ;;  %v3590_v6 = vld [vmem:[%s6043_s21 + $0x10] sm:$0xff] }
0x123b   : > { %3065 = vrot.lane.b32.xlu1 %v5844_v11, %s5280_s4 }
0x125f   : > { %3302 = vmax.xlane.f32.xlu1 %v3301_v8  ;;  %v3588_v8 = vld [vmem:[%s6043_s21] sm:$0xff] }
0x1270   : > { %3312 = vrot.lane.b32.xlu1 %v5844_v11, %s5283_s29 }
0x12b3   : > { %v3056_v10 = vpop.xlane.xlu1 %3055 }
0x12b4   : > { %v3057_v4 = vsub.f32 %v3053_v62, %v3056_v10  ;;  %v4173_v10 = vld [vmem:[#allocation21] ss:$0 sm:$0xff] }
0x12b6   : > { %v3058_v13 = vmul.f32 1.442695, %v3057_v4 }
0x12b7   : > { %v3066_v12 = vpop.permute.xlu1 %3065 }
0x12b8   : > { %4727 = vpow2.f32 %v3058_v13 }
0x12c5   : > { %v4728_v14 = vpop.eup %4727 }
0x12c6   : > { %v3060_v15 = vsel %vm2561_vm3, %v4728_v14, 0.0 }
0x12c7   : > { %3061 = vadd.xlane.f32.xlu0 %v3060_v15 }
0x12dd   : > { %3067 = vrot.lane.b32.xlu0 %v5842_v9, %s5280_s4 }
0x12e8   : > { %v3303_v16 = vpop.xlane.xlu1 %3302 }
0x12e9   : > { %v3304_v17 = vsub.f32 %v3300_v7, %v3303_v16  ;;  %v3589_v7 = vld [vmem:[%s6043_s21 + $0x8] sm:$0xff] }
0x12eb   : > { %v3305_v18 = vmul.f32 1.442695, %v3304_v17 }
0x12ec   : > { %v3313_v30 = vpop.permute.xlu1 %3312 }
0x12ed   : > { %4729 = vpow2.f32 %v3305_v18 }
0x12fa   : > { %v4730_v19 = vpop.eup %4729 }
0x12fb   : > { %v3307_v20 = vsel %vm2561_vm3, %v4730_v19, 0.0 }
0x12fc   : > { %3308 = vadd.xlane.f32.xlu0 %v3307_v20 }
0x1312   : > { %3314 = vrot.lane.b32.xlu0 %v5842_v9, %s5283_s29 }
0x1350   : > { %v3062_v11 = vpop.xlane.xlu0 %3061 }
0x1351   : > { %4731 = vrcp.f32 %v3062_v11 }
0x1354   : > { %v3068_v21 = vpop.permute.xlu0 %3067 }
0x1355   : > { %4430 = vmatpush3.msra.mxu1 %v3068_v21 }
0x1356   : > { %4431 = vmatprep.subr.mxu1 %v5275_v0 }
0x1357   : > { %4432 = vmatpush3.msra.mxu1 %v3066_v12  ;;  %v4175_v12 = vld [vmem:[#allocation22] ss:$0 sm:$0xff] }
0x1358   : > { %4436 = vmatprep.subr.mxu1 %v5275_v0 }
0x135e   : > { %v4732_v22 = vpop.eup %4731 }
0x135f   : > { %v3064_v23 = vmul.f32 %v4732_v22, %v4728_v14 }
0x1361   : > { %4434 = vmatmul.mubr.msk.f32.vlgmr.msra.gmra.mxu1 %vm2561_vm3, %v3064_v23 }
0x1362   : > { %4437 = vmatpush3.msra.mxu1 %v2479_v24  ;;  %4438 = vmatprep.mubr.msk.f32.mxu1 %vm5276_vm0, %v5275_v0 }
0x1363   : > { %4448 = vmatprep.subr.mxu1 %v5275_v0 }
0x1385   : > { %v3309_v9 = vpop.xlane.xlu0 %3308 }
0x1386   : > { %4733 = vrcp.f32 %v3309_v9  ;;  %v3711_v9 = vld [vmem:[#allocation27 + $0x18] sm:$0xff] }
0x1389   : > { %v3315_v27 = vpop.permute.xlu0 %3314 }
0x1393   : > { %v4734_v25 = vpop.eup %4733 }
0x1394   : > { %v3311_v31 = vmul.f32 %v4734_v25, %v4730_v19  ;;  %v3710_v25 = vld [vmem:[#allocation27 + $0x10] sm:$0xff] }
0x1421   : > { %v3140_v26 = vpop.f32.mrf.mxu1 }
0x1422   : > { %4439 = vmatmul.mubr.msk.f32.vlgmr.msra.gmra.mxu1 %vm1308_vm2, %v3140_v26  ;;  %v3709_v26 = vld [vmem:[#allocation27 + $0x8] sm:$0xff] }
0x1423   : > { %4449 = vmatpush3.msra.mxu1 %v3315_v27  ;;  %v4435_v28 = vpop.f32.mrf.mxu1  ;;  %4452 = vmatprep.mubr.msk.f32.mxu1 %vm5276_vm0, %v5275_v0  ;;  %v3708_v27 = vld [vmem:[#allocation27] sm:$0xff] }
0x1424   : > { %4450 = vmatprep.subr.mxu1 %v5275_v0 }
0x1425   : > { %4451 = vmatpush3.msra.mxu1 %v3313_v30 }
0x1426   : > { %4453 = vmatmul.mubr.msk.f32.vlgmr.msra.gmra.mxu1 %vm2561_vm3, %v3311_v31  ;;  %4455 = vmatprep.subr.mxu1 %v5275_v0 }
0x1427   : > { %4457 = vmatprep.mubr.msk.f32.mxu1 %vm5276_vm0, %v5275_v0  ;;  %4456 = vmatpush3.msra.mxu1 %v2480_v32 }
0x1428   : > { %4471 = vmatprep.subr.mxu1 %v5275_v0 }
0x14e2   : > { %v3213_v34 = vpop.f32.mrf.mxu1 }
0x14e3   : > { %v3217_v35 = vadd.f32 %v3213_v34, %v2968_v33  ;;  %v4177_v33 = vld [vmem:[#allocation24] ss:$0 sm:$0xff] }
0x14e4   : > { %v4440_v36 = vpop.f32.mrf.mxu1 }
0x14e6   : > { %v3387_v29 = vpop.f32.mrf.mxu1 }
0x14e7   : > { %4458 = vmatmul.mubr.msk.f32.vlgmr.msra.gmra.mxu1 %vm1308_vm2, %v3387_v29 }
0x14e8   : > { %v4454_v37 = vpop.f32.mrf.mxu1  ;;  %4487 = vmatprep.mubr.msk.f32.mxu1 %vm5276_vm0, %v5275_v0  ;;  %4472 = vmatpush3.msra.mxu1 %v3595_v52 }
0x14e9   : > { %4473 = vmatprep.subr.mxu1 %v5275_v0 }
0x14ea   : > { %4474 = vmatpush3.msra.mxu1 %v3594_v53 }
0x14eb   : > { %4475 = vmatprep.subr.mxu1 %v5275_v0 }
0x14ec   : > { %4476 = vmatpush3.msra.mxu1 %v3593_v54 }
0x14ed   : > { %4477 = vmatprep.subr.mxu1 %v5275_v0 }
0x14ee   : > { %4478 = vmatpush3.msra.mxu1 %v3592_v55 }
0x14ef   : > { %4479 = vmatprep.subr.mxu1 %v5275_v0 }
0x14f0   : > { %4480 = vmatpush3.msra.mxu1 %v3591_v56 }
0x14f1   : > { %4481 = vmatprep.subr.mxu1 %v5275_v0 }
0x14f2   : > { %4482 = vmatpush3.msra.mxu1 %v3590_v6 }
0x14f3   : > { %4483 = vmatprep.subr.mxu1 %v5275_v0 }
0x14f4   : > { %4484 = vmatpush3.msra.mxu1 %v3589_v7 }
0x14f5   : > { %4485 = vmatprep.subr.mxu1 %v5275_v0 }
0x14f6   : > { %4486 = vmatpush3.msra.mxu1 %v3588_v8 }
0x15a7   : > { %v3460_v38 = vpop.f32.mrf.mxu1 }
0x15a8   : > { %v3464_v40 = vadd.f32 %v3460_v38, %v3217_v35  ;;  %v4178_v35 = vld [vmem:[#allocation25] ss:$0 sm:$0xff] }
0x15a9   : > { %v4459_v41 = vpop.f32.mrf.mxu1 }
0x15aa   : > { %v3472_v42 = vadd.f32 %v4170_v39, %v3464_v40 }
0x15ac   : > { %v3473_v43 = vadd.f32 %v3472_v42, %v5835_v5  ;;  %v3503_v5 = vld [vmem:[#allocation19] sm:$0xff] }
0x15ad   : > { %4467 = vmatpush3.msra.mxu0 %v3503_v5 }
0x15ae   : > { %v3474_v45 = vsel %vm1143_vm1, %v3473_v43, 0.0  ;;  %4490 = vmatprep.subr.mxu0 %v5275_v0 }
0x15af   : > { %3475 = vadd.xlane.f32.xlu1 %v3474_v45 }
0x1638   : > { %v3476_v44 = vpop.xlane.xlu1 %3475 }
0x1639   : > { %v3477_v46 = vmul.f32 0.03125, %v3476_v44 }
0x163b   : > { %v3478_v47 = vsub.f32 %v3473_v43, %v3477_v46 }
0x163d   : > { %v3479_v48 = vmul.f32 %v3478_v47, %v3478_v47 }
0x163f   : > { %v3480_v49 = vsel %vm1143_vm1, %v3479_v48, 0.0 }
0x1640   : > { %3481 = vadd.xlane.f32.xlu0 %v3480_v49 }
0x16c9   : > { %v3482_v57 = vpop.xlane.xlu0 %3481 }
0x16ca   : > { %v3483_v58 = vmul.f32 0.03125, %v3482_v57 }
0x16cc   : > { %v3484_v59 = vadd.f32 1e-05, %v3483_v58 }
0x16ce   : > { %4735 = vrsqrt.f32 %v3484_v59 }
0x16db   : > { %v4736_v60 = vpop.eup %4735 }
0x16dc   : > { %v3486_v62 = vmul.f32 %v4736_v60, %v3478_v47 }
0x16de   : > { %v3494_v1 = vmul.f32 %v4171_v61, %v3486_v62 }
0x16e0   : > { %v3502_v2 = vadd.f32 %v4172_v63, %v3494_v1 }
0x16e2   : > { %4469 = vmatmul.mubr.msk.f32.vlgmr.msra.gmra.mxu0 %vm1143_vm1, %v3502_v2 }
0x16e3   : > { %4498 = vmatprep.mubr.msk.f32.mxu0 %vm5276_vm0, %v5275_v0  ;;  %4491 = vmatpush3.msra.mxu0 %v3711_v9 }
0x16e4   : > { %4492 = vmatprep.subr.mxu0 %v5275_v0 }
0x16e5   : > { %4493 = vmatpush3.msra.mxu0 %v3710_v25 }
0x16e6   : > { %4494 = vmatprep.subr.mxu0 %v5275_v0 }
0x16e7   : > { %4495 = vmatpush3.msra.mxu0 %v3709_v26 }
0x16e8   : > { %4496 = vmatprep.subr.mxu0 %v5275_v0  ;;  %v4179_v0 = vld [vmem:[#allocation28] ss:$0 sm:$0xff] }
0x16e9   : > { %4497 = vmatpush3.msra.mxu0 %v3708_v27 }
0x17a2   : > { %v3583_v4 = vpop.f32.mrf.mxu0 }
0x17a3   : > { %v3584_v13 = vadd.f32 %v4173_v10, %v3583_v4 }
0x17a4   : > { %v4470_v14 = vpop.f32.mrf.mxu0 }
0x17a5   : > { %v3587_v15 = vmax.f32 %v3584_v13, 0.0 }
0x17a7   : > { %4488 = vmatmul.mubr.msk.f32.vlgmr.msra.gmra.mxu1 %vm3603_vm4, %v3587_v15 }
0x1867   : > { %v3673_v16 = vpop.f32.mrf.mxu1 }
0x1868   : > { %v3674_v17 = vadd.f32 %v4175_v12, %v3673_v16 }
0x1869   : > { %v4489_v18 = vpop.f32.mrf.mxu1 }
0x186a   : > { %v3677_v19 = vadd.f32 %v3674_v17, %v3502_v2 }
0x186c   : > { %v3678_v20 = vsel %vm1143_vm1, %v3677_v19, 0.0 }
0x186d   : > { %3679 = vadd.xlane.f32.xlu0 %v3678_v20 }
0x18f6   : > { %v3680_v11 = vpop.xlane.xlu0 %3679 }
0x18f7   : > { %v3681_v21 = vmul.f32 0.03125, %v3680_v11 }
0x18f9   : > { %v3682_v22 = vsub.f32 %v3677_v19, %v3681_v21 }
0x18fb   : > { %v3683_v23 = vmul.f32 %v3682_v22, %v3682_v22 }
0x18fd   : > { %v3684_v24 = vsel %vm1143_vm1, %v3683_v23, 0.0 }
0x18fe   : > { %3685 = vadd.xlane.f32.xlu1 %v3684_v24 }
0x1987   : > { %v3686_v28 = vpop.xlane.xlu1 %3685 }
0x1988   : > { %v3687_v30 = vmul.f32 0.03125, %v3686_v28 }
0x198a   : > { %v3688_v31 = vadd.f32 1e-05, %v3687_v30 }
0x198c   : > { %4737 = vrsqrt.f32 %v3688_v31 }
0x1999   : > { %v4738_v32 = vpop.eup %4737 }
0x199a   : > { %v3690_v34 = vmul.f32 %v4738_v32, %v3682_v22 }
0x199c   : > { %v3698_v36 = vmul.f32 %v4177_v33, %v3690_v34 }
0x199e   : > { %v3706_v29 = vadd.f32 %v4178_v35, %v3698_v36 }
0x19a0   : > { %3707 = vst.msk [vmem:[%s1122_s5] sm:$0xff] %vm1143_vm1, %v3706_v29  ;;  %4499 = vmatmul.mubr.msk.f32.vlgmr.msra.gmra.mxu0 %vm1143_vm1, %v3706_v29 }
0x1a60   : > { %v3788_v37 = vpop.f32.mrf.mxu0 }
0x1a61   : > { %v3789_v38 = vadd.f32 %v4179_v0, %v3788_v37 }
0x1a62   : > { %v4500_v39 = vpop.f32.mrf.mxu0 }
0x1a63   : > { %3792 = vst [vmem:[%s1126_s1] sm:$0xff] %v3789_v38 }
0x1a64 PF: > { %s49_s8 = sadd.s32 1, %s5253_s8  }
0x1a65   : > { %p46_p11 = scmp.ge.s32.totalorder %s49_s8, 4  }
0x1a67   :  { %48 = sbr.rel (!%p46_p11) target bundleno = 26 (0x1a), region = 249 }
0x1a6c   :  { %3826 = vsyncpa [#allocation3], 1 }
0x1a6d   :  { %3828 = vsyncpa [#allocation3 + $0x1], 1 }
0x1a6e   :  { %3829 = vsyncpa [#allocation5], 1 }
0x1a6f   :  { %3830 = vsyncpa [#allocation8], 1 }
0x1a70   :  { %3831 = vsyncpa [#allocation11], 1 }
0x1a71   :  { %3832 = vsyncpa [#allocation14], 1 }
0x1a72   :  { %3833 = vsyncpa [#allocation17], 1 }
0x1a73   :  { %3834 = vsyncpa [#allocation20], 1 }
0x1a74   :  { %3835 = vsyncpa [#allocation23], 1 }
0x1a75   :  { %3836 = vsyncpa [#allocation26], 1 }
0x1a76   :  { %3837 = vsyncpa [#allocation29], 1 }

</bundles_post_ra>
